<compile_context>
chip_gen: v7x
topology: tpu7x:2x2x1
jax: 0.10.0
libtpu: 0.0.40
codegen_flags: <defaults>
</compile_context>

<pallas_src>
import functools

import jax
import jax.numpy as jnp
from jax.experimental import pallas as pl
from jax.experimental.pallas import tpu as pltpu

C_HALF = 96      # per-half channel count (fixed by the module)
C_HID = 192      # hidden / WaveNet channel count
NUM_BLOCKS = 8   # WaveNet blocks, dilation 2**i


def _flow_kernel(x_ref, w1_ref, b1_ref, wn_w_ref, wn_b_ref, wm_ref, bm_ref,
                 z_ref, *, forward):
    # x_ref: (1, T, 192) tile; weights are full-resident VMEM tiles.
    x = x_ref[0]                              # (T, 192)
    T = x.shape[0]
    x0 = x[:, :C_HALF]                        # (T, 96)
    x1 = x[:, C_HALF:]                        # (T, 96)

    cdt = wn_w_ref.dtype                      # matmul operand dtype (f32 or bf16)

    # conv1d (kernel_size=1): pointwise channel matmul on the MXU.
    g = jnp.dot(x0.astype(w1_ref.dtype), w1_ref[...],
                preferred_element_type=jnp.float32) + b1_ref[...]   # (T, 192) f32

    # Row-index iota for masking the rolled (wrapped) rows to zero padding.
    # Hoisted once; the comparisons against d differ per block.
    row = jax.lax.broadcasted_iota(jnp.int32, (T, C_HID), 0)

    # WaveNet: residual dilated (k=3) conv + tanh, statically unrolled.
    for i in range(NUM_BLOCKS):
        d = 2 ** i
        w_cent = wn_w_ref[3 * i + 1]          # (192, 192) tap applied to g[t]
        b = wn_b_ref[i]                       # (1, 192)

        gc = g.astype(cdt)                    # cast once, reused by all taps
        conv = jnp.dot(gc, w_cent, preferred_element_type=jnp.float32) + b

        if d < T:
            # Side taps: g[t - d] and g[t + d] built with XLU roll + VPU mask
            # (no concatenate-based VMEM copies).
            w_prev = wn_w_ref[3 * i + 0]      # tap applied to g[t - d]
            w_next = wn_w_ref[3 * i + 2]      # tap applied to g[t + d]
            g_prev = jnp.where(row >= d,
                               pltpu.roll(gc, d, 0), 0.0).astype(cdt)
            g_next = jnp.where(row < T - d,
                               pltpu.roll(gc, T - d, 0), 0.0).astype(cdt)
            conv = (conv
                    + jnp.dot(g_prev, w_prev, preferred_element_type=jnp.float32)
                    + jnp.dot(g_next, w_next, preferred_element_type=jnp.float32))
        # else: dilation >= T -> side taps see only zero padding; statically
        # skip those matmuls entirely.

        g = g + jnp.tanh(conv)                # tanh on the EUP slot

    # conv1d_m (kernel_size=1)
    m = jnp.dot(g.astype(wm_ref.dtype), wm_ref[...],
                preferred_element_type=jnp.float32) + bm_ref[...]    # (T, 96) f32

    # forward: z = x1 + m ; inverse: z = x1 - m.  Fused concat -> lane-dense
    # 192-wide output store.
    delta = m if forward else -m
    z = (x1.astype(jnp.float32) + delta).astype(z_ref.dtype)
    z_ref[0] = jnp.concatenate([x0.astype(z_ref.dtype), z], axis=-1)


def flow_model(x, params, mode="forward", compute_dtype=None):
    """x: (B, T, 192) float32 (same tensor PyTorch's forward receives).
    Returns (B, 192, T), matching the PyTorch output layout.
    compute_dtype: optional matmul-operand dtype (e.g. jnp.bfloat16) for extra
    MXU throughput; accumulation stays f32. Default keeps the input dtype."""
    B, T, C = x.shape
    assert C == 2 * C_HALF
    forward = (mode == "forward")
    cdt = compute_dtype if compute_dtype is not None else x.dtype

    w1 = params["w1"].astype(cdt)
    wn_w = params["wn_w"].astype(cdt)
    wm = params["wm"].astype(cdt)

    kernel = functools.partial(_flow_kernel, forward=forward)
    z_p = pl.pallas_call(
        kernel,
        out_shape=jax.ShapeDtypeStruct((B, T, C), x.dtype),
        grid_spec=pltpu.PrefetchScalarGridSpec(
            num_scalar_prefetch=0,
            grid=(B,),
            in_specs=[
                pl.BlockSpec((1, T, C), lambda b: (b, 0, 0)),               # x
                pl.BlockSpec((C_HALF, C_HID), lambda b: (0, 0)),            # w1
                pl.BlockSpec((1, C_HID), lambda b: (0, 0)),                 # b1
                pl.BlockSpec((3 * NUM_BLOCKS, C_HID, C_HID),
                             lambda b: (0, 0, 0)),                          # wavenet W
                pl.BlockSpec((NUM_BLOCKS, 1, C_HID), lambda b: (0, 0, 0)),  # wavenet b
                pl.BlockSpec((C_HID, C_HALF), lambda b: (0, 0)),            # wm
                pl.BlockSpec((1, C_HALF), lambda b: (0, 0)),                # bm
            ],
            out_specs=pl.BlockSpec((1, T, C), lambda b: (b, 0, 0)),
        ),
        compiler_params=pltpu.CompilerParams(
            dimension_semantics=("parallel",),
            vmem_limit_bytes=48 * 1024 * 1024),
    )(x, w1, params["b1"], wn_w, params["wn_b"], wm, params["bm"])

    # Kernel already emits cat((x0, z)) along channels; only the layout
    # transpose to PyTorch's (B, C, T) remains here.
    return jnp.transpose(z_p, (0, 2, 1))                # (B, 192, T)


def init_params(key):
    """Deterministic synthetic parameters (PyTorch-style uniform fan-in init).
    Conv weights are stored transposed as (Cin, Cout) per tap for x @ W matmuls."""
    ks = jax.random.split(key, 6)

    def u(k, shape, fan_in):
        bound = 1.0 / (fan_in ** 0.5)
        return jax.random.uniform(k, shape, jnp.float32, -bound, bound)

    return dict(
        w1=u(ks[0], (C_HALF, C_HID), C_HALF),                        # conv1d (96->192, k=1)
        b1=u(ks[1], (1, C_HID), C_HALF),
        wn_w=u(ks[2], (3 * NUM_BLOCKS, C_HID, C_HID), 3 * C_HID),    # 8 blocks x 3 taps, (in,out)
        wn_b=u(ks[3], (NUM_BLOCKS, 1, C_HID), 3 * C_HID),
        wm=u(ks[4], (C_HID, C_HALF), C_HID),                         # conv1d_m (192->96, k=1)
        bm=u(ks[5], (1, C_HALF), C_HID),
    )
    # NOTE: the PyTorch module also defines `conv1d_g`, which is unused in forward().


def reference(x, params, mode="forward"):
    """Pure-JAX reference using lax.conv_general_dilated (NCH, like PyTorch)."""
    xc = jnp.transpose(x, (0, 2, 1))                 # (B, C, T)
    x0, x1 = xc[:, :C_HALF], xc[:, C_HALF:]

    def conv1x1(v, w, b):                            # v: (B, Cin, T), w: (Cin, Cout)
        return jnp.einsum("bct,cd->bdt", v, w) + b.reshape(1, -1, 1)

    g = conv1x1(x0, params["w1"], params["b1"])
    for i in range(NUM_BLOCKS):
        d = 2 ** i
        w_taps = params["wn_w"][3 * i:3 * i + 3]     # (3, in, out)
        w_oih = jnp.transpose(w_taps, (2, 1, 0))     # (out, in, k)
        conv = jax.lax.conv_general_dilated(
            g, w_oih, window_strides=(1,), padding=[(d, d)], rhs_dilation=(d,),
            dimension_numbers=("NCH", "OIH", "NCH"))
        conv = conv + params["wn_b"][i].reshape(1, -1, 1)
        g = g + jnp.tanh(conv)
    m = conv1x1(g, params["wm"], params["bm"])
    z = x1 + m if mode == "forward" else x1 - m
    return jnp.concatenate([x0, z], axis=1)          # (B, 192, T)


if __name__ == "__main__":
    key = jax.random.PRNGKey(0)
    k_x, k_p = jax.random.split(key)

    B, T = 2, 16
    x = jax.random.normal(k_x, (B, T, 2 * C_HALF), dtype=jnp.float32)
    params = init_params(k_p)

    for mode in ("forward", "inverse"):
        out = jax.block_until_ready(flow_model(x, params, mode=mode))
        ref = jax.block_until_ready(reference(x, params, mode=mode))
        assert out.shape == (B, 2 * C_HALF, T), out.shape
        assert jnp.allclose(out, ref, rtol=1e-4, atol=1e-4), \
            (mode, float(jnp.max(jnp.abs(out - ref))))

    print("KERNEL_OK")
</pallas_src>

<mosaic_0001>
module attributes {stable_mosaic.version = 11 : i64} {
  func.func @_flow_kernel(%arg0: i32, %arg1: memref<1x16x192xf32, #tpu.memory_space<vmem>>, %arg2: memref<96x192xf32, #tpu.memory_space<vmem>>, %arg3: memref<1x192xf32, #tpu.memory_space<vmem>>, %arg4: memref<24x192x192xf32, #tpu.memory_space<vmem>>, %arg5: memref<8x1x192xf32, #tpu.memory_space<vmem>>, %arg6: memref<192x96xf32, #tpu.memory_space<vmem>>, %arg7: memref<1x96xf32, #tpu.memory_space<vmem>>, %arg8: memref<1x16x192xf32, #tpu.memory_space<vmem>>) attributes {dimension_semantics = [#tpu.dimension_semantics<parallel>], iteration_bounds = array<i64: 2>, scalar_prefetch = 0 : i64, scratch_operands = 0 : i64, tpu.core_type = #tpu.core_type<tc>, window_params = [{transform_indices = @transform_0, window_bounds = array<i64: 1, 16, 192>}, {pipeline_mode = #tpu.pipeline_mode<synchronous>, transform_indices = @transform_1, window_bounds = array<i64: 96, 192>}, {pipeline_mode = #tpu.pipeline_mode<synchronous>, transform_indices = @transform_2, window_bounds = array<i64: 1, 192>}, {pipeline_mode = #tpu.pipeline_mode<synchronous>, transform_indices = @transform_3, window_bounds = array<i64: 24, 192, 192>}, {pipeline_mode = #tpu.pipeline_mode<synchronous>, transform_indices = @transform_4, window_bounds = array<i64: 8, 1, 192>}, {pipeline_mode = #tpu.pipeline_mode<synchronous>, transform_indices = @transform_5, window_bounds = array<i64: 192, 96>}, {pipeline_mode = #tpu.pipeline_mode<synchronous>, transform_indices = @transform_6, window_bounds = array<i64: 1, 96>}, {transform_indices = @transform_7, window_bounds = array<i64: 1, 16, 192>}]} {
    %c0 = arith.constant 0 : index
    %c0_0 = arith.constant 0 : index
    %c0_1 = arith.constant 0 : index
    %0 = vector.load %arg1[%c0, %c0_0, %c0_1] : memref<1x16x192xf32, #tpu.memory_space<vmem>>, vector<1x16x192xf32>
    %1 = vector.shape_cast %0 : vector<1x16x192xf32> to vector<16x192xf32>
    %2 = vector.extract_strided_slice %1 {offsets = [0, 0], sizes = [16, 96], strides = [1, 1]} : vector<16x192xf32> to vector<16x96xf32>
    %3 = vector.extract_strided_slice %1 {offsets = [0, 96], sizes = [16, 96], strides = [1, 1]} : vector<16x192xf32> to vector<16x96xf32>
    %c0_2 = arith.constant 0 : index
    %c0_3 = arith.constant 0 : index
    %4 = vector.load %arg2[%c0_2, %c0_3] : memref<96x192xf32, #tpu.memory_space<vmem>>, vector<96x192xf32>
    %cst = arith.constant dense<0.000000e+00> : vector<16x192xf32>
    %5 = tpu.matmul %2, %4, %cst {dimension_numbers = #tpu.dot_dimension_numbers<[1], [0], [0], [1], [0, 0, 1, 1], [], []>} : vector<16x96xf32>, vector<96x192xf32>, vector<16x192xf32> -> vector<16x192xf32>
    %c0_4 = arith.constant 0 : index
    %c0_5 = arith.constant 0 : index
    %6 = vector.load %arg3[%c0_4, %c0_5] : memref<1x192xf32, #tpu.memory_space<vmem>>, vector<1x192xf32>
    %7 = vector.broadcast %6 : vector<1x192xf32> to vector<16x192xf32>
    %8 = arith.addf %5, %7 : vector<16x192xf32>
    %9 = tpu.iota {dimensions = array<i32: 0>} : vector<16x192xi32>
    %c1 = arith.constant 1 : index
    %c0_6 = arith.constant 0 : index
    %c0_7 = arith.constant 0 : index
    %10 = vector.load %arg4[%c1, %c0_6, %c0_7] : memref<24x192x192xf32, #tpu.memory_space<vmem>>, vector<1x192x192xf32>
    %11 = vector.shape_cast %10 : vector<1x192x192xf32> to vector<192x192xf32>
    %c0_8 = arith.constant 0 : index
    %c0_9 = arith.constant 0 : index
    %c0_10 = arith.constant 0 : index
    %12 = vector.load %arg5[%c0_8, %c0_9, %c0_10] : memref<8x1x192xf32, #tpu.memory_space<vmem>>, vector<1x1x192xf32>
    %13 = vector.shape_cast %12 : vector<1x1x192xf32> to vector<1x192xf32>
    %cst_11 = arith.constant dense<0.000000e+00> : vector<16x192xf32>
    %14 = tpu.matmul %8, %11, %cst_11 {dimension_numbers = #tpu.dot_dimension_numbers<[1], [0], [0], [1], [0, 0, 1, 1], [], []>} : vector<16x192xf32>, vector<192x192xf32>, vector<16x192xf32> -> vector<16x192xf32>
    %15 = vector.broadcast %13 : vector<1x192xf32> to vector<16x192xf32>
    %16 = arith.addf %14, %15 : vector<16x192xf32>
    %c0_12 = arith.constant 0 : index
    %c0_13 = arith.constant 0 : index
    %c0_14 = arith.constant 0 : index
    %17 = vector.load %arg4[%c0_12, %c0_13, %c0_14] : memref<24x192x192xf32, #tpu.memory_space<vmem>>, vector<1x192x192xf32>
    %18 = vector.shape_cast %17 : vector<1x192x192xf32> to vector<192x192xf32>
    %c2 = arith.constant 2 : index
    %c0_15 = arith.constant 0 : index
    %c0_16 = arith.constant 0 : index
    %19 = vector.load %arg4[%c2, %c0_15, %c0_16] : memref<24x192x192xf32, #tpu.memory_space<vmem>>, vector<1x192x192xf32>
    %20 = vector.shape_cast %19 : vector<1x192x192xf32> to vector<192x192xf32>
    %c1_i32 = arith.constant 1 : i32
    %21 = vector.broadcast %c1_i32 : i32 to vector<16x192xi32>
    %22 = arith.cmpi sge, %9, %21 : vector<16x192xi32>
    %c1_i32_17 = arith.constant 1 : i32
    %23 = tpu.dynamic_rotate %8 by %c1_i32_17 dim 0 : vector<16x192xf32>, i32 -> vector<16x192xf32>
    %cst_18 = arith.constant 0.000000e+00 : f32
    %24 = vector.broadcast %cst_18 : f32 to vector<16x192xf32>
    %25 = arith.select %22, %23, %24 : vector<16x192xi1>, vector<16x192xf32>
    %c15_i32 = arith.constant 15 : i32
    %26 = vector.broadcast %c15_i32 : i32 to vector<16x192xi32>
    %27 = arith.cmpi slt, %9, %26 : vector<16x192xi32>
    %c15_i32_19 = arith.constant 15 : i32
    %28 = tpu.dynamic_rotate %8 by %c15_i32_19 dim 0 : vector<16x192xf32>, i32 -> vector<16x192xf32>
    %cst_20 = arith.constant 0.000000e+00 : f32
    %29 = vector.broadcast %cst_20 : f32 to vector<16x192xf32>
    %30 = arith.select %27, %28, %29 : vector<16x192xi1>, vector<16x192xf32>
    %cst_21 = arith.constant dense<0.000000e+00> : vector<16x192xf32>
    %31 = tpu.matmul %25, %18, %cst_21 {dimension_numbers = #tpu.dot_dimension_numbers<[1], [0], [0], [1], [0, 0, 1, 1], [], []>} : vector<16x192xf32>, vector<192x192xf32>, vector<16x192xf32> -> vector<16x192xf32>
    %32 = arith.addf %16, %31 : vector<16x192xf32>
    %cst_22 = arith.constant dense<0.000000e+00> : vector<16x192xf32>
    %33 = tpu.matmul %30, %20, %cst_22 {dimension_numbers = #tpu.dot_dimension_numbers<[1], [0], [0], [1], [0, 0, 1, 1], [], []>} : vector<16x192xf32>, vector<192x192xf32>, vector<16x192xf32> -> vector<16x192xf32>
    %34 = arith.addf %32, %33 : vector<16x192xf32>
    %35 = math.tanh %34 : vector<16x192xf32>
    %36 = arith.addf %8, %35 : vector<16x192xf32>
    %c4 = arith.constant 4 : index
    %c0_23 = arith.constant 0 : index
    %c0_24 = arith.constant 0 : index
    %37 = vector.load %arg4[%c4, %c0_23, %c0_24] : memref<24x192x192xf32, #tpu.memory_space<vmem>>, vector<1x192x192xf32>
    %38 = vector.shape_cast %37 : vector<1x192x192xf32> to vector<192x192xf32>
    %c1_25 = arith.constant 1 : index
    %c0_26 = arith.constant 0 : index
    %c0_27 = arith.constant 0 : index
    %39 = vector.load %arg5[%c1_25, %c0_26, %c0_27] : memref<8x1x192xf32, #tpu.memory_space<vmem>>, vector<1x1x192xf32>
    %40 = vector.shape_cast %39 : vector<1x1x192xf32> to vector<1x192xf32>
    %cst_28 = arith.constant dense<0.000000e+00> : vector<16x192xf32>
    %41 = tpu.matmul %36, %38, %cst_28 {dimension_numbers = #tpu.dot_dimension_numbers<[1], [0], [0], [1], [0, 0, 1, 1], [], []>} : vector<16x192xf32>, vector<192x192xf32>, vector<16x192xf32> -> vector<16x192xf32>
    %42 = vector.broadcast %40 : vector<1x192xf32> to vector<16x192xf32>
    %43 = arith.addf %41, %42 : vector<16x192xf32>
    %c3 = arith.constant 3 : index
    %c0_29 = arith.constant 0 : index
    %c0_30 = arith.constant 0 : index
    %44 = vector.load %arg4[%c3, %c0_29, %c0_30] : memref<24x192x192xf32, #tpu.memory_space<vmem>>, vector<1x192x192xf32>
    %45 = vector.shape_cast %44 : vector<1x192x192xf32> to vector<192x192xf32>
    %c5 = arith.constant 5 : index
    %c0_31 = arith.constant 0 : index
    %c0_32 = arith.constant 0 : index
    %46 = vector.load %arg4[%c5, %c0_31, %c0_32] : memref<24x192x192xf32, #tpu.memory_space<vmem>>, vector<1x192x192xf32>
    %47 = vector.shape_cast %46 : vector<1x192x192xf32> to vector<192x192xf32>
    %c2_i32 = arith.constant 2 : i32
    %48 = vector.broadcast %c2_i32 : i32 to vector<16x192xi32>
    %49 = arith.cmpi sge, %9, %48 : vector<16x192xi32>
    %c2_i32_33 = arith.constant 2 : i32
    %50 = tpu.dynamic_rotate %36 by %c2_i32_33 dim 0 : vector<16x192xf32>, i32 -> vector<16x192xf32>
    %cst_34 = arith.constant 0.000000e+00 : f32
    %51 = vector.broadcast %cst_34 : f32 to vector<16x192xf32>
    %52 = arith.select %49, %50, %51 : vector<16x192xi1>, vector<16x192xf32>
    %c14_i32 = arith.constant 14 : i32
    %53 = vector.broadcast %c14_i32 : i32 to vector<16x192xi32>
    %54 = arith.cmpi slt, %9, %53 : vector<16x192xi32>
    %c14_i32_35 = arith.constant 14 : i32
    %55 = tpu.dynamic_rotate %36 by %c14_i32_35 dim 0 : vector<16x192xf32>, i32 -> vector<16x192xf32>
    %cst_36 = arith.constant 0.000000e+00 : f32
    %56 = vector.broadcast %cst_36 : f32 to vector<16x192xf32>
    %57 = arith.select %54, %55, %56 : vector<16x192xi1>, vector<16x192xf32>
    %cst_37 = arith.constant dense<0.000000e+00> : vector<16x192xf32>
    %58 = tpu.matmul %52, %45, %cst_37 {dimension_numbers = #tpu.dot_dimension_numbers<[1], [0], [0], [1], [0, 0, 1, 1], [], []>} : vector<16x192xf32>, vector<192x192xf32>, vector<16x192xf32> -> vector<16x192xf32>
    %59 = arith.addf %43, %58 : vector<16x192xf32>
    %cst_38 = arith.constant dense<0.000000e+00> : vector<16x192xf32>
    %60 = tpu.matmul %57, %47, %cst_38 {dimension_numbers = #tpu.dot_dimension_numbers<[1], [0], [0], [1], [0, 0, 1, 1], [], []>} : vector<16x192xf32>, vector<192x192xf32>, vector<16x192xf32> -> vector<16x192xf32>
    %61 = arith.addf %59, %60 : vector<16x192xf32>
    %62 = math.tanh %61 : vector<16x192xf32>
    %63 = arith.addf %36, %62 : vector<16x192xf32>
    %c7 = arith.constant 7 : index
    %c0_39 = arith.constant 0 : index
    %c0_40 = arith.constant 0 : index
    %64 = vector.load %arg4[%c7, %c0_39, %c0_40] : memref<24x192x192xf32, #tpu.memory_space<vmem>>, vector<1x192x192xf32>
    %65 = vector.shape_cast %64 : vector<1x192x192xf32> to vector<192x192xf32>
    %c2_41 = arith.constant 2 : index
    %c0_42 = arith.constant 0 : index
    %c0_43 = arith.constant 0 : index
    %66 = vector.load %arg5[%c2_41, %c0_42, %c0_43] : memref<8x1x192xf32, #tpu.memory_space<vmem>>, vector<1x1x192xf32>
    %67 = vector.shape_cast %66 : vector<1x1x192xf32> to vector<1x192xf32>
    %cst_44 = arith.constant dense<0.000000e+00> : vector<16x192xf32>
    %68 = tpu.matmul %63, %65, %cst_44 {dimension_numbers = #tpu.dot_dimension_numbers<[1], [0], [0], [1], [0, 0, 1, 1], [], []>} : vector<16x192xf32>, vector<192x192xf32>, vector<16x192xf32> -> vector<16x192xf32>
    %69 = vector.broadcast %67 : vector<1x192xf32> to vector<16x192xf32>
    %70 = arith.addf %68, %69 : vector<16x192xf32>
    %c6 = arith.constant 6 : index
    %c0_45 = arith.constant 0 : index
    %c0_46 = arith.constant 0 : index
    %71 = vector.load %arg4[%c6, %c0_45, %c0_46] : memref<24x192x192xf32, #tpu.memory_space<vmem>>, vector<1x192x192xf32>
    %72 = vector.shape_cast %71 : vector<1x192x192xf32> to vector<192x192xf32>
    %c8 = arith.constant 8 : index
    %c0_47 = arith.constant 0 : index
    %c0_48 = arith.constant 0 : index
    %73 = vector.load %arg4[%c8, %c0_47, %c0_48] : memref<24x192x192xf32, #tpu.memory_space<vmem>>, vector<1x192x192xf32>
    %74 = vector.shape_cast %73 : vector<1x192x192xf32> to vector<192x192xf32>
    %c4_i32 = arith.constant 4 : i32
    %75 = vector.broadcast %c4_i32 : i32 to vector<16x192xi32>
    %76 = arith.cmpi sge, %9, %75 : vector<16x192xi32>
    %c4_i32_49 = arith.constant 4 : i32
    %77 = tpu.dynamic_rotate %63 by %c4_i32_49 dim 0 : vector<16x192xf32>, i32 -> vector<16x192xf32>
    %cst_50 = arith.constant 0.000000e+00 : f32
    %78 = vector.broadcast %cst_50 : f32 to vector<16x192xf32>
    %79 = arith.select %76, %77, %78 : vector<16x192xi1>, vector<16x192xf32>
    %c12_i32 = arith.constant 12 : i32
    %80 = vector.broadcast %c12_i32 : i32 to vector<16x192xi32>
    %81 = arith.cmpi slt, %9, %80 : vector<16x192xi32>
    %c12_i32_51 = arith.constant 12 : i32
    %82 = tpu.dynamic_rotate %63 by %c12_i32_51 dim 0 : vector<16x192xf32>, i32 -> vector<16x192xf32>
    %cst_52 = arith.constant 0.000000e+00 : f32
    %83 = vector.broadcast %cst_52 : f32 to vector<16x192xf32>
    %84 = arith.select %81, %82, %83 : vector<16x192xi1>, vector<16x192xf32>
    %cst_53 = arith.constant dense<0.000000e+00> : vector<16x192xf32>
    %85 = tpu.matmul %79, %72, %cst_53 {dimension_numbers = #tpu.dot_dimension_numbers<[1], [0], [0], [1], [0, 0, 1, 1], [], []>} : vector<16x192xf32>, vector<192x192xf32>, vector<16x192xf32> -> vector<16x192xf32>
    %86 = arith.addf %70, %85 : vector<16x192xf32>
    %cst_54 = arith.constant dense<0.000000e+00> : vector<16x192xf32>
    %87 = tpu.matmul %84, %74, %cst_54 {dimension_numbers = #tpu.dot_dimension_numbers<[1], [0], [0], [1], [0, 0, 1, 1], [], []>} : vector<16x192xf32>, vector<192x192xf32>, vector<16x192xf32> -> vector<16x192xf32>
    %88 = arith.addf %86, %87 : vector<16x192xf32>
    %89 = math.tanh %88 : vector<16x192xf32>
    %90 = arith.addf %63, %89 : vector<16x192xf32>
    %c10 = arith.constant 10 : index
    %c0_55 = arith.constant 0 : index
    %c0_56 = arith.constant 0 : index
    %91 = vector.load %arg4[%c10, %c0_55, %c0_56] : memref<24x192x192xf32, #tpu.memory_space<vmem>>, vector<1x192x192xf32>
    %92 = vector.shape_cast %91 : vector<1x192x192xf32> to vector<192x192xf32>
    %c3_57 = arith.constant 3 : index
    %c0_58 = arith.constant 0 : index
    %c0_59 = arith.constant 0 : index
    %93 = vector.load %arg5[%c3_57, %c0_58, %c0_59] : memref<8x1x192xf32, #tpu.memory_space<vmem>>, vector<1x1x192xf32>
    %94 = vector.shape_cast %93 : vector<1x1x192xf32> to vector<1x192xf32>
    %cst_60 = arith.constant dense<0.000000e+00> : vector<16x192xf32>
    %95 = tpu.matmul %90, %92, %cst_60 {dimension_numbers = #tpu.dot_dimension_numbers<[1], [0], [0], [1], [0, 0, 1, 1], [], []>} : vector<16x192xf32>, vector<192x192xf32>, vector<16x192xf32> -> vector<16x192xf32>
    %96 = vector.broadcast %94 : vector<1x192xf32> to vector<16x192xf32>
    %97 = arith.addf %95, %96 : vector<16x192xf32>
    %c9 = arith.constant 9 : index
    %c0_61 = arith.constant 0 : index
    %c0_62 = arith.constant 0 : index
    %98 = vector.load %arg4[%c9, %c0_61, %c0_62] : memref<24x192x192xf32, #tpu.memory_space<vmem>>, vector<1x192x192xf32>
    %99 = vector.shape_cast %98 : vector<1x192x192xf32> to vector<192x192xf32>
    %c11 = arith.constant 11 : index
    %c0_63 = arith.constant 0 : index
    %c0_64 = arith.constant 0 : index
    %100 = vector.load %arg4[%c11, %c0_63, %c0_64] : memref<24x192x192xf32, #tpu.memory_space<vmem>>, vector<1x192x192xf32>
    %101 = vector.shape_cast %100 : vector<1x192x192xf32> to vector<192x192xf32>
    %c8_i32 = arith.constant 8 : i32
    %102 = vector.broadcast %c8_i32 : i32 to vector<16x192xi32>
    %103 = arith.cmpi sge, %9, %102 : vector<16x192xi32>
    %c8_i32_65 = arith.constant 8 : i32
    %104 = tpu.dynamic_rotate %90 by %c8_i32_65 dim 0 : vector<16x192xf32>, i32 -> vector<16x192xf32>
    %cst_66 = arith.constant 0.000000e+00 : f32
    %105 = vector.broadcast %cst_66 : f32 to vector<16x192xf32>
    %106 = arith.select %103, %104, %105 : vector<16x192xi1>, vector<16x192xf32>
    %c8_i32_67 = arith.constant 8 : i32
    %107 = vector.broadcast %c8_i32_67 : i32 to vector<16x192xi32>
    %108 = arith.cmpi slt, %9, %107 : vector<16x192xi32>
    %c8_i32_68 = arith.constant 8 : i32
    %109 = tpu.dynamic_rotate %90 by %c8_i32_68 dim 0 : vector<16x192xf32>, i32 -> vector<16x192xf32>
    %cst_69 = arith.constant 0.000000e+00 : f32
    %110 = vector.broadcast %cst_69 : f32 to vector<16x192xf32>
    %111 = arith.select %108, %109, %110 : vector<16x192xi1>, vector<16x192xf32>
    %cst_70 = arith.constant dense<0.000000e+00> : vector<16x192xf32>
    %112 = tpu.matmul %106, %99, %cst_70 {dimension_numbers = #tpu.dot_dimension_numbers<[1], [0], [0], [1], [0, 0, 1, 1], [], []>} : vector<16x192xf32>, vector<192x192xf32>, vector<16x192xf32> -> vector<16x192xf32>
    %113 = arith.addf %97, %112 : vector<16x192xf32>
    %cst_71 = arith.constant dense<0.000000e+00> : vector<16x192xf32>
    %114 = tpu.matmul %111, %101, %cst_71 {dimension_numbers = #tpu.dot_dimension_numbers<[1], [0], [0], [1], [0, 0, 1, 1], [], []>} : vector<16x192xf32>, vector<192x192xf32>, vector<16x192xf32> -> vector<16x192xf32>
    %115 = arith.addf %113, %114 : vector<16x192xf32>
    %116 = math.tanh %115 : vector<16x192xf32>
    %117 = arith.addf %90, %116 : vector<16x192xf32>
    %c13 = arith.constant 13 : index
    %c0_72 = arith.constant 0 : index
    %c0_73 = arith.constant 0 : index
    %118 = vector.load %arg4[%c13, %c0_72, %c0_73] : memref<24x192x192xf32, #tpu.memory_space<vmem>>, vector<1x192x192xf32>
    %119 = vector.shape_cast %118 : vector<1x192x192xf32> to vector<192x192xf32>
    %c4_74 = arith.constant 4 : index
    %c0_75 = arith.constant 0 : index
    %c0_76 = arith.constant 0 : index
    %120 = vector.load %arg5[%c4_74, %c0_75, %c0_76] : memref<8x1x192xf32, #tpu.memory_space<vmem>>, vector<1x1x192xf32>
    %121 = vector.shape_cast %120 : vector<1x1x192xf32> to vector<1x192xf32>
    %cst_77 = arith.constant dense<0.000000e+00> : vector<16x192xf32>
    %122 = tpu.matmul %117, %119, %cst_77 {dimension_numbers = #tpu.dot_dimension_numbers<[1], [0], [0], [1], [0, 0, 1, 1], [], []>} : vector<16x192xf32>, vector<192x192xf32>, vector<16x192xf32> -> vector<16x192xf32>
    %123 = vector.broadcast %121 : vector<1x192xf32> to vector<16x192xf32>
    %124 = arith.addf %122, %123 : vector<16x192xf32>
    %125 = math.tanh %124 : vector<16x192xf32>
    %126 = arith.addf %117, %125 : vector<16x192xf32>
    %c16 = arith.constant 16 : index
    %c0_78 = arith.constant 0 : index
    %c0_79 = arith.constant 0 : index
    %127 = vector.load %arg4[%c16, %c0_78, %c0_79] : memref<24x192x192xf32, #tpu.memory_space<vmem>>, vector<1x192x192xf32>
    %128 = vector.shape_cast %127 : vector<1x192x192xf32> to vector<192x192xf32>
    %c5_80 = arith.constant 5 : index
    %c0_81 = arith.constant 0 : index
    %c0_82 = arith.constant 0 : index
    %129 = vector.load %arg5[%c5_80, %c0_81, %c0_82] : memref<8x1x192xf32, #tpu.memory_space<vmem>>, vector<1x1x192xf32>
    %130 = vector.shape_cast %129 : vector<1x1x192xf32> to vector<1x192xf32>
    %cst_83 = arith.constant dense<0.000000e+00> : vector<16x192xf32>
    %131 = tpu.matmul %126, %128, %cst_83 {dimension_numbers = #tpu.dot_dimension_numbers<[1], [0], [0], [1], [0, 0, 1, 1], [], []>} : vector<16x192xf32>, vector<192x192xf32>, vector<16x192xf32> -> vector<16x192xf32>
    %132 = vector.broadcast %130 : vector<1x192xf32> to vector<16x192xf32>
    %133 = arith.addf %131, %132 : vector<16x192xf32>
    %134 = math.tanh %133 : vector<16x192xf32>
    %135 = arith.addf %126, %134 : vector<16x192xf32>
    %c19 = arith.constant 19 : index
    %c0_84 = arith.constant 0 : index
    %c0_85 = arith.constant 0 : index
    %136 = vector.load %arg4[%c19, %c0_84, %c0_85] : memref<24x192x192xf32, #tpu.memory_space<vmem>>, vector<1x192x192xf32>
    %137 = vector.shape_cast %136 : vector<1x192x192xf32> to vector<192x192xf32>
    %c6_86 = arith.constant 6 : index
    %c0_87 = arith.constant 0 : index
    %c0_88 = arith.constant 0 : index
    %138 = vector.load %arg5[%c6_86, %c0_87, %c0_88] : memref<8x1x192xf32, #tpu.memory_space<vmem>>, vector<1x1x192xf32>
    %139 = vector.shape_cast %138 : vector<1x1x192xf32> to vector<1x192xf32>
    %cst_89 = arith.constant dense<0.000000e+00> : vector<16x192xf32>
    %140 = tpu.matmul %135, %137, %cst_89 {dimension_numbers = #tpu.dot_dimension_numbers<[1], [0], [0], [1], [0, 0, 1, 1], [], []>} : vector<16x192xf32>, vector<192x192xf32>, vector<16x192xf32> -> vector<16x192xf32>
    %141 = vector.broadcast %139 : vector<1x192xf32> to vector<16x192xf32>
    %142 = arith.addf %140, %141 : vector<16x192xf32>
    %143 = math.tanh %142 : vector<16x192xf32>
    %144 = arith.addf %135, %143 : vector<16x192xf32>
    %c22 = arith.constant 22 : index
    %c0_90 = arith.constant 0 : index
    %c0_91 = arith.constant 0 : index
    %145 = vector.load %arg4[%c22, %c0_90, %c0_91] : memref<24x192x192xf32, #tpu.memory_space<vmem>>, vector<1x192x192xf32>
    %146 = vector.shape_cast %145 : vector<1x192x192xf32> to vector<192x192xf32>
    %c7_92 = arith.constant 7 : index
    %c0_93 = arith.constant 0 : index
    %c0_94 = arith.constant 0 : index
    %147 = vector.load %arg5[%c7_92, %c0_93, %c0_94] : memref<8x1x192xf32, #tpu.memory_space<vmem>>, vector<1x1x192xf32>
    %148 = vector.shape_cast %147 : vector<1x1x192xf32> to vector<1x192xf32>
    %cst_95 = arith.constant dense<0.000000e+00> : vector<16x192xf32>
    %149 = tpu.matmul %144, %146, %cst_95 {dimension_numbers = #tpu.dot_dimension_numbers<[1], [0], [0], [1], [0, 0, 1, 1], [], []>} : vector<16x192xf32>, vector<192x192xf32>, vector<16x192xf32> -> vector<16x192xf32>
    %150 = vector.broadcast %148 : vector<1x192xf32> to vector<16x192xf32>
    %151 = arith.addf %149, %150 : vector<16x192xf32>
    %152 = math.tanh %151 : vector<16x192xf32>
    %153 = arith.addf %144, %152 : vector<16x192xf32>
    %c0_96 = arith.constant 0 : index
    %c0_97 = arith.constant 0 : index
    %154 = vector.load %arg6[%c0_96, %c0_97] : memref<192x96xf32, #tpu.memory_space<vmem>>, vector<192x96xf32>
    %cst_98 = arith.constant dense<0.000000e+00> : vector<16x96xf32>
    %155 = tpu.matmul %153, %154, %cst_98 {dimension_numbers = #tpu.dot_dimension_numbers<[1], [0], [0], [1], [0, 0, 1, 1], [], []>} : vector<16x192xf32>, vector<192x96xf32>, vector<16x96xf32> -> vector<16x96xf32>
    %c0_99 = arith.constant 0 : index
    %c0_100 = arith.constant 0 : index
    %156 = vector.load %arg7[%c0_99, %c0_100] : memref<1x96xf32, #tpu.memory_space<vmem>>, vector<1x96xf32>
    %157 = vector.broadcast %156 : vector<1x96xf32> to vector<16x96xf32>
    %158 = arith.addf %155, %157 : vector<16x96xf32>
    %159 = arith.addf %3, %158 : vector<16x96xf32>
    %160 = tpu.concatenate %2, %159 in 1 : vector<16x96xf32>, vector<16x96xf32> -> vector<16x192xf32>
    %c0_101 = arith.constant 0 : index
    %c0_102 = arith.constant 0 : index
    %c0_103 = arith.constant 0 : index
    %161 = vector.load %arg8[%c0_101, %c0_102, %c0_103] : memref<1x16x192xf32, #tpu.memory_space<vmem>>, vector<1x16x192xf32>
    %162 = vector.shape_cast %161 : vector<1x16x192xf32> to vector<16x192xf32>
    %163 = vector.shape_cast %160 : vector<16x192xf32> to vector<1x16x192xf32>
    tpu.vector_store %arg8[%c0_101, %c0_102, %c0_103], %163 {strides = array<i32>} : memref<1x16x192xf32, #tpu.memory_space<vmem>>, vector<1x16x192xf32>,
    return
  }
  func.func @transform_0(%arg0: i32) -> (i32, i32, i32) {
    %c0_i32 = arith.constant 0 : i32
    %c0_i32_0 = arith.constant 0 : i32
    %c0_i32_1 = arith.constant 0 : i32
    return %arg0, %c0_i32, %c0_i32_0 : i32, i32, i32
  }
  func.func @transform_1(%arg0: i32) -> (i32, i32) {
    %c0_i32 = arith.constant 0 : i32
    %c0_i32_0 = arith.constant 0 : i32
    %c0_i32_1 = arith.constant 0 : i32
    return %c0_i32, %c0_i32_0 : i32, i32
  }
  func.func @transform_2(%arg0: i32) -> (i32, i32) {
    %c0_i32 = arith.constant 0 : i32
    %c0_i32_0 = arith.constant 0 : i32
    %c0_i32_1 = arith.constant 0 : i32
    return %c0_i32, %c0_i32_0 : i32, i32
  }
  func.func @transform_3(%arg0: i32) -> (i32, i32, i32) {
    %c0_i32 = arith.constant 0 : i32
    %c0_i32_0 = arith.constant 0 : i32
    %c0_i32_1 = arith.constant 0 : i32
    %c0_i32_2 = arith.constant 0 : i32
    return %c0_i32, %c0_i32_0, %c0_i32_1 : i32, i32, i32
  }
  func.func @transform_4(%arg0: i32) -> (i32, i32, i32) {
    %c0_i32 = arith.constant 0 : i32
    %c0_i32_0 = arith.constant 0 : i32
    %c0_i32_1 = arith.constant 0 : i32
    %c0_i32_2 = arith.constant 0 : i32
    return %c0_i32, %c0_i32_0, %c0_i32_1 : i32, i32, i32
  }
  func.func @transform_5(%arg0: i32) -> (i32, i32) {
    %c0_i32 = arith.constant 0 : i32
    %c0_i32_0 = arith.constant 0 : i32
    %c0_i32_1 = arith.constant 0 : i32
    return %c0_i32, %c0_i32_0 : i32, i32
  }
  func.func @transform_6(%arg0: i32) -> (i32, i32) {
    %c0_i32 = arith.constant 0 : i32
    %c0_i32_0 = arith.constant 0 : i32
    %c0_i32_1 = arith.constant 0 : i32
    return %c0_i32, %c0_i32_0 : i32, i32
  }
  func.func @transform_7(%arg0: i32) -> (i32, i32, i32) {
    %c0_i32 = arith.constant 0 : i32
    %c0_i32_0 = arith.constant 0 : i32
    %c0_i32_1 = arith.constant 0 : i32
    return %arg0, %c0_i32, %c0_i32_0 : i32, i32, i32
  }
}

</mosaic_0001>

<bundles_post_ra>
// kernel: tpu_custom_call.1
= control target key start
LH: loop header
LB: loop body
LE: loop exit
PB: predicated region body
PF: predicated region fallthrough
CT: control target
= control target key end

     0   :  { %s5333_s0 = inlined_call_operand.hbm [shape: f32[2,16,192], index: 0, kind: input, shape index: {}]   ;;  %s5334_s1 = inlined_call_operand.hbm [shape: f32[96,192], index: 1, kind: input, shape index: {}]   ;;  %s5335_s2 = inlined_call_operand.hbm [shape: f32[1,192], index: 2, kind: input, shape index: {}]   ;;  %s5336_s3 = inlined_call_operand.hbm [shape: f32[24,192,192], index: 3, kind: input, shape index: {}]   ;;  %s5337_s4 = inlined_call_operand.hbm [shape: f32[8,1,192], index: 4, kind: input, shape index: {}]   ;;  %s5338_s5 = inlined_call_operand.hbm [shape: f32[192,96], index: 5, kind: input, shape index: {}]   ;;  %s5339_s6 = inlined_call_operand.hbm [shape: f32[1,96], index: 6, kind: input, shape index: {}]   ;;  %s5340_s7 = inlined_call_operand.hbm [shape: f32[2,16,192], index: 7, kind: output, shape index: {}]  }
   0x1   :  { %5346 = sst [smem:[#allocation20_spill]] %s5334_s1 }
   0x2   :  { %12 = vsyncpa [#allocation3], 0 }
   0x3   :  { %14 = vsyncpa [#allocation3 + $0x1], 0 }
   0x4   :  { %15 = vsyncpa [#allocation6], 0 }
   0x5   :  { %16 = vsyncpa [#allocation9], 0 }
   0x6   :  { %17 = vsyncpa [#allocation12], 0 }
   0x7   :  { %18 = vsyncpa [#allocation4], 0 }
   0x8   :  { %20 = vsyncpa [#allocation4 + $0x1], 0  ;;  %s4651_s24 = smov 0   ;;  %s4653_s25 = smov 0  }
   0x9   :  { %s4655_s26 = smov 0   ;;  %s4657_s27 = smov 0  }
   0xa LB: > { %s4592_s28 = smov [#allocation5]   ;;  %s4672_s30 = sadd.s32 4294967295, %s4590_s27   ;;  %s4590_s27 = sphi %s4657_s27, %s5372_s27   ;;  %s4586_s26 = sphi %s4655_s26, %s5371_s26   ;;  %s4582_s25 = sphi %s4653_s25, %s5370_s25   ;;  %s4578_s24 = sphi %s4651_s24, %s5369_s24  }
   0xb   : > { %s221_s29 = sshll.u32 %s4592_s28, 4  ;;  %p3186_p0 = scmp.ge.s32.totalorder %s4590_s27, 1  ;;  %s4677_s29 = int_to_ptr.vmem [resolvable:$true] %s221_s29 }
   0xc   : > { %p5343_p1 = scmp.eq.s32.totalorder %s4672_s30, 0  ;;  %p209_p2 = scmp.lt.s32.totalorder %s4590_s27, 3 }
   0xd   : > { %s4593_s9 = smov [#allocation8]   ;;  %s4594_s12 = smov [#allocation11]  }
   0xe   : > { %p4679_p3 = pnand %p3186_p0, %p209_p2  ;;  %s245_s10 = sshll.u32 %s4593_s9, 4  ;;  %s4692_s10 = int_to_ptr.vmem [resolvable:$true] %s245_s10 }
   0xf   : > { %s271_s13 = sshll.u32 %s4594_s12, 4  ;;  %s5349_s1 = sld [smem:[#allocation20_spill]]  ;;  %s4694_s13 = int_to_ptr.vmem [resolvable:$true] %s271_s13 }
  0x10   : > { %s5347_s8 = scalar_select %p4679_p3, 1, 0 }
  0x11   : > { %p4158_p5 = pneg %p4679_p3 }
  0x13   : > { %p4688_p6 = pnand %p4158_p5, %p5343_p1 }
  0x15   : > { %s4314_s16 = scalar_lea.hbm %s5349_s1, 3072  ;;  %p4704_p8 = pneg %p4688_p6 }
  0x16   : > { %p4315_p7 = scmp.ne.s32.totalorder %s5349_s1, %s4314_s16  ;;  %p4321_p11 = scmp.lt.u32.totalorder %s4314_s16, %s5349_s1 }
  0x18   : > { %p4317_p9 = pnand %p4704_p8, %p4315_p7 }
  0x1a   : > { %p4318_p10 = pneg %p4317_p9 }
  0x1c   : > { %p4323_p12 = pnand %p4321_p11, %p4318_p10 }
  0x1e   : > { %4326 = shalt.err (!%p4323_p12)
}
  0x1f   : > { %s4327_s22 = scalar_lea.vmem %s4677_s29, 3072  ;;  %p4335_p5 = scmp.lt.s32.totalorder %s4677_s29, %s4677_s29 }
  0x20   : > { %p4328_p13 = scmp.ne.s32.totalorder %s4677_s29, %s4327_s22  ;;  %p4336_p4 = scmp.lt.s32.totalorder %s4327_s22, %s4327_s22 }
  0x22   : > { %p4330_p0 = pnand %p4328_p13, %p4704_p8  ;;  %p4337_p7 = por %p4336_p4, %p4335_p5 }
  0x24   : > { %p4331_p2 = pneg %p4330_p0 }
  0x26   : > { %p4338_p9 = pnand %p4337_p7, %p4331_p2 }
  0x28   : > { %4341 = shalt.err (!%p4338_p9)
}
  0x29   : > { %s5341_s23 = smov 256   ;;  %s5342_s28 = smov 16  }
  0x2a   : > { %4161 = dma.hbm_to_vmem [thread:$0]  (!%p4688_p6), %s5349_s1, 3072, %s4677_s29, [#allocation6], %s5341_s23, %s5341_s23, %s5342_s28  }
  0x2b   : > { %s4342_s16 = scalar_lea.hbm %s5336_s3, 147456 }
  0x2c   : > { %p4343_p4 = scmp.ne.s32.totalorder %s5336_s3, %s4342_s16  ;;  %p4349_p12 = scmp.lt.u32.totalorder %s4342_s16, %s5336_s3 }
  0x2e   : > { %p4345_p10 = pnand %p4343_p4, %p4704_p8 }
  0x30   : > { %p4346_p11 = pneg %p4345_p10 }
  0x32   : > { %p4351_p13 = pnand %p4349_p12, %p4346_p11 }
  0x34   : > { %4354 = shalt.err (!%p4351_p13)
}
  0x35   : > { %s4355_s29 = scalar_lea.vmem %s4692_s10, 147456  ;;  %p4363_p7 = scmp.lt.s32.totalorder %s4692_s10, %s4692_s10 }
  0x36   : > { %p4356_p0 = scmp.ne.s32.totalorder %s4692_s10, %s4355_s29  ;;  %p4364_p9 = scmp.lt.s32.totalorder %s4355_s29, %s4355_s29 }
  0x38   : > { %p4358_p2 = pnand %p4356_p0, %p4704_p8  ;;  %p4365_p4 = por %p4364_p9, %p4363_p7 }
  0x3a   : > { %p4359_p5 = pneg %p4358_p2 }
  0x3c   : > { %p4366_p10 = pnand %p4365_p4, %p4359_p5 }
  0x3e   : > { %4369 = shalt.err (!%p4366_p10)
}
  0x3f   : > { %4167 = dma.hbm_to_vmem [thread:$0]  (!%p4688_p6), %s5336_s3, 147456, %s4692_s10, [#allocation9], %s5341_s23, %s5341_s23, %s5342_s28  }
  0x40   : > { %s4370_s15 = scalar_lea.hbm %s5338_s5, 3072 }
  0x41   : > { %p4371_p11 = scmp.ne.s32.totalorder %s5338_s5, %s4370_s15  ;;  %p4377_p0 = scmp.lt.u32.totalorder %s4370_s15, %s5338_s5 }
  0x43   : > { %p4373_p12 = pnand %p4371_p11, %p4704_p8 }
  0x45   : > { %p4374_p13 = pneg %p4373_p12 }
  0x47   : > { %p4379_p2 = pnand %p4377_p0, %p4374_p13 }
  0x49   : > { %4382 = shalt.err (!%p4379_p2)
}
  0x4a   : > { %s4383_s10 = scalar_lea.vmem %s4694_s13, 3072  ;;  %p4391_p4 = scmp.lt.s32.totalorder %s4694_s13, %s4694_s13 }
  0x4b   : > { %p4384_p5 = scmp.ne.s32.totalorder %s4694_s13, %s4383_s10  ;;  %p4392_p10 = scmp.lt.s32.totalorder %s4383_s10, %s4383_s10 }
  0x4d   : > { %p4386_p7 = pnand %p4384_p5, %p4704_p8  ;;  %p4393_p11 = por %p4392_p10, %p4391_p4 }
  0x4f   : > { %p4387_p9 = pneg %p4386_p7 }
  0x51   : > { %p4394_p12 = pnand %p4393_p11, %p4387_p9 }
  0x53   : > { %4397 = shalt.err (!%p4394_p12)
}
  0x54   : > { %s4597_s21 = smov 128   ;;  %s4598_s29 = smov 8  }
  0x55   : > { %4173 = dma.hbm_to_vmem [thread:$0]  (!%p4688_p6), %s5338_s5, 3072, %s4694_s13, [#allocation12], %s4597_s21, %s4597_s21, %s4598_s29  }
  0x56   : > { %s4599_s12 = smov [#allocation7]   ;;  %s4600_s15 = smov [#allocation10]  }
  0x57   : > { %s235_s14 = sshll.u32 %s4599_s12, 4  ;;  %s258_s16 = sshll.u32 %s4600_s15, 4  ;;  %s236_s14 = int_to_ptr.vmem [resolvable:$true] %s235_s14  ;;  %s259_s16 = int_to_ptr.vmem [resolvable:$true] %s258_s16 }
  0x58   : > { %s4398_s20 = scalar_lea.hbm %s5335_s2, 32 }
  0x59   : > { %p4399_p13 = scmp.ne.s32.totalorder %s5335_s2, %s4398_s20  ;;  %p4405_p5 = scmp.lt.u32.totalorder %s4398_s20, %s5335_s2 }
  0x5b   : > { %p4401_p0 = pnand %p4399_p13, %p4704_p8 }
  0x5d   : > { %p4402_p2 = pneg %p4401_p0 }
  0x5f   : > { %p4407_p7 = pnand %p4405_p5, %p4402_p2 }
  0x61   : > { %4410 = shalt.err (!%p4407_p7)
}
  0x62   : > { %s4411_s13 = scalar_lea.vmem %s236_s14, 32  ;;  %p4419_p11 = scmp.lt.s32.totalorder %s236_s14, %s236_s14 }
  0x63   : > { %p4412_p9 = scmp.ne.s32.totalorder %s236_s14, %s4411_s13  ;;  %p4420_p12 = scmp.lt.s32.totalorder %s4411_s13, %s4411_s13 }
  0x65   : > { %p4414_p4 = pnand %p4412_p9, %p4704_p8  ;;  %p4421_p1 = por %p4420_p12, %p4419_p11 }
  0x67   : > { %p4415_p10 = pneg %p4414_p4 }
  0x69   : > { %p4422_p3 = pnand %p4421_p1, %p4415_p10 }
  0x6b   : > { %4425 = shalt.err (!%p4422_p3)
}
  0x6c   : > { %4164 = dma.hbm_to_vmem [thread:$0]  (!%p4688_p6), %s5335_s2, 32, %s236_s14, [#allocation6]  }
  0x6d   : > { %s4426_s29 = scalar_lea.hbm %s5337_s4, 256 }
  0x6e   : > { %p4427_p13 = scmp.ne.s32.totalorder %s5337_s4, %s4426_s29  ;;  %p4433_p3 = scmp.lt.u32.totalorder %s4426_s29, %s5337_s4 }
  0x70   : > { %p4429_p0 = pnand %p4427_p13, %p4704_p8 }
  0x72   : > { %p4430_p1 = pneg %p4429_p0 }
  0x74   : > { %p4435_p2 = pnand %p4433_p3, %p4430_p1 }
  0x76   : > { %4438 = shalt.err (!%p4435_p2)
}
  0x77   : > { %s4439_s17 = scalar_lea.vmem %s259_s16, 256  ;;  %p4447_p4 = scmp.lt.s32.totalorder %s259_s16, %s259_s16 }
  0x78   : > { %p4440_p5 = scmp.ne.s32.totalorder %s259_s16, %s4439_s17  ;;  %p4448_p10 = scmp.lt.s32.totalorder %s4439_s17, %s4439_s17 }
  0x7a   : > { %p4442_p7 = pnand %p4440_p5, %p4704_p8  ;;  %p4449_p11 = por %p4448_p10, %p4447_p4 }
  0x7c   : > { %p4443_p9 = pneg %p4442_p7 }
  0x7e   : > { %p4450_p12 = pnand %p4449_p11, %p4443_p9 }
  0x80   : > { %4453 = shalt.err (!%p4450_p12)
}
  0x81   : > { %s4601_s14 = smov 32   ;;  %s4602_s18 = smov 2  }
  0x82   : > { %4170 = dma.hbm_to_vmem [thread:$0]  (!%p4688_p6), %s5337_s4, 256, %s259_s16, [#allocation9], %s4601_s14, %s4601_s14, %s4602_s18  }
  0x83   : > { %s4603_s13 = smov [#allocation13]   ;;  %s4454_s28 = scalar_lea.hbm %s5339_s6, 16 }
  0x84   : > { %s285_s23 = sshll.u32 %s4603_s13, 4  ;;  %p4455_p13 = scmp.ne.s32.totalorder %s5339_s6, %s4454_s28  ;;  %s286_s23 = int_to_ptr.vmem [resolvable:$true] %s285_s23 }
  0x85   : > { %p4461_p3 = scmp.lt.u32.totalorder %s4454_s28, %s5339_s6 }
  0x86   : > { %p4457_p0 = pnand %p4455_p13, %p4704_p8 }
  0x88   : > { %p4458_p1 = pneg %p4457_p0 }
  0x8a   : > { %p4463_p2 = pnand %p4461_p3, %p4458_p1 }
  0x8c   : > { %4466 = shalt.err (!%p4463_p2)
}
  0x8d   : > { %s4467_s16 = scalar_lea.vmem %s286_s23, 16  ;;  %s4474_s15 = scalar_lea.vmem %s286_s23, 32 }
  0x8e   : > { %p4468_p5 = scmp.ne.s32.totalorder %s286_s23, %s4467_s16  ;;  %p4475_p4 = scmp.lt.s32.totalorder %s286_s23, %s286_s23 }
  0x8f   : > { %p4476_p10 = scmp.lt.s32.totalorder %s4474_s15, %s4467_s16 }
  0x90   : > { %p4470_p7 = pnand %p4468_p5, %p4704_p8 }
  0x91   : > { %p4477_p11 = por %p4476_p10, %p4475_p4 }
  0x92   : > { %p4471_p9 = pneg %p4470_p7 }
  0x94   : > { %p4478_p12 = pnand %p4477_p11, %p4471_p9 }
  0x96   : > { %4481 = shalt.err (!%p4478_p12)
}
  0x97   : > { %4176 = dma.hbm_to_vmem [thread:$0]  (!%p4688_p6), %s5339_s6, 16, %s286_s23, [#allocation12]  }
  0x98   : > { %s3185_s19 = sadd.s32 4294967294, %s4590_s27   ;;  %s4833_s11 = sadd.s32 1, %s4590_s27  }
  0x99   : > { %s30_s18 = ssub.s32 %s4590_s27, %s4833_s11  ;;  %s33_s20 = sadd.s32 1, %s4586_s26 }
  0x9a   : > { %p31_p8 = scmp.eq.s32.totalorder %s30_s18, 0  ;;  %p40_p13 = scmp.ne.s32.totalorder %s4586_s26, %s4582_s25 }
  0x9b   : > { %p41_p0 = scmp.eq.s32.totalorder %s4590_s27, 0  ;;  %p46_p1 = scmp.ne.s32.totalorder %s4582_s25, %s4578_s24 }
  0x9c   : > { %s4844_s10 = scalar_select %p31_p8, %s4586_s26, %s33_s20  }
  0x9d   : > { %p4846_p3 = por %p41_p0, %p40_p13  ;;  %p5352_p2 = scmp.eq.s32.totalorder %s4672_s30, 0 }
  0x9e   : > { %p196_p5 = scmp.eq.s32.totalorder %s4672_s30, 1  ;;  %p202_p7 = scmp.eq.s32.totalorder %s3185_s19, 1 }
  0x9f   : > { %p4852_p6 = por %p5352_p2, %p46_p1  ;;  %p4191_p9 = scmp.lt.s32.totalorder %s4590_s27, 2 }
  0xa0   : > { %s296_s21 = sand.u32 1, %s4586_s26   ;;  %p4859_p4 = por %p196_p5, %p40_p13 }
  0xa1   : > { %p4863_p10 = por %p202_p7, %p46_p1  ;;  %s3194_s29 = sshll.u32 %s296_s21, 5 }
  0xa2   : > { %s5354_s1 = scalar_select %p4859_p4, 1, 0 }
  0xa3   : > { %s5355_s28 = scalar_select %p4863_p10, 1, 0 }
  0xa4   : > { %s3252_s22 = sshll.u32 %s4590_s27, 9  ;;  %s300_s15 = scalar_lea.vmem [#allocation2], %s3194_s29 }
  0xa5   : > { %s4871_s16 = scalar_lea.hbm %s5333_s0, %s3252_s22  ;;  %s307_s17 = sshll.u32 %s300_s15, 4  ;;  %s4873_s17 = int_to_ptr.vmem [resolvable:$true] %s307_s17 }
  0xa6   : > { %p4877_p11 = pnand %p4191_p9, %p4846_p3  ;;  %s4881_s19 = scalar_lea.sflag [#allocation3], %s296_s21 }
  0xa7   : > { %s4482_s18 = scalar_lea.hbm %s4871_s16, 512  ;;  %s4487_s13 = scalar_lea.hbm %s5333_s0, 1024 }
  0xa8   : > { %p4483_p12 = scmp.ne.s32.totalorder %s4871_s16, %s4482_s18  ;;  %p4484_p8 = pneg %p4877_p11 }
  0xa9   : > { %p4488_p1 = scmp.lt.u32.totalorder %s4871_s16, %s5333_s0  ;;  %p4489_p3 = scmp.lt.u32.totalorder %s4487_s13, %s4482_s18 }
  0xaa   : > { %p4485_p13 = pnand %p4484_p8, %p4483_p12  ;;  %p4491_p5 = scmp.lt.u32.totalorder %s4482_s18, %s4871_s16 }
  0xab   : > { %p4490_p2 = por %p4489_p3, %p4488_p1 }
  0xac   : > { %p4486_p0 = pneg %p4485_p13 }
  0xad   : > { %p4492_p7 = por %p4491_p5, %p4490_p2 }
  0xaf   : > { %p4493_p9 = pnand %p4492_p7, %p4486_p0 }
  0xb1   : > { %4496 = shalt.err (!%p4493_p9)
}
  0xb2   : > { %s4497_s21 = scalar_lea.vmem %s4873_s17, 512  ;;  %s4604_s12 = smov [#allocation2]  }
  0xb3   : > { %p4498_p12 = scmp.ne.s32.totalorder %s4873_s17, %s4497_s21  ;;  %s4502_s15 = sshll.u32 %s4604_s12, 4  ;;  %s4503_s15 = int_to_ptr.vmem [resolvable:$false] %s4502_s15 }
  0xb4   : > { %s4504_s20 = scalar_lea.vmem %s4503_s15, 1024  ;;  %p4505_p4 = scmp.lt.s32.totalorder %s4873_s17, %s4503_s15 }
  0xb5   : > { %p4500_p13 = pnand %p4498_p12, %p4484_p8  ;;  %p4506_p1 = scmp.lt.s32.totalorder %s4504_s20, %s4497_s21 }
  0xb7   : > { %p4501_p10 = pneg %p4500_p13  ;;  %p4507_p3 = por %p4506_p1, %p4505_p4 }
  0xb9   : > { %p4508_p2 = pnand %p4507_p3, %p4501_p10 }
  0xbb   : > { %4511 = shalt.err (!%p4508_p2)
}
  0xbc   : > { %s5357_s18 = smov 16   ;;  %s5358_s29 = smov 256  }
  0xbd   : > { %4180 = dma.hbm_to_vmem [thread:$0]  (!%p4877_p11), %s4871_s16, 512, %s4873_s17, %s4881_s19, %s5358_s29, %s5358_s29, %s5357_s18  }
  0xbe   : > { %p5359_p8 = scmp.ne.s32.totalorder %s5347_s8, 0 }
  0xbf   : > { %s4915_s13 = sand.u32 (!%p5359_p8), 1, %s4582_s25  }
  0xc0   : > { %319 = sbr.rel (%p5359_p8) target bundleno = 3020 (0xbcc), region = 48  ;;  %s3198_s22 = sshll.u32 (!%p5359_p8), %s4915_s13, 5 }
  0xc1   : > { %s322_s9 = scalar_lea.sflag (!%p5359_p8), [#allocation3], %s4915_s13  ;;  %s4921_s14 = scalar_lea.vmem (!%p5359_p8), [#allocation2], %s3198_s22 }
  0xc7   : > { %4557 = dma.done.wait (%p4852_p6), %s322_s9, 512  }
  0xc8   : > { %4559 = vsyncadd (%p4852_p6), %s322_s9, 4294966784  ;;  %p5360_p4 = scmp.eq.s32.totalorder %s4672_s30, 0 }
  0xca   : > { %4561 = dma.done.wait (%p5360_p4), [#allocation6], 3104   ;;  %p5361_p10 = pmov %p5360_p4 }
  0xcb   : > { %p5362_p11 = pmov %p5360_p4 }
  0xcc   : > { %4563 = vsyncadd (%p5361_p10), [#allocation6], 4294964192 }
  0xcd   : > { %4565 = dma.done.wait (%p5362_p11), [#allocation9], 147712   ;;  %p5363_p0 = pmov %p5360_p4 }
  0xcf   : > { %4567 = vsyncadd (%p5363_p0), [#allocation9], 4294819584  ;;  %p5364_p5 = pmov %p5363_p0 }
  0xd0   : > { %p5365_p7 = pmov %p5363_p0 }
  0xd1   : > { %4569 = dma.done.wait (%p5364_p5), [#allocation12], 3088  }
  0xd2   : > { %4571 = vsyncadd (%p5365_p7), [#allocation12], 4294964208  ;;  %v4605_v0 = vmov 0.0   ;;  %v385_v1 = vld [vmem:[#allocation5 + $0x8] sm:$0xff]  ;;  %v387_v2 = vld [vmem:[#allocation5 + $0x18] sm:$0xff]  ;;  %vm420_vm0 = vcmask 785408  }
  0xd3   : > { %491 = vmatprep.mubr.f32.mxu0 %v4605_v0  ;;  %v384_v3 = vld [vmem:[#allocation5] sm:$0xff]  ;;  %v3254_v4 = vpack.c.bf16 %v387_v2, %v385_v1  ;;  %v386_v5 = vld [vmem:[#allocation5 + $0x10] sm:$0xff]  ;;  %v389_v6 = vld [vmem:[#allocation5 + $0x28] sm:$0xff]  ;;  %vm568_vm1 = vcmask 523264   ;;  %s4607_s8 = smov 96   ;;  %s379_s23 = scalar_lea.vmem [#allocation14], %s3198_s22 }
  0xd4   : > { %v391_v7 = vld [vmem:[#allocation5 + $0x38] sm:$0xff]  ;;  %v3256_v8 = vpack.c.bf16 %v386_v5, %v384_v3  ;;  %v388_v10 = vld [vmem:[#allocation5 + $0x20] sm:$0xff]  ;;  %v390_v11 = vld [vmem:[#allocation5 + $0x30] sm:$0xff]  ;;  %s3055_s16 = sshll.u32 %s379_s23, 4  ;;  %s3253_s17 = sshll.u32 %s4672_s30, 9  ;;  %s5281_s16 = int_to_ptr.vmem [resolvable:$true] %s3055_s16 }
  0xd5   : > { %v3258_v9 = vpack.c.bf16 %v391_v7, %v389_v6  ;;  %v393_v12 = vld [vmem:[#allocation5 + $0x48] sm:$0xff]  ;;  %3255 = vmatprep.subr.bf16.mxu0 %v3254_v4  ;;  %v395_v13 = vld [vmem:[#allocation5 + $0x58] sm:$0xff]  ;;  %v3260_v14 = vpack.c.bf16 %v390_v11, %v388_v10  ;;  %v392_v16 = vld [vmem:[#allocation5 + $0x40] sm:$0xff]  ;;  %s5287_s12 = scalar_lea.hbm %s5340_s7, %s3253_s17  ;;  %s3042_s30 = scalar_lea.sflag [#allocation4], %s4915_s13 }
  0xd6   : > { %3257 = vmatpush1.bf16.msra.mxu0 %v3256_v8  ;;  %v3262_v15 = vpack.c.bf16 %v395_v13, %v393_v12  ;;  %v394_v17 = vld [vmem:[#allocation5 + $0x50] sm:$0xff]  ;;  %v397_v18 = vld [vmem:[#allocation5 + $0x68] sm:$0xff]  ;;  %v399_v19 = vld [vmem:[#allocation5 + $0x78] sm:$0xff]  ;;  %s4512_s15 = scalar_lea.vmem %s5281_s16, 512  ;;  %p5366_p9 = scmp.ne.s32.totalorder %s5354_s1, 0 }
  0xd7   : > { %3259 = vmatprep.subr.bf16.mxu0 %v3258_v9  ;;  %v396_v20 = vld [vmem:[#allocation5 + $0x60] sm:$0xff]  ;;  %v398_v21 = vld [vmem:[#allocation5 + $0x70] sm:$0xff]  ;;  %v3264_v22 = vpack.c.bf16 %v394_v17, %v392_v16  ;;  %v401_v23 = vld [vmem:[#allocation5 + $0x88] sm:$0xff]  ;;  %v3266_v26 = vpack.c.bf16 %v399_v19, %v397_v18  ;;  %p4513_p6 = scmp.ne.s32.totalorder %s5281_s16, %s4512_s15  ;;  %s4608_s20 = smov [#allocation14]  }
  0xd8   : > { %v403_v24 = vld [vmem:[#allocation5 + $0x98] sm:$0xff]  ;;  %v509_v25 = vld [vmem:[#allocation8 + $0x188] sm:$0xff]  ;;  %v508_v28 = vld [vmem:[#allocation8 + $0x180] sm:$0xff]  ;;  %v3268_v39 = vpack.c.bf16 %v398_v21, %v396_v20  ;;  %s4516_s18 = sshll.u32 %s4608_s20, 4  ;;  %s4517_s18 = int_to_ptr.vmem [resolvable:$false] %s4516_s18 }
  0xd9   : > { %v511_v27 = vld [vmem:[#allocation8 + $0x198] sm:$0xff]  ;;  %v510_v29 = vld [vmem:[#allocation8 + $0x190] sm:$0xff]  ;;  %v513_v32 = vld [vmem:[#allocation8 + $0x1a8] sm:$0xff]  ;;  %v3270_v40 = vpack.c.bf16 %v403_v24, %v401_v23  ;;  %p4514_p12 = pnand %p4513_p6, %p5366_p9  ;;  %s4518_s29 = scalar_lea.vmem %s4517_s18, 1024 }
  0xda   : > { %3261 = vmatpush1.bf16.msra.mxu0 %v3260_v14  ;;  %v3278_v30 = vpack.c.bf16 %v511_v27, %v509_v25  ;;  %v3280_v31 = vpack.c.bf16 %v510_v29, %v508_v28  ;;  %v515_v33 = vld [vmem:[#allocation8 + $0x1b8] sm:$0xff]  ;;  %v512_v34 = vld [vmem:[#allocation8 + $0x1a0] sm:$0xff]  ;;  %v514_v36 = vld [vmem:[#allocation8 + $0x1b0] sm:$0xff]  ;;  %p4519_p1 = scmp.lt.s32.totalorder %s5281_s16, %s4517_s18  ;;  %p4520_p3 = scmp.lt.s32.totalorder %s4518_s29, %s4512_s15 }
  0xdb   : > { %3263 = vmatprep.subr.bf16.mxu0 %v3262_v15  ;;  %v3282_v35 = vpack.c.bf16 %v515_v33, %v513_v32  ;;  %v517_v37 = vld [vmem:[#allocation8 + $0x1c8] sm:$0xff]  ;;  %v519_v38 = vld [vmem:[#allocation8 + $0x1d8] sm:$0xff]  ;;  %v3284_v44 = vpack.c.bf16 %v514_v36, %v512_v34  ;;  %v516_v47 = vld [vmem:[#allocation8 + $0x1c0] sm:$0xff]  ;;  %p4515_p13 = pneg %p4514_p12 }
  0xdc   : > { %3279 = vmatprep.subr.bf16.mxu1 %v3278_v30  ;;  %v400_v41 = vld [vmem:[#allocation5 + $0x80] sm:$0xff]  ;;  %v402_v42 = vld [vmem:[#allocation5 + $0x90] sm:$0xff]  ;;  %v405_v43 = vld [vmem:[#allocation5 + $0xa8] sm:$0xff]  ;;  %v3286_v46 = vpack.c.bf16 %v519_v38, %v517_v37  ;;  %p4521_p2 = por %p4520_p3, %p4519_p1 }
  0xdd   : > { %3281 = vmatpush1.bf16.msra.mxu1 %v3280_v31  ;;  %v407_v45 = vld [vmem:[#allocation5 + $0xb8] sm:$0xff]  ;;  %v521_v49 = vld [vmem:[#allocation8 + $0x1e8] sm:$0xff]  ;;  %v3272_v51 = vpack.c.bf16 %v402_v42, %v400_v41  ;;  %v404_v53 = vld [vmem:[#allocation5 + $0xa0] sm:$0xff] }
  0xde   : > { %3265 = vmatpush1.bf16.msra.mxu0 %v3264_v22  ;;  %3283 = vmatprep.subr.bf16.mxu1 %v3282_v35  ;;  %v518_v48 = vld [vmem:[#allocation8 + $0x1d0] sm:$0xff]  ;;  %v523_v50 = vld [vmem:[#allocation8 + $0x1f8] sm:$0xff]  ;;  %v3274_v52 = vpack.c.bf16 %v407_v45, %v405_v43  ;;  %v520_v57 = vld [vmem:[#allocation8 + $0x1e0] sm:$0xff]  ;;  %p4522_p8 = pnand %p4521_p2, %p4515_p13 }
  0xdf   : > { %3267 = vmatprep.subr.bf16.mxu0 %v3266_v26  ;;  %v406_v54 = vld [vmem:[#allocation5 + $0xb0] sm:$0xff]  ;;  %v3288_v55 = vpack.c.bf16 %v518_v48, %v516_v47  ;;  %v3290_v56 = vpack.c.bf16 %v523_v50, %v521_v49  ;;  %v527_v60 = vld [vmem:[#allocation8 + $0x218] sm:$0xff]  ;;  %v524_v1 = vld [vmem:[#allocation8 + $0x200] sm:$0xff] }
  0xe0   : > { %v522_v58 = vld [vmem:[#allocation8 + $0x1f0] sm:$0xff]  ;;  %v525_v59 = vld [vmem:[#allocation8 + $0x208] sm:$0xff]  ;;  %v3276_v61 = vpack.c.bf16 %v406_v54, %v404_v53  ;;  %v531_v4 = vld [vmem:[#allocation8 + $0x238] sm:$0xff] }
  0xe1   : > { %3285 = vmatpush1.bf16.msra.mxu1 %v3284_v44  ;;  %v3292_v62 = vpack.c.bf16 %v522_v58, %v520_v57  ;;  %v3294_v63 = vpack.c.bf16 %v527_v60, %v525_v59  ;;  %v526_v2 = vld [vmem:[#allocation8 + $0x210] sm:$0xff]  ;;  %v529_v3 = vld [vmem:[#allocation8 + $0x228] sm:$0xff]  ;;  %v380_v5 = vld [vmem:[%s4921_s14] sm:$0xff] }
  0xe2   : > { %3269 = vmatpush1.bf16.msra.mxu0 %v3268_v39  ;;  %3287 = vmatprep.subr.bf16.mxu1 %v3286_v46  ;;  %v3296_v6 = vpack.c.bf16 %v526_v2, %v524_v1  ;;  %v3298_v7 = vpack.c.bf16 %v531_v4, %v529_v3  ;;  %v528_v8 = vld [vmem:[#allocation8 + $0x220] sm:$0xff]  ;;  %v530_v9 = vld [vmem:[#allocation8 + $0x230] sm:$0xff]  ;;  %v533_v10 = vld [vmem:[#allocation8 + $0x248] sm:$0xff] }
  0xe3   : > { %3271 = vmatprep.subr.bf16.mxu0 %v3270_v40  ;;  %v535_v11 = vld [vmem:[#allocation8 + $0x258] sm:$0xff]  ;;  %v382_v12 = vld [vmem:[%s4921_s14 + $0x10] sm:$0xff]  ;;  %v3300_v13 = vpack.c.bf16 %v530_v9, %v528_v8  ;;  %v532_v15 = vld [vmem:[#allocation8 + $0x240] sm:$0xff]  ;;  %v410_v8 = vlaneseq }
  0xe4   : > { %v3302_v14 = vpack.c.bf16 %v535_v11, %v533_v10  ;;  %v534_v16 = vld [vmem:[#allocation8 + $0x250] sm:$0xff]  ;;  %v537_v17 = vld [vmem:[#allocation8 + $0x268] sm:$0xff]  ;;  %v539_v18 = vld [vmem:[#allocation8 + $0x278] sm:$0xff] }
  0xe5   : > { %3289 = vmatpush1.bf16.msra.mxu1 %v3288_v55  ;;  %v3304_v19 = vpack.c.bf16 %v534_v16, %v532_v15  ;;  %v3306_v20 = vpack.c.bf16 %v539_v18, %v537_v17  ;;  %v536_v21 = vld [vmem:[#allocation8 + $0x260] sm:$0xff]  ;;  %v538_v22 = vld [vmem:[#allocation8 + $0x270] sm:$0xff]  ;;  %v541_v23 = vld [vmem:[#allocation8 + $0x288] sm:$0xff]  ;;  %v4945_v15 = vshrl.u32 %v410_v8, 7 }
  0xe6   : > { %3273 = vmatpush1.bf16.msra.mxu0 %v3272_v51  ;;  %3291 = vmatprep.subr.bf16.mxu1 %v3290_v56  ;;  %v543_v24 = vld [vmem:[#allocation8 + $0x298] sm:$0xff]  ;;  %v3308_v25 = vpack.c.bf16 %v538_v22, %v536_v21  ;;  %v540_v27 = vld [vmem:[#allocation8 + $0x280] sm:$0xff]  ;;  %v542_v28 = vld [vmem:[#allocation8 + $0x290] sm:$0xff] }
  0xe7   : > { %3275 = vmatprep.subr.bf16.mxu0 %v3274_v52  ;;  %v3310_v26 = vpack.c.bf16 %v543_v24, %v541_v23  ;;  %v545_v29 = vld [vmem:[#allocation8 + $0x2a8] sm:$0xff]  ;;  %v547_v30 = vld [vmem:[#allocation8 + $0x2b8] sm:$0xff]  ;;  %v3312_v31 = vpack.c.bf16 %v542_v28, %v540_v27  ;;  %v544_v33 = vld [vmem:[#allocation8 + $0x2a0] sm:$0xff]  ;;  %v4948_v22 = vsub.s32 1, %v4945_v15  ;;  %v4951_v27 = vsub.s32 0, %v4945_v15 }
  0xe8   : > { %v3314_v32 = vpack.c.bf16 %v547_v30, %v545_v29  ;;  %v546_v34 = vld [vmem:[#allocation8 + $0x2b0] sm:$0xff]  ;;  %v549_v35 = vld [vmem:[#allocation8 + $0x2c8] sm:$0xff]  ;;  %v551_v36 = vld [vmem:[#allocation8 + $0x2d8] sm:$0xff]  ;;  %vm755_vm2 = vcmp.lt.s32.totalorder %v4945_v15, 1  ;;  %vm749_vm3 = vcmp.ge.s32.totalorder %v4945_v15, 1  ;;  %vm770_vm4 = vcmp.lt.s32.totalorder %v4945_v15, 7 }
  0xe9   : > { %3293 = vmatpush1.bf16.msra.mxu1 %v3292_v62  ;;  %v3316_v37 = vpack.c.bf16 %v546_v34, %v544_v33  ;;  %v3318_v38 = vpack.c.bf16 %v551_v36, %v549_v35  ;;  %v548_v39 = vld [vmem:[#allocation8 + $0x2c0] sm:$0xff]  ;;  %v550_v40 = vld [vmem:[#allocation8 + $0x2d0] sm:$0xff]  ;;  %v553_v42 = vld [vmem:[#allocation8 + $0x2e8] sm:$0xff]  ;;  %vm1210_vm6 = vcmp.lt.s32.totalorder %v4945_v15, 2  ;;  %vm1204_vm7 = vcmp.ge.s32.totalorder %v4945_v15, 2 }
  0xea   : > { %3277 = vmatpush1.bf16.msra.mxu0 %v3276_v61  ;;  %3295 = vmatprep.subr.bf16.mxu1 %v3294_v63  ;;  %v3320_v41 = vpack.c.bf16 %v550_v40, %v548_v39  ;;  %v555_v43 = vld [vmem:[#allocation8 + $0x2f8] sm:$0xff]  ;;  %v552_v45 = vld [vmem:[#allocation8 + $0x2e0] sm:$0xff]  ;;  %v554_v46 = vld [vmem:[#allocation8 + $0x2f0] sm:$0xff]  ;;  %vm1225_vm8 = vcmp.lt.s32.totalorder %v4945_v15, 6  ;;  %vm1665_vm10 = vcmp.lt.s32.totalorder %v4945_v15, 4  ;;  %vm1659_vm11 = vcmp.ge.s32.totalorder %v4945_v15, 4 }
  0xeb   : > { %v3322_v44 = vpack.c.bf16 %v555_v43, %v553_v42  ;;  %v3324_v47 = vpack.c.bf16 %v554_v46, %v552_v45  ;;  %v653_v48 = vld [vmem:[#allocation8 + $0x8] sm:$0xff]  ;;  %v655_v49 = vld [vmem:[#allocation8 + $0x18] sm:$0xff]  ;;  %v962_v53 = vld [vmem:[#allocation8 + $0x600] sm:$0xff] }
  0xec   : > { %v3326_v50 = vpack.c.bf16 %v655_v49, %v653_v48  ;;  %v963_v51 = vld [vmem:[#allocation8 + $0x608] sm:$0xff]  ;;  %v965_v52 = vld [vmem:[#allocation8 + $0x618] sm:$0xff]  ;;  %v964_v55 = vld [vmem:[#allocation8 + $0x610] sm:$0xff] }
  0xed   : > { %3206 = vmatmul.mubr.msk.f32.vlgmr.msra.gmra.mrb[0].mxu0 %vm420_vm0, %v380_v5  ;;  %3297 = vmatpush1.bf16.msra.mxu1 %v3296_v6  ;;  %v3422_v54 = vpack.c.bf16 %v965_v52, %v963_v51  ;;  %v967_v56 = vld [vmem:[#allocation8 + $0x628] sm:$0xff]  ;;  %v969_v57 = vld [vmem:[#allocation8 + $0x638] sm:$0xff]  ;;  %v3424_v58 = vpack.c.bf16 %v964_v55, %v962_v53  ;;  %v966_v60 = vld [vmem:[#allocation8 + $0x620] sm:$0xff] }
  0xee   : > { %497 = vmatprep.mubr.f32.mxu0 %v4605_v0  ;;  %3299 = vmatprep.subr.bf16.mxu1 %v3298_v7  ;;  %v3426_v59 = vpack.c.bf16 %v969_v57, %v967_v56  ;;  %v968_v61 = vld [vmem:[#allocation8 + $0x630] sm:$0xff]  ;;  %v971_v62 = vld [vmem:[#allocation8 + $0x648] sm:$0xff]  ;;  %v973_v63 = vld [vmem:[#allocation8 + $0x658] sm:$0xff] }
  0xef   : > { %3423 = vmatprep.subr.bf16.mxu0 %v3422_v54  ;;  %v3428_v1 = vpack.c.bf16 %v968_v61, %v966_v60  ;;  %v3430_v2 = vpack.c.bf16 %v973_v63, %v971_v62  ;;  %v970_v3 = vld [vmem:[#allocation8 + $0x640] sm:$0xff]  ;;  %v972_v4 = vld [vmem:[#allocation8 + $0x650] sm:$0xff]  ;;  %v975_v5 = vld [vmem:[#allocation8 + $0x668] sm:$0xff] }
  0xf0   : > { %3425 = vmatpush1.bf16.msra.mxu0 %v3424_v58  ;;  %v977_v6 = vld [vmem:[#allocation8 + $0x678] sm:$0xff]  ;;  %v3432_v7 = vpack.c.bf16 %v972_v4, %v970_v3  ;;  %v974_v10 = vld [vmem:[#allocation8 + $0x660] sm:$0xff]  ;;  %v976_v11 = vld [vmem:[#allocation8 + $0x670] sm:$0xff] }
  0xf1   : > { %3207 = vmatmul.mubr.msk.f32.gmra.mrb[2].mxu0 %vm420_vm0, %v382_v12  ;;  %3301 = vmatpush1.bf16.msra.mxu1 %v3300_v13  ;;  %v3434_v9 = vpack.c.bf16 %v977_v6, %v975_v5  ;;  %v979_v12 = vld [vmem:[#allocation8 + $0x688] sm:$0xff]  ;;  %v981_v13 = vld [vmem:[#allocation8 + $0x698] sm:$0xff]  ;;  %v978_v17 = vld [vmem:[#allocation8 + $0x680] sm:$0xff] }
  0xf2   : > { %3303 = vmatprep.subr.bf16.mxu1 %v3302_v14  ;;  %3427 = vmatprep.subr.bf16.mxu0 %v3426_v59  ;;  %v3436_v14 = vpack.c.bf16 %v976_v11, %v974_v10  ;;  %v3438_v16 = vpack.c.bf16 %v981_v13, %v979_v12  ;;  %v980_v18 = vld [vmem:[#allocation8 + $0x690] sm:$0xff]  ;;  %v982_v24 = vld [vmem:[#allocation8 + $0x6a0] sm:$0xff]  ;;  %v987_v28 = vld [vmem:[#allocation8 + $0x6c8] sm:$0xff] }
  0xf3   : > { %v3440_v21 = vpack.c.bf16 %v980_v18, %v978_v17  ;;  %v989_v29 = vld [vmem:[#allocation8 + $0x6d8] sm:$0xff]  ;;  %v986_v34 = vld [vmem:[#allocation8 + $0x6c0] sm:$0xff]  ;;  %v988_v35 = vld [vmem:[#allocation8 + $0x6d0] sm:$0xff] }
  0xf4   : > { %3429 = vmatpush1.bf16.msra.mxu0 %v3428_v1  ;;  %v3446_v33 = vpack.c.bf16 %v989_v29, %v987_v28  ;;  %v993_v39 = vld [vmem:[#allocation8 + $0x6f8] sm:$0xff]  ;;  %v658_v51 = vld [vmem:[#allocation8 + $0x30] sm:$0xff]  ;;  %v661_v52 = vld [vmem:[#allocation8 + $0x48] sm:$0xff] }
  0xf5   : > { %3305 = vmatpush1.bf16.msra.mxu1 %v3304_v19  ;;  %3431 = vmatprep.subr.bf16.mxu0 %v3430_v2  ;;  %v983_v19 = vld [vmem:[#allocation8 + $0x6a8] sm:$0xff]  ;;  %v659_v42 = vld [vmem:[#allocation8 + $0x38] sm:$0xff]  ;;  %v990_v55 = vld [vmem:[#allocation8 + $0x6e0] sm:$0xff] }
  0xf6   : > { %3307 = vmatprep.subr.bf16.mxu1 %v3306_v20  ;;  %v985_v20 = vld [vmem:[#allocation8 + $0x6b8] sm:$0xff]  ;;  %v992_v56 = vld [vmem:[#allocation8 + $0x6f0] sm:$0xff]  ;;  %v660_v62 = vld [vmem:[#allocation8 + $0x40] sm:$0xff] }
  0xf7   : > { %v3442_v23 = vpack.c.bf16 %v985_v20, %v983_v19  ;;  %v663_v54 = vld [vmem:[#allocation8 + $0x58] sm:$0xff]  ;;  %v662_v63 = vld [vmem:[#allocation8 + $0x50] sm:$0xff]  ;;  %v3452_v1 = vpack.c.bf16 %v992_v56, %v990_v55  ;;  %v665_v4 = vld [vmem:[#allocation8 + $0x68] sm:$0xff] }
  0xf8   : > { %3433 = vmatpush1.bf16.msra.mxu0 %v3432_v7  ;;  %v3334_v61 = vpack.c.bf16 %v663_v54, %v661_v52  ;;  %v667_v5 = vld [vmem:[#allocation8 + $0x78] sm:$0xff]  ;;  %v3336_v7 = vpack.c.bf16 %v662_v63, %v660_v62  ;;  %v664_v10 = vld [vmem:[#allocation8 + $0x60] sm:$0xff]  ;;  %v666_v11 = vld [vmem:[#allocation8 + $0x70] sm:$0xff] }
  0xf9   : > { %3309 = vmatpush1.bf16.msra.mxu1 %v3308_v25  ;;  %3435 = vmatprep.subr.bf16.mxu0 %v3434_v9  ;;  %v984_v25 = vld [vmem:[#allocation8 + $0x6b0] sm:$0xff]  ;;  %v3338_v9 = vpack.c.bf16 %v667_v5, %v665_v4  ;;  %v669_v12 = vld [vmem:[#allocation8 + $0x88] sm:$0xff]  ;;  %v671_v13 = vld [vmem:[#allocation8 + $0x98] sm:$0xff] }
  0xfa   : > { %3311 = vmatprep.subr.bf16.mxu1 %v3310_v26  ;;  %v408_v26 = vld [vmem:[#allocation7] sm:$0x3]  ;;  %v3444_v30 = vpack.c.bf16 %v984_v25, %v982_v24  ;;  %v668_v17 = vld [vmem:[#allocation8 + $0x80] sm:$0xff]  ;;  %v670_v18 = vld [vmem:[#allocation8 + $0x90] sm:$0xff] }
  0xfb   : > { %v413_v36 = vrot.slane %v408_v26, %v4951_v27  ;;  %v673_v19 = vld [vmem:[#allocation8 + $0xa8] sm:$0xff]  ;;  %v675_v20 = vld [vmem:[#allocation8 + $0xb8] sm:$0xff]  ;;  %v672_v24 = vld [vmem:[#allocation8 + $0xa0] sm:$0xff] }
  0xfc   : > { %3437 = vmatpush1.bf16.msra.mxu0 %v3436_v14  ;;  %v3340_v14 = vpack.c.bf16 %v666_v11, %v664_v10  ;;  %v674_v25 = vld [vmem:[#allocation8 + $0xb0] sm:$0xff]  ;;  %v679_v28 = vld [vmem:[#allocation8 + $0xd8] sm:$0xff]  ;;  %v696_v4 = vld [vmem:[#allocation8 + $0x160] sm:$0xff] }
  0xfd   : > { %3313 = vmatpush1.bf16.msra.mxu1 %v3312_v31  ;;  %3439 = vmatprep.subr.bf16.mxu0 %v3438_v16  ;;  %v417_v31 = vrot.slane %v408_v26, %v4948_v22  ;;  %v3342_v16 = vpack.c.bf16 %v671_v13, %v669_v12  ;;  %v677_v26 = vld [vmem:[#allocation8 + $0xc8] sm:$0xff]  ;;  %v3348_v29 = vpack.c.bf16 %v674_v25, %v672_v24  ;;  %v690_v52 = vld [vmem:[#allocation8 + $0x130] sm:$0xff]  ;;  %v695_v54 = vld [vmem:[#allocation8 + $0x158] sm:$0xff] }
  0xfe   : > { %3315 = vmatprep.subr.bf16.mxu1 %v3314_v32  ;;  %v652_v32 = vld [vmem:[#allocation8] sm:$0xff]  ;;  %v699_v62 = vld [vmem:[#allocation8 + $0x178] sm:$0xff]  ;;  %v698_v5 = vld [vmem:[#allocation8 + $0x170] sm:$0xff] }
  0xff   : > { %v701_v10 = vld [vmem:[#allocation8 + $0x300] sm:$0xff]  ;;  %v703_v11 = vld [vmem:[#allocation8 + $0x310] sm:$0xff]  ;;  %v706_v13 = vld [vmem:[#allocation8 + $0x328] sm:$0xff] }
 0x100   : > { %3441 = vmatpush1.bf16.msra.mxu0 %v3440_v21  ;;  %v3344_v21 = vpack.c.bf16 %v670_v18, %v668_v17  ;;  %v3376_v17 = vpack.c.bf16 %v703_v11, %v701_v10  ;;  %v712_v24 = vld [vmem:[#allocation8 + $0x358] sm:$0xff]  ;;  %v733_v10 = vld [vmem:[#allocation8 + $0x400] sm:$0xff]  ;;  %v735_v11 = vld [vmem:[#allocation8 + $0x410] sm:$0xff] }
 0x101   : > { %3317 = vmatpush1.bf16.msra.mxu1 %v3316_v37  ;;  %3443 = vmatprep.subr.bf16.mxu0 %v3442_v23  ;;  %v654_v37 = vld [vmem:[#allocation8 + $0x10] sm:$0xff]  ;;  %v3346_v23 = vpack.c.bf16 %v675_v20, %v673_v19  ;;  %v705_v19 = vld [vmem:[#allocation8 + $0x320] sm:$0xff] }
 0x102   : > { %3319 = vmatprep.subr.bf16.mxu1 %v3318_v38  ;;  %v991_v38 = vld [vmem:[#allocation8 + $0x6e8] sm:$0xff]  ;;  %v3328_v46 = vpack.c.bf16 %v654_v37, %v652_v32  ;;  %v678_v32 = vld [vmem:[#allocation8 + $0xd0] sm:$0xff]  ;;  %v680_v37 = vld [vmem:[#allocation8 + $0xe0] sm:$0xff] }
 0x103   : > { %v707_v20 = vld [vmem:[#allocation8 + $0x330] sm:$0xff] }
 0x104   : > { %3445 = vmatpush1.bf16.msra.mxu0 %v3444_v30  ;;  %v3350_v30 = vpack.c.bf16 %v679_v28, %v677_v26  ;;  %v3380_v28 = vpack.c.bf16 %v707_v20, %v705_v19  ;;  %v742_v19 = vld [vmem:[#allocation8 + $0x448] sm:$0xff]  ;;  %v744_v20 = vld [vmem:[#allocation8 + $0x458] sm:$0xff] }
 0x105   : > { %3321 = vmatpush1.bf16.msra.mxu1 %v3320_v41  ;;  %v657_v41 = vld [vmem:[#allocation8 + $0x28] sm:$0xff]  ;;  %3447 = vmatprep.subr.bf16.mxu0 %v3446_v33 }
 0x106   : > { %3323 = vmatprep.subr.bf16.mxu1 %v3322_v44  ;;  %v3448_v44 = vpack.c.bf16 %v988_v35, %v986_v34  ;;  %v3330_v49 = vpack.c.bf16 %v659_v42, %v657_v41  ;;  %v681_v33 = vld [vmem:[#allocation8 + $0xe8] sm:$0xff]  ;;  %v683_v34 = vld [vmem:[#allocation8 + $0xf8] sm:$0xff] }
 0x108   : > { %3449 = vmatpush1.bf16.msra.mxu0 %v3448_v44  ;;  %v686_v44 = vld [vmem:[#allocation8 + $0x110] sm:$0xff] }
 0x109   : > { %3325 = vmatpush1.bf16.msra.mxu1 %v3324_v47  ;;  %v3450_v47 = vpack.c.bf16 %v993_v39, %v991_v38  ;;  %v682_v38 = vld [vmem:[#allocation8 + $0xf0] sm:$0xff]  ;;  %v685_v39 = vld [vmem:[#allocation8 + $0x108] sm:$0xff] }
 0x10a   : > { %3327 = vmatprep.subr.bf16.mxu1 %v3326_v50  ;;  %v656_v50 = vld [vmem:[#allocation8 + $0x20] sm:$0xff]  ;;  %v3356_v41 = vpack.c.bf16 %v682_v38, %v680_v37  ;;  %v715_v38 = vld [vmem:[#allocation8 + $0x370] sm:$0xff] }
 0x10b   : > { %v3332_v59 = vpack.c.bf16 %v658_v51, %v656_v50  ;;  %3451 = vmatprep.subr.bf16.mxu0 %v3450_v47  ;;  %v691_v47 = vld [vmem:[#allocation8 + $0x138] sm:$0xff]  ;;  %v688_v51 = vld [vmem:[#allocation8 + $0x120] sm:$0xff] }
 0x10c   : > { %3453 = vmatpush1.bf16.msra.mxu0 %v3452_v1  ;;  %v3364_v55 = vpack.c.bf16 %v690_v52, %v688_v51  ;;  %v713_v37 = vld [vmem:[#allocation8 + $0x360] sm:$0xff]  ;;  %v723_v52 = vld [vmem:[#allocation8 + $0x3b0] sm:$0xff] }
 0x10d   : > { %v721_v51 = vld [vmem:[#allocation8 + $0x3a0] sm:$0xff] }
 0x1c0   : > { %v493_v40 = vpop.f32.mrb[0].mxu0 }
 0x1c1   : > { %v495_v43 = vpop.f32.mrb[1].mxu0  ;;  %v4957_v48 = vadd.f32 %v493_v40, %v413_v36  ;;  %v687_v40 = vld [vmem:[#allocation8 + $0x118] sm:$0xff] }
 0x1c2   : > { %v4955_v45 = vadd.f32 %v495_v43, %v417_v31  ;;  %v3358_v42 = vpack.c.bf16 %v687_v40, %v685_v39  ;;  %v684_v43 = vld [vmem:[#allocation8 + $0x100] sm:$0xff]  ;;  %v718_v39 = vld [vmem:[#allocation8 + $0x388] sm:$0xff]  ;;  %v720_v40 = vld [vmem:[#allocation8 + $0x398] sm:$0xff] }
 0x1c4   : > { %v499_v53 = vpop.f32.mrb[2].mxu0  ;;  %3208 = vmatprep.mubr.msk.f32.mxu1 %vm568_vm1, %v4955_v45  ;;  %v752_v2 = vrot.slane %v4955_v45, 7 }
 0x1c5   : > { %v501_v57 = vpop.f32.mrb[3].mxu0  ;;  %640 = vmatmul.mubr.f32.vlgmr.msra.gmra.mrb[0].mxu1 %v4957_v48  ;;  %v4964_v60 = vadd.f32 %v499_v53, %v413_v36  ;;  %v3354_v36 = vpack.c.bf16 %v683_v34, %v681_v33  ;;  %v693_v53 = vld [vmem:[#allocation8 + $0x148] sm:$0xff] }
 0x1c6   : > { %v4962_v58 = vadd.f32 %v501_v57, %v417_v31  ;;  %3329 = vmatpush1.bf16.msra.mxu1 %v3328_v46  ;;  %v676_v31 = vld [vmem:[#allocation8 + $0xc0] sm:$0xff]  ;;  %v689_v46 = vld [vmem:[#allocation8 + $0x128] sm:$0xff]  ;;  %v3366_v56 = vpack.c.bf16 %v695_v54, %v693_v53  ;;  %v728_v54 = vld [vmem:[#allocation8 + $0x3d8] sm:$0xff] }
 0x1c7   : > { %3331 = vmatprep.subr.bf16.mxu1 %v3330_v49  ;;  %v3352_v35 = vpack.c.bf16 %v678_v32, %v676_v31  ;;  %v3360_v49 = vpack.c.bf16 %v686_v44, %v684_v43  ;;  %v3362_v50 = vpack.c.bf16 %v691_v47, %v689_v46  ;;  %v692_v57 = vld [vmem:[#allocation8 + $0x140] sm:$0xff]  ;;  %v753_v12 = vrot.slane %v4964_v60, 7  ;;  %v711_v32 = vld [vmem:[#allocation8 + $0x350] sm:$0xff]  ;;  %v714_v34 = vld [vmem:[#allocation8 + $0x368] sm:$0xff] }
 0x1c8   : > { %v754_v3 = vrot.slane %v4962_v58, 7  ;;  %3209 = vmatprep.mubr.msk.f32.mxu1 %vm568_vm1, %v4962_v58  ;;  %v769_v26 = vrot.slane %v4962_v58, 1  ;;  %v709_v31 = vld [vmem:[#allocation8 + $0x340] sm:$0xff]  ;;  %v719_v44 = vld [vmem:[#allocation8 + $0x390] sm:$0xff]  ;;  %v722_v46 = vld [vmem:[#allocation8 + $0x3a8] sm:$0xff] }
 0x1c9   : > { %646 = vmatmul.mubr.f32.gmra.mrb[2].mxu1 %v4964_v60  ;;  %v717_v43 = vld [vmem:[#allocation8 + $0x380] sm:$0xff]  ;;  %v724_v47 = vld [vmem:[#allocation8 + $0x3b8] sm:$0xff]  ;;  %v726_v53 = vld [vmem:[#allocation8 + $0x3c8] sm:$0xff] }
 0x1ca   : > { %3333 = vmatpush1.bf16.msra.mxu1 %v3332_v59  ;;  %v759_v6 = vsel %vm755_vm2, %v754_v3, %v752_v2  ;;  %v694_v59 = vld [vmem:[#allocation8 + $0x150] sm:$0xff]  ;;  %v757_v25 = vsel %vm755_vm2, %v752_v2, %v754_v3  ;;  %v3384_v3 = vpack.c.bf16 %v711_v32, %v709_v31 }
 0x1cb   : > { %3335 = vmatprep.subr.bf16.mxu1 %v3334_v61  ;;  %v761_v8 = vsel %vm749_vm3, %v759_v6, 0.0  ;;  %v697_v61 = vld [vmem:[#allocation8 + $0x168] sm:$0xff]  ;;  %v3368_v63 = vpack.c.bf16 %v694_v59, %v692_v57  ;;  %v725_v57 = vld [vmem:[#allocation8 + $0x3c0] sm:$0xff]  ;;  %v727_v59 = vld [vmem:[#allocation8 + $0x3d0] sm:$0xff] }
 0x1cc   : > { %3210 = vmatprep.mubr.msk.f32.mxu1 %vm568_vm1, %v761_v8  ;;  %v3370_v1 = vpack.c.bf16 %v699_v62, %v697_v61  ;;  %v702_v6 = vld [vmem:[#allocation8 + $0x308] sm:$0xff]  ;;  %v3372_v8 = vpack.c.bf16 %v698_v5, %v696_v4  ;;  %v732_v62 = vld [vmem:[#allocation8 + $0x3f8] sm:$0xff]  ;;  %v729_v4 = vld [vmem:[#allocation8 + $0x3e0] sm:$0xff] }
 0x1cd   : > { %v730_v61 = vld [vmem:[#allocation8 + $0x3e8] sm:$0xff]  ;;  %v731_v5 = vld [vmem:[#allocation8 + $0x3f0] sm:$0xff] }
 0x1ce   : > { %3337 = vmatpush1.bf16.msra.mxu1 %v3336_v7  ;;  %v704_v7 = vld [vmem:[#allocation8 + $0x318] sm:$0xff] }
 0x1cf   : > { %3339 = vmatprep.subr.bf16.mxu1 %v3338_v9  ;;  %v3374_v9 = vpack.c.bf16 %v704_v7, %v702_v6  ;;  %v734_v6 = vld [vmem:[#allocation8 + $0x408] sm:$0xff]  ;;  %v736_v7 = vld [vmem:[#allocation8 + $0x418] sm:$0xff] }
 0x1d2   : > { %3341 = vmatpush1.bf16.msra.mxu1 %v3340_v14  ;;  %v708_v14 = vld [vmem:[#allocation8 + $0x338] sm:$0xff] }
 0x1d3   : > { %3343 = vmatprep.subr.bf16.mxu1 %v3342_v16  ;;  %v751_v16 = vrot.slane %v4957_v48, 7  ;;  %v3378_v18 = vpack.c.bf16 %v708_v14, %v706_v13  ;;  %v740_v13 = vld [vmem:[#allocation8 + $0x438] sm:$0xff]  ;;  %v3408_v14 = vpack.c.bf16 %v735_v11, %v733_v10  ;;  %v1417_v11 = vld [vmem:[#allocation8 + $0xa80] sm:$0xff] }
 0x1d4   : > { %v1420_v10 = vld [vmem:[#allocation8 + $0xa98] sm:$0xff] }
 0x1d5   : > { %v756_v33 = vsel %vm755_vm2, %v751_v16, %v753_v12 }
 0x1d6   : > { %3345 = vmatpush1.bf16.msra.mxu1 %v3344_v21  ;;  %v758_v21 = vsel %vm755_vm2, %v753_v12, %v751_v16  ;;  %v738_v12 = vld [vmem:[#allocation8 + $0x428] sm:$0xff] }
 0x1d7   : > { %3347 = vmatprep.subr.bf16.mxu1 %v3346_v23  ;;  %v710_v23 = vld [vmem:[#allocation8 + $0x348] sm:$0xff]  ;;  %v3410_v16 = vpack.c.bf16 %v740_v13, %v738_v12  ;;  %v1419_v13 = vld [vmem:[#allocation8 + $0xa90] sm:$0xff] }
 0x1da   : > { %3349 = vmatpush1.bf16.msra.mxu1 %v3348_v29  ;;  %v767_v29 = vrot.slane %v4955_v45, 1 }
 0x1db   : > { %3351 = vmatprep.subr.bf16.mxu1 %v3350_v30  ;;  %v3382_v30 = vpack.c.bf16 %v712_v24, %v710_v23  ;;  %v3414_v23 = vpack.c.bf16 %v744_v20, %v742_v19  ;;  %v741_v24 = vld [vmem:[#allocation8 + $0x440] sm:$0xff]  ;;  %v1423_v20 = vld [vmem:[#allocation8 + $0xab0] sm:$0xff] }
 0x1dc   : > { %v772_v2 = vsel %vm770_vm4, %v767_v29, %v769_v26  ;;  %v1421_v19 = vld [vmem:[#allocation8 + $0xaa0] sm:$0xff] }
 0x1de   : > { %3353 = vmatpush1.bf16.msra.mxu1 %v3352_v35  ;;  %v716_v35 = vld [vmem:[#allocation8 + $0x378] sm:$0xff] }
 0x1df   : > { %3355 = vmatprep.subr.bf16.mxu1 %v3354_v36  ;;  %v3386_v36 = vpack.c.bf16 %v716_v35, %v714_v34  ;;  %v747_v34 = vld [vmem:[#allocation8 + $0x470] sm:$0xff] }
 0x1e2   : > { %3357 = vmatpush1.bf16.msra.mxu1 %v3356_v41  ;;  %v3388_v41 = vpack.c.bf16 %v715_v38, %v713_v37  ;;  %v774_v37 = vsel %vm770_vm4, %v769_v26, %v767_v29  ;;  %v999_v26 = vld [vmem:[#allocation8 + $0x728] sm:$0xff]  ;;  %v1001_v29 = vld [vmem:[#allocation8 + $0x738] sm:$0xff] }
 0x1e3   : > { %3359 = vmatprep.subr.bf16.mxu1 %v3358_v42  ;;  %v3390_v42 = vpack.c.bf16 %v720_v40, %v718_v39 }
 0x1e6   : > { %3361 = vmatpush1.bf16.msra.mxu1 %v3360_v49  ;;  %v3392_v49 = vpack.c.bf16 %v719_v44, %v717_v43  ;;  %v994_v44 = vld [vmem:[#allocation8 + $0x700] sm:$0xff] }
 0x1e7   : > { %3363 = vmatprep.subr.bf16.mxu1 %v3362_v50  ;;  %v3394_v50 = vpack.c.bf16 %v724_v47, %v722_v46  ;;  %v996_v46 = vld [vmem:[#allocation8 + $0x710] sm:$0xff] }
 0x1e8   : > { %v3456_v47 = vpack.c.bf16 %v996_v46, %v994_v44 }
 0x1ea   : > { %3365 = vmatpush1.bf16.msra.mxu1 %v3364_v55  ;;  %v3396_v55 = vpack.c.bf16 %v723_v52, %v721_v51  ;;  %v1000_v51 = vld [vmem:[#allocation8 + $0x730] sm:$0xff] }
 0x1eb   : > { %3367 = vmatprep.subr.bf16.mxu1 %v3366_v56  ;;  %v3398_v56 = vpack.c.bf16 %v728_v54, %v726_v53  ;;  %v1003_v53 = vld [vmem:[#allocation8 + $0x748] sm:$0xff]  ;;  %v1005_v54 = vld [vmem:[#allocation8 + $0x758] sm:$0xff] }
 0x1ee   : > { %3369 = vmatpush1.bf16.msra.mxu1 %v3368_v63  ;;  %v3400_v63 = vpack.c.bf16 %v727_v59, %v725_v57  ;;  %v1004_v57 = vld [vmem:[#allocation8 + $0x750] sm:$0xff] }
 0x1ef   : > { %3371 = vmatprep.subr.bf16.mxu1 %v3370_v1  ;;  %v3402_v1 = vpack.c.bf16 %v732_v62, %v730_v61  ;;  %v1007_v61 = vld [vmem:[#allocation8 + $0x768] sm:$0xff]  ;;  %v1009_v62 = vld [vmem:[#allocation8 + $0x778] sm:$0xff] }
 0x1f2   : > { %3373 = vmatpush1.bf16.msra.mxu1 %v3372_v8  ;;  %v3404_v8 = vpack.c.bf16 %v731_v5, %v729_v4  ;;  %v1008_v4 = vld [vmem:[#allocation8 + $0x770] sm:$0xff] }
 0x1f3   : > { %3375 = vmatprep.subr.bf16.mxu1 %v3374_v9  ;;  %v3406_v9 = vpack.c.bf16 %v736_v7, %v734_v6  ;;  %v1108_v6 = vld [vmem:[#allocation8 + $0x488] sm:$0xff]  ;;  %v1110_v7 = vld [vmem:[#allocation8 + $0x498] sm:$0xff] }
 0x1f5   : > { %3211 = vmatmul.mubr.msk.f32.vlgmr.msra.gmra.mrb[0].mxu1 %vm749_vm3, %v758_v21 }
 0x1f6   : > { %3212 = vmatprep.mubr.msk.f32.mxu1 %vm568_vm1, %v757_v25  ;;  %3377 = vmatpush1.bf16.msra.mxu1 %v3376_v17  ;;  %v737_v17 = vld [vmem:[#allocation8 + $0x420] sm:$0xff]  ;;  %v743_v25 = vld [vmem:[#allocation8 + $0x450] sm:$0xff] }
 0x1f7   : > { %3379 = vmatprep.subr.bf16.mxu1 %v3378_v18  ;;  %v739_v18 = vld [vmem:[#allocation8 + $0x430] sm:$0xff]  ;;  %v3416_v31 = vpack.c.bf16 %v743_v25, %v741_v24  ;;  %v556_v24 = vld [vmem:[#allocation10] sm:$0x3]  ;;  %v3572_v25 = vpack.c.bf16 %v1423_v20, %v1421_v19 }
 0x1f8   : > { %v3412_v21 = vpack.c.bf16 %v739_v18, %v737_v17  ;;  %v3568_v17 = vpack.c.bf16 %v1419_v13, %v1417_v11  ;;  %v1112_v11 = vld [vmem:[#allocation8 + $0x4a8] sm:$0xff] }
 0x1f9   : > { %856 = vmatmul.mubr.f32.gmra.mrb[2].mxu1 %v756_v33  ;;  %v745_v33 = vld [vmem:[#allocation8 + $0x460] sm:$0xff] }
 0x1fa   : > { %3381 = vmatpush1.bf16.msra.mxu1 %v3380_v28  ;;  %3213 = vmatprep.mubr.msk.f32.mxu1 %vm568_vm1, %v772_v2  ;;  %v746_v28 = vld [vmem:[#allocation8 + $0x468] sm:$0xff]  ;;  %v3420_v35 = vpack.c.bf16 %v747_v34, %v745_v33  ;;  %v5008_v2 = vadd.s32 8, %v4945_v15  ;;  %v1432_v33 = vld [vmem:[#allocation8 + $0xaf8] sm:$0xff]  ;;  %v561_v34 = vrot.slane %v556_v24, %v4951_v27 }
 0x1fb   : > { %3383 = vmatprep.subr.bf16.mxu1 %v3382_v30  ;;  %v748_v30 = vld [vmem:[#allocation8 + $0x478] sm:$0xff] }
 0x1fc   : > { %v3418_v32 = vpack.c.bf16 %v748_v30, %v746_v28  ;;  %vm765_vm5 = vcmp.lt.s32.totalorder %v5008_v2, 15  ;;  %v1425_v30 = vld [vmem:[#allocation8 + $0xac0] sm:$0xff]  ;;  %vm1220_vm9 = vcmp.lt.s32.totalorder %v5008_v2, 14  ;;  %vm1675_vm12 = vcmp.lt.s32.totalorder %v5008_v2, 12 }
 0x1fd   : > { %v778_v39 = vsel %vm765_vm5, %v774_v37, 0.0  ;;  %v1429_v37 = vld [vmem:[#allocation8 + $0xae0] sm:$0xff] }
 0x1fe   : > { %3385 = vmatpush1.bf16.msra.mxu1 %v3384_v3  ;;  %v768_v3 = vrot.slane %v4964_v60, 1  ;;  %v1899_v2 = vld [vmem:[#allocation8 + $0x1020] sm:$0xff] }
 0x1ff   : > { %3387 = vmatprep.subr.bf16.mxu1 %v3386_v36  ;;  %v766_v36 = vrot.slane %v4957_v48, 1 }
 0x201   : > { %v771_v38 = vsel %vm770_vm4, %v766_v36, %v768_v3  ;;  %v773_v40 = vsel %vm770_vm4, %v768_v3, %v766_v36 }
 0x202   : > { %3389 = vmatpush1.bf16.msra.mxu1 %v3388_v41  ;;  %v995_v41 = vld [vmem:[#allocation8 + $0x708] sm:$0xff] }
 0x203   : > { %3391 = vmatprep.subr.bf16.mxu1 %v3390_v42  ;;  %v997_v42 = vld [vmem:[#allocation8 + $0x718] sm:$0xff] }
 0x204   : > { %v3454_v43 = vpack.c.bf16 %v997_v42, %v995_v41  ;;  %v1436_v41 = vld [vmem:[#allocation8 + $0xb18] sm:$0xff] }
 0x206   : > { %3393 = vmatpush1.bf16.msra.mxu1 %v3392_v49  ;;  %3455 = vmatprep.subr.bf16.mxu0 %v3454_v43  ;;  %v3458_v49 = vpack.c.bf16 %v1001_v29, %v999_v26  ;;  %v1433_v26 = vld [vmem:[#allocation8 + $0xb00] sm:$0xff]  ;;  %v1435_v29 = vld [vmem:[#allocation8 + $0xb10] sm:$0xff] }
 0x207   : > { %3395 = vmatprep.subr.bf16.mxu1 %v3394_v50  ;;  %3457 = vmatpush1.bf16.msra.mxu0 %v3456_v47  ;;  %v998_v50 = vld [vmem:[#allocation8 + $0x720] sm:$0xff] }
 0x208   : > { %v3460_v52 = vpack.c.bf16 %v1000_v51, %v998_v50  ;;  %3459 = vmatprep.subr.bf16.mxu0 %v3458_v49  ;;  %v1438_v50 = vld [vmem:[#allocation8 + $0xb28] sm:$0xff]  ;;  %v1440_v51 = vld [vmem:[#allocation8 + $0xb38] sm:$0xff] }
 0x20a   : > { %3397 = vmatpush1.bf16.msra.mxu1 %v3396_v55  ;;  %v3462_v55 = vpack.c.bf16 %v1005_v54, %v1003_v53 }
 0x20b   : > { %3399 = vmatprep.subr.bf16.mxu1 %v3398_v56  ;;  %3461 = vmatpush1.bf16.msra.mxu0 %v3460_v52  ;;  %v1002_v56 = vld [vmem:[#allocation8 + $0x740] sm:$0xff] }
 0x20c   : > { %v3464_v59 = vpack.c.bf16 %v1004_v57, %v1002_v56  ;;  %3463 = vmatprep.subr.bf16.mxu0 %v3462_v55  ;;  %v3584_v55 = vpack.c.bf16 %v1435_v29, %v1433_v26  ;;  %v3586_v56 = vpack.c.bf16 %v1440_v51, %v1438_v50  ;;  %v1437_v57 = vld [vmem:[#allocation8 + $0xb20] sm:$0xff]  ;;  %v1125_v50 = vld [vmem:[#allocation8 + $0x510] sm:$0xff]  ;;  %v1128_v51 = vld [vmem:[#allocation8 + $0x528] sm:$0xff] }
 0x20e   : > { %3401 = vmatpush1.bf16.msra.mxu1 %v3400_v63  ;;  %v1006_v63 = vld [vmem:[#allocation8 + $0x760] sm:$0xff] }
 0x20f   : > { %3403 = vmatprep.subr.bf16.mxu1 %v3402_v1  ;;  %v3466_v1 = vpack.c.bf16 %v1009_v62, %v1007_v61  ;;  %3465 = vmatpush1.bf16.msra.mxu0 %v3464_v59  ;;  %v3468_v5 = vpack.c.bf16 %v1008_v4, %v1006_v63  ;;  %v1439_v59 = vld [vmem:[#allocation8 + $0xb30] sm:$0xff]  ;;  %v1442_v61 = vld [vmem:[#allocation8 + $0xb48] sm:$0xff]  ;;  %v1444_v62 = vld [vmem:[#allocation8 + $0xb58] sm:$0xff] }
 0x210   : > { %v3588_v63 = vpack.c.bf16 %v1439_v59, %v1437_v57  ;;  %v3590_v4 = vpack.c.bf16 %v1444_v62, %v1442_v61  ;;  %v1132_v57 = vld [vmem:[#allocation8 + $0x548] sm:$0xff]  ;;  %v1134_v59 = vld [vmem:[#allocation8 + $0x558] sm:$0xff] }
 0x211   : > { %3467 = vmatprep.subr.bf16.mxu0 %v3466_v1  ;;  %v1107_v1 = vld [vmem:[#allocation8 + $0x480] sm:$0xff]  ;;  %v3494_v62 = vpack.c.bf16 %v1134_v59, %v1132_v57 }
 0x212   : > { %3405 = vmatpush1.bf16.msra.mxu1 %v3404_v8  ;;  %v3470_v8 = vpack.c.bf16 %v1110_v7, %v1108_v6  ;;  %v1443_v6 = vld [vmem:[#allocation8 + $0xb50] sm:$0xff] }
 0x213   : > { %3407 = vmatprep.subr.bf16.mxu1 %v3406_v9  ;;  %3469 = vmatpush1.bf16.msra.mxu0 %v3468_v5  ;;  %v1418_v9 = vld [vmem:[#allocation8 + $0xa88] sm:$0xff]  ;;  %v1441_v5 = vld [vmem:[#allocation8 + $0xb40] sm:$0xff]  ;;  %v1109_v7 = vld [vmem:[#allocation8 + $0x490] sm:$0xff] }
 0x214   : > { %3471 = vmatprep.subr.bf16.mxu0 %v3470_v8  ;;  %v3566_v12 = vpack.c.bf16 %v1420_v10, %v1418_v9  ;;  %v1446_v8 = vld [vmem:[#allocation8 + $0xb68] sm:$0xff]  ;;  %v1448_v9 = vld [vmem:[#allocation8 + $0xb78] sm:$0xff] }
 0x216   : > { %3409 = vmatpush1.bf16.msra.mxu1 %v3408_v14  ;;  %v1422_v14 = vld [vmem:[#allocation8 + $0xaa8] sm:$0xff] }
 0x217   : > { %3411 = vmatprep.subr.bf16.mxu1 %v3410_v16  ;;  %v1424_v16 = vld [vmem:[#allocation8 + $0xab8] sm:$0xff] }
 0x218   : > { %v3570_v18 = vpack.c.bf16 %v1424_v16, %v1422_v14  ;;  %v3592_v14 = vpack.c.bf16 %v1443_v6, %v1441_v5  ;;  %v1138_v5 = vld [vmem:[#allocation8 + $0x578] sm:$0xff] }
 0x21a   : > { %3413 = vmatpush1.bf16.msra.mxu1 %v3412_v21  ;;  %v1426_v21 = vld [vmem:[#allocation8 + $0xac8] sm:$0xff] }
 0x21b   : > { %3415 = vmatprep.subr.bf16.mxu1 %v3414_v23  ;;  %v1428_v23 = vld [vmem:[#allocation8 + $0xad8] sm:$0xff] }
 0x21c   : > { %v3574_v28 = vpack.c.bf16 %v1428_v23, %v1426_v21  ;;  %v1111_v21 = vld [vmem:[#allocation8 + $0x4a0] sm:$0xff]  ;;  %v1113_v23 = vld [vmem:[#allocation8 + $0x4b0] sm:$0xff] }
 0x21e   : > { %3417 = vmatpush1.bf16.msra.mxu1 %v3416_v31  ;;  %v1427_v31 = vld [vmem:[#allocation8 + $0xad0] sm:$0xff] }
 0x21f   : > { %3419 = vmatprep.subr.bf16.mxu1 %v3418_v32  ;;  %v1430_v32 = vld [vmem:[#allocation8 + $0xae8] sm:$0xff]  ;;  %v3576_v3 = vpack.c.bf16 %v1427_v31, %v1425_v30  ;;  %v1445_v30 = vld [vmem:[#allocation8 + $0xb60] sm:$0xff]  ;;  %v1447_v31 = vld [vmem:[#allocation8 + $0xb70] sm:$0xff] }
 0x220   : > { %v3578_v36 = vpack.c.bf16 %v1432_v33, %v1430_v32 }
 0x222   : > { %3421 = vmatpush1.bf16.msra.mxu1 %v3420_v35  ;;  %v565_v35 = vrot.slane %v556_v24, %v4948_v22  ;;  %v1116_v24 = vld [vmem:[#allocation8 + $0x4c8] sm:$0xff] }
 0x223   : > { %3567 = vmatprep.subr.bf16.mxu1 %v3566_v12  ;;  %v1114_v12 = vld [vmem:[#allocation8 + $0x4b8] sm:$0xff] }
 0x224   : > { %v3474_v20 = vpack.c.bf16 %v1114_v12, %v1112_v11  ;;  %v1142_v11 = vld [vmem:[#allocation8 + $0x598] sm:$0xff] }
 0x225   : > { %937 = vmatmul.mubr.f32.vlgmr.msra.gmra.mrb[0].mxu1 %v771_v38  ;;  %v1431_v38 = vld [vmem:[#allocation8 + $0xaf0] sm:$0xff] }
 0x226   : > { %3214 = vmatprep.mubr.msk.f32.mxu1 %vm568_vm1, %v778_v39  ;;  %3569 = vmatpush1.bf16.msra.mxu1 %v3568_v17  ;;  %v3580_v46 = vpack.c.bf16 %v1431_v38, %v1429_v37  ;;  %v3472_v17 = vpack.c.bf16 %v1109_v7, %v1107_v1  ;;  %v1120_v38 = vld [vmem:[#allocation8 + $0x4e8] sm:$0xff]  ;;  %v1133_v1 = vld [vmem:[#allocation8 + $0x550] sm:$0xff] }
 0x227   : > { %3571 = vmatprep.subr.bf16.mxu1 %v3570_v18  ;;  %v3594_v18 = vpack.c.bf16 %v1448_v9, %v1446_v8  ;;  %v1135_v8 = vld [vmem:[#allocation8 + $0x560] sm:$0xff]  ;;  %v1137_v9 = vld [vmem:[#allocation8 + $0x570] sm:$0xff] }
 0x228   : > { %v3500_v12 = vpack.c.bf16 %v1137_v9, %v1135_v8  ;;  %v1168_v9 = vld [vmem:[#allocation8 + $0x7e0] sm:$0xff] }
 0x229   : > { %3215 = vmatmul.mubr.msk.f32.gmra.mrb[2].mxu1 %vm765_vm5, %v773_v40  ;;  %v1434_v40 = vld [vmem:[#allocation8 + $0xb08] sm:$0xff] }
 0x22a   : > { %3573 = vmatpush1.bf16.msra.mxu1 %v3572_v25  ;;  %v3582_v47 = vpack.c.bf16 %v1436_v41, %v1434_v40 }
 0x22b   : > { %3575 = vmatprep.subr.bf16.mxu1 %v3574_v28  ;;  %v1118_v28 = vld [vmem:[#allocation8 + $0x4d8] sm:$0xff] }
 0x22e   : > { %3577 = vmatpush1.bf16.msra.mxu1 %v3576_v3  ;;  %v1117_v3 = vld [vmem:[#allocation8 + $0x4d0] sm:$0xff] }
 0x22f   : > { %3579 = vmatprep.subr.bf16.mxu1 %v3578_v36  ;;  %v3596_v36 = vpack.c.bf16 %v1447_v31, %v1445_v30  ;;  %v1150_v30 = vld [vmem:[#allocation8 + $0x5d8] sm:$0xff] }
 0x232   : > { %3581 = vmatpush1.bf16.msra.mxu1 %v3580_v46  ;;  %v1124_v46 = vld [vmem:[#allocation8 + $0x508] sm:$0xff] }
 0x233   : > { %3583 = vmatprep.subr.bf16.mxu1 %v3582_v47  ;;  %v1126_v47 = vld [vmem:[#allocation8 + $0x518] sm:$0xff] }
 0x234   : > { %v3486_v29 = vpack.c.bf16 %v1126_v47, %v1124_v46  ;;  %v1158_v46 = vld [vmem:[#allocation8 + $0x790] sm:$0xff] }
 0x236   : > { %3585 = vmatpush1.bf16.msra.mxu1 %v3584_v55  ;;  %v1127_v55 = vld [vmem:[#allocation8 + $0x520] sm:$0xff] }
 0x237   : > { %3587 = vmatprep.subr.bf16.mxu1 %v3586_v56  ;;  %v1129_v56 = vld [vmem:[#allocation8 + $0x530] sm:$0xff] }
 0x238   : > { %v3492_v61 = vpack.c.bf16 %v1129_v56, %v1127_v55  ;;  %v1165_v55 = vld [vmem:[#allocation8 + $0x7c8] sm:$0xff]  ;;  %v1167_v56 = vld [vmem:[#allocation8 + $0x7d8] sm:$0xff] }
 0x23a   : > { %3589 = vmatpush1.bf16.msra.mxu1 %v3588_v63  ;;  %v1131_v63 = vld [vmem:[#allocation8 + $0x540] sm:$0xff] }
 0x23b   : > { %3591 = vmatprep.subr.bf16.mxu1 %v3590_v4  ;;  %v1136_v4 = vld [vmem:[#allocation8 + $0x568] sm:$0xff]  ;;  %v3496_v6 = vpack.c.bf16 %v1133_v1, %v1131_v63  ;;  %v3526_v63 = vpack.c.bf16 %v1167_v56, %v1165_v55  ;;  %v1164_v1 = vld [vmem:[#allocation8 + $0x7c0] sm:$0xff] }
 0x23c   : > { %v3498_v7 = vpack.c.bf16 %v1138_v5, %v1136_v4  ;;  %v1166_v4 = vld [vmem:[#allocation8 + $0x7d0] sm:$0xff] }
 0x23e   : > { %3593 = vmatpush1.bf16.msra.mxu1 %v3592_v14  ;;  %v1139_v14 = vld [vmem:[#allocation8 + $0x580] sm:$0xff] }
 0x23f   : > { %3595 = vmatprep.subr.bf16.mxu1 %v3594_v18  ;;  %v1144_v18 = vld [vmem:[#allocation8 + $0x5a8] sm:$0xff] }
 0x242   : > { %3597 = vmatpush1.bf16.msra.mxu1 %v3596_v36 }
 0x2f8   : > { %v938_v39 = vpop.f32.mrb[0].mxu1 }
 0x2f9   : > { %v4082_v42 = vadd.f32 %v938_v39, %v561_v34  ;;  %v940_v43 = vpop.f32.mrb[1].mxu1  ;;  %v1122_v39 = vld [vmem:[#allocation8 + $0x4f8] sm:$0xff] }
 0x2fa   : > { %v4083_v44 = vadd.f32 %v940_v43, %v565_v35  ;;  %v1119_v43 = vld [vmem:[#allocation8 + $0x4e0] sm:$0xff] }
 0x2fb   : > { %4248 = vtanh.f32 %v4082_v42  ;;  %v3482_v42 = vpack.c.bf16 %v1122_v39, %v1120_v38  ;;  %v1151_v39 = vld [vmem:[#allocation8 + $0x5e0] sm:$0xff] }
 0x2fc   : > { %4250 = vtanh.f32 %v4083_v44  ;;  %v944_v49 = vpop.f32.mrb[2].mxu1  ;;  %v1121_v44 = vld [vmem:[#allocation8 + $0x4f0] sm:$0xff] }
 0x2fd   : > { %v4084_v52 = vadd.f32 %v944_v49, %v561_v34  ;;  %v946_v53 = vpop.f32.mrb[3].mxu1  ;;  %v3478_v34 = vpack.c.bf16 %v1118_v28, %v1116_v24  ;;  %v3484_v26 = vpack.c.bf16 %v1121_v44, %v1119_v43  ;;  %v1123_v49 = vld [vmem:[#allocation8 + $0x500] sm:$0xff]  ;;  %v1148_v28 = vld [vmem:[#allocation8 + $0x5c8] sm:$0xff] }
 0x2fe   : > { %v4085_v54 = vadd.f32 %v946_v53, %v565_v35  ;;  %v1115_v35 = vld [vmem:[#allocation8 + $0x4c0] sm:$0xff]  ;;  %v3488_v53 = vpack.c.bf16 %v1125_v50, %v1123_v49 }
 0x2ff   : > { %4252 = vtanh.f32 %v4084_v52  ;;  %v3480_v40 = vpack.c.bf16 %v1117_v3, %v1115_v35  ;;  %v1130_v52 = vld [vmem:[#allocation8 + $0x538] sm:$0xff]  ;;  %v1143_v24 = vld [vmem:[#allocation8 + $0x5a0] sm:$0xff]  ;;  %v1152_v35 = vld [vmem:[#allocation8 + $0x5e8] sm:$0xff] }
 0x300   : > { %4254 = vtanh.f32 %v4085_v54  ;;  %v3490_v54 = vpack.c.bf16 %v1130_v52, %v1128_v51  ;;  %v1154_v3 = vld [vmem:[#allocation8 + $0x5f8] sm:$0xff]  ;;  %v1156_v44 = vld [vmem:[#allocation8 + $0x780] sm:$0xff] }
 0x301   : > { %v3514_v38 = vpack.c.bf16 %v1154_v3, %v1152_v35  ;;  %v3520_v50 = vpack.c.bf16 %v1158_v46, %v1156_v44  ;;  %v1160_v52 = vld [vmem:[#allocation8 + $0x7a0] sm:$0xff]  ;;  %v1182_v35 = vld [vmem:[#allocation8 + $0x850] sm:$0xff]  ;;  %v1185_v3 = vld [vmem:[#allocation8 + $0x868] sm:$0xff] }
 0x302   : > { %v1188_v46 = vld [vmem:[#allocation8 + $0x880] sm:$0xff] }
 0x305   : > { %v4249_v10 = vpop.eup %4248 }
 0x306   : > { %v4251_v13 = vpop.eup %4250  ;;  %v5030_v19 = vadd.f32 %v4249_v10, %v4957_v48  ;;  %v3476_v48 = vpack.c.bf16 %v1113_v23, %v1111_v21  ;;  %v1140_v10 = vld [vmem:[#allocation8 + $0x588] sm:$0xff] }
 0x307   : > { %v5027_v16 = vadd.f32 %v4251_v13, %v4955_v45  ;;  %v3502_v13 = vpack.c.bf16 %v1142_v11, %v1140_v10  ;;  %v1170_v10 = vld [vmem:[#allocation8 + $0x7f0] sm:$0xff]  ;;  %v1173_v11 = vld [vmem:[#allocation8 + $0x808] sm:$0xff] }
 0x308   : > { %v1206_v49 = vrot.slane %v5030_v19, 6 }
 0x309   : > { %v4253_v25 = vpop.eup %4252  ;;  %3216 = vmatprep.mubr.msk.f32.mxu0 %vm568_vm1, %v5027_v16 }
 0x30a   : > { %v4255_v32 = vpop.eup %4254  ;;  %1094 = vmatmul.mubr.f32.vlgmr.msra.gmra.mrb[4].mxu0 %v5030_v19  ;;  %v5039_v33 = vadd.f32 %v4253_v25, %v4964_v60  ;;  %v1145_v25 = vld [vmem:[#allocation8 + $0x5b0] sm:$0xff] }
 0x30b   : > { %3473 = vmatpush1.bf16.msra.mxu0 %v3472_v17  ;;  %v5036_v45 = vadd.f32 %v4255_v32, %v4962_v58  ;;  %v1207_v58 = vrot.slane %v5027_v16, 6  ;;  %v1141_v17 = vld [vmem:[#allocation8 + $0x590] sm:$0xff]  ;;  %v3508_v31 = vpack.c.bf16 %v1145_v25, %v1143_v24  ;;  %v3510_v32 = vpack.c.bf16 %v1150_v30, %v1148_v28  ;;  %v1176_v25 = vld [vmem:[#allocation8 + $0x820] sm:$0xff]  ;;  %v1181_v30 = vld [vmem:[#allocation8 + $0x848] sm:$0xff] }
 0x30c   : > { %3475 = vmatprep.subr.bf16.mxu0 %v3474_v20  ;;  %v1146_v20 = vld [vmem:[#allocation8 + $0x5b8] sm:$0xff]  ;;  %v3504_v21 = vpack.c.bf16 %v1141_v17, %v1139_v14  ;;  %v1208_v47 = vrot.slane %v5039_v33, 6  ;;  %v1172_v17 = vld [vmem:[#allocation8 + $0x800] sm:$0xff]  ;;  %v1178_v28 = vld [vmem:[#allocation8 + $0x830] sm:$0xff] }
 0x30d   : > { %3217 = vmatprep.mubr.msk.f32.mxu0 %vm568_vm1, %v5036_v45  ;;  %v1209_v37 = vrot.slane %v5036_v45, 6  ;;  %v3506_v23 = vpack.c.bf16 %v1146_v20, %v1144_v18  ;;  %v1224_v59 = vrot.slane %v5036_v45, 2  ;;  %v1174_v18 = vld [vmem:[#allocation8 + $0x810] sm:$0xff]  ;;  %v1177_v20 = vld [vmem:[#allocation8 + $0x828] sm:$0xff] }
 0x30e   : > { %1100 = vmatmul.mubr.f32.gmra.mrb[6].mxu0 %v5039_v33  ;;  %v1211_v5 = vsel %vm1210_vm6, %v1206_v49, %v1208_v47 }
 0x30f   : > { %3477 = vmatpush1.bf16.msra.mxu0 %v3476_v48  ;;  %v1214_v60 = vsel %vm1210_vm6, %v1209_v37, %v1207_v58  ;;  %v1147_v48 = vld [vmem:[#allocation8 + $0x5c0] sm:$0xff]  ;;  %v1212_v57 = vsel %vm1210_vm6, %v1207_v58, %v1209_v37  ;;  %v3528_v37 = vpack.c.bf16 %v1166_v4, %v1164_v1  ;;  %v1203_v1 = vld [vmem:[#allocation8 + $0x8f8] sm:$0xff] }
 0x310   : > { %3479 = vmatprep.subr.bf16.mxu0 %v3478_v34  ;;  %v1216_v41 = vsel %vm1204_vm7, %v1214_v60, 0.0  ;;  %v1149_v34 = vld [vmem:[#allocation8 + $0x5d0] sm:$0xff] }
 0x311   : > { %3218 = vmatprep.mubr.msk.f32.mxu0 %vm568_vm1, %v1216_v41  ;;  %v3512_v36 = vpack.c.bf16 %v1149_v34, %v1147_v48  ;;  %v1153_v60 = vld [vmem:[#allocation8 + $0x5f0] sm:$0xff]  ;;  %v1159_v41 = vld [vmem:[#allocation8 + $0x798] sm:$0xff]  ;;  %v1180_v34 = vld [vmem:[#allocation8 + $0x840] sm:$0xff] }
 0x313   : > { %3481 = vmatpush1.bf16.msra.mxu0 %v3480_v40  ;;  %v1157_v40 = vld [vmem:[#allocation8 + $0x788] sm:$0xff] }
 0x314   : > { %3483 = vmatprep.subr.bf16.mxu0 %v3482_v42  ;;  %v3516_v42 = vpack.c.bf16 %v1153_v60, %v1151_v39  ;;  %v3518_v43 = vpack.c.bf16 %v1159_v41, %v1157_v40  ;;  %v1184_v60 = vld [vmem:[#allocation8 + $0x860] sm:$0xff]  ;;  %v1186_v40 = vld [vmem:[#allocation8 + $0x870] sm:$0xff]  ;;  %v1189_v41 = vld [vmem:[#allocation8 + $0x888] sm:$0xff] }
 0x317   : > { %3485 = vmatpush1.bf16.msra.mxu0 %v3484_v26  ;;  %v1161_v26 = vld [vmem:[#allocation8 + $0x7a8] sm:$0xff] }
 0x318   : > { %3487 = vmatprep.subr.bf16.mxu0 %v3486_v29  ;;  %v1163_v29 = vld [vmem:[#allocation8 + $0x7b8] sm:$0xff] }
 0x319   : > { %v3522_v51 = vpack.c.bf16 %v1163_v29, %v1161_v26  ;;  %v1193_v26 = vld [vmem:[#allocation8 + $0x8a8] sm:$0xff]  ;;  %v1195_v29 = vld [vmem:[#allocation8 + $0x8b8] sm:$0xff] }
 0x31b   : > { %3489 = vmatpush1.bf16.msra.mxu0 %v3488_v53  ;;  %v1162_v53 = vld [vmem:[#allocation8 + $0x7b0] sm:$0xff] }
 0x31c   : > { %3491 = vmatprep.subr.bf16.mxu0 %v3490_v54  ;;  %v1213_v54 = vsel %vm1210_vm6, %v1208_v47, %v1206_v49  ;;  %v1190_v47 = vld [vmem:[#allocation8 + $0x890] sm:$0xff] }
 0x31d   : > { %v3552_v49 = vpack.c.bf16 %v1190_v47, %v1188_v46  ;;  %v1866_v46 = vld [vmem:[#allocation8 + $0xf18] sm:$0xff]  ;;  %v1863_v47 = vld [vmem:[#allocation8 + $0xf00] sm:$0xff] }
 0x31f   : > { %3493 = vmatpush1.bf16.msra.mxu0 %v3492_v61  ;;  %v3524_v61 = vpack.c.bf16 %v1162_v53, %v1160_v52  ;;  %v1194_v52 = vld [vmem:[#allocation8 + $0x8b0] sm:$0xff]  ;;  %v1197_v53 = vld [vmem:[#allocation8 + $0x8c8] sm:$0xff] }
 0x320   : > { %3495 = vmatprep.subr.bf16.mxu0 %v3494_v62  ;;  %v1222_v62 = vrot.slane %v5027_v16, 2 }
 0x322   : > { %v1227_v58 = vsel %vm1225_vm8, %v1222_v62, %v1224_v59 }
 0x323   : > { %3497 = vmatpush1.bf16.msra.mxu0 %v3496_v6  ;;  %v1169_v6 = vld [vmem:[#allocation8 + $0x7e8] sm:$0xff] }
 0x324   : > { %3499 = vmatprep.subr.bf16.mxu0 %v3498_v7  ;;  %v1171_v7 = vld [vmem:[#allocation8 + $0x7f8] sm:$0xff] }
 0x325   : > { %v3530_v8 = vpack.c.bf16 %v1171_v7, %v1169_v6  ;;  %v1200_v6 = vld [vmem:[#allocation8 + $0x8e0] sm:$0xff]  ;;  %v1202_v7 = vld [vmem:[#allocation8 + $0x8f0] sm:$0xff] }
 0x327   : > { %3501 = vmatpush1.bf16.msra.mxu0 %v3500_v12  ;;  %v1175_v12 = vld [vmem:[#allocation8 + $0x818] sm:$0xff] }
 0x328   : > { %3503 = vmatprep.subr.bf16.mxu0 %v3502_v13  ;;  %v3532_v13 = vpack.c.bf16 %v1170_v10, %v1168_v9  ;;  %v3534_v14 = vpack.c.bf16 %v1175_v12, %v1173_v11  ;;  %v1229_v9 = vsel %vm1225_vm8, %v1224_v59, %v1222_v62  ;;  %v1454_v59 = vld [vmem:[#allocation8 + $0xba8] sm:$0xff]  ;;  %v1456_v62 = vld [vmem:[#allocation8 + $0xbb8] sm:$0xff] }
 0x329   : > { %v1233_v11 = vsel %vm1220_vm9, %v1229_v9, 0.0  ;;  %v1875_v9 = vld [vmem:[#allocation8 + $0xf60] sm:$0xff] }
 0x32b   : > { %3505 = vmatpush1.bf16.msra.mxu0 %v3504_v21  ;;  %v1179_v21 = vld [vmem:[#allocation8 + $0x838] sm:$0xff] }
 0x32c   : > { %3507 = vmatprep.subr.bf16.mxu0 %v3506_v23  ;;  %v3536_v23 = vpack.c.bf16 %v1174_v18, %v1172_v17  ;;  %v3538_v24 = vpack.c.bf16 %v1179_v21, %v1177_v20  ;;  %v1449_v18 = vld [vmem:[#allocation8 + $0xb80] sm:$0xff]  ;;  %v1451_v20 = vld [vmem:[#allocation8 + $0xb90] sm:$0xff] }
 0x32d   : > { %v3600_v21 = vpack.c.bf16 %v1451_v20, %v1449_v18 }
 0x32f   : > { %3509 = vmatpush1.bf16.msra.mxu0 %v3508_v31  ;;  %v1183_v31 = vld [vmem:[#allocation8 + $0x858] sm:$0xff] }
 0x330   : > { %3511 = vmatprep.subr.bf16.mxu0 %v3510_v32  ;;  %v3540_v32 = vpack.c.bf16 %v1178_v28, %v1176_v25  ;;  %v3542_v48 = vpack.c.bf16 %v1183_v31, %v1181_v30  ;;  %v1455_v25 = vld [vmem:[#allocation8 + $0xbb0] sm:$0xff]  ;;  %v1458_v30 = vld [vmem:[#allocation8 + $0xbc8] sm:$0xff]  ;;  %v1460_v31 = vld [vmem:[#allocation8 + $0xbd8] sm:$0xff] }
 0x333   : > { %3513 = vmatpush1.bf16.msra.mxu0 %v3512_v36  ;;  %v1187_v36 = vld [vmem:[#allocation8 + $0x878] sm:$0xff] }
 0x334   : > { %3515 = vmatprep.subr.bf16.mxu0 %v3514_v38  ;;  %v3544_v38 = vpack.c.bf16 %v1182_v35, %v1180_v34  ;;  %v3546_v39 = vpack.c.bf16 %v1187_v36, %v1185_v3  ;;  %v1459_v34 = vld [vmem:[#allocation8 + $0xbd0] sm:$0xff]  ;;  %v1462_v3 = vld [vmem:[#allocation8 + $0xbe8] sm:$0xff]  ;;  %v1464_v36 = vld [vmem:[#allocation8 + $0xbf8] sm:$0xff] }
 0x337   : > { %3517 = vmatpush1.bf16.msra.mxu0 %v3516_v42  ;;  %v1191_v42 = vld [vmem:[#allocation8 + $0x898] sm:$0xff] }
 0x338   : > { %3519 = vmatprep.subr.bf16.mxu0 %v3518_v43  ;;  %v3548_v43 = vpack.c.bf16 %v1186_v40, %v1184_v60  ;;  %v3550_v44 = vpack.c.bf16 %v1191_v42, %v1189_v41  ;;  %v1463_v60 = vld [vmem:[#allocation8 + $0xbf0] sm:$0xff]  ;;  %v1563_v41 = vld [vmem:[#allocation8 + $0x908] sm:$0xff]  ;;  %v1565_v42 = vld [vmem:[#allocation8 + $0x918] sm:$0xff] }
 0x33a   : > { %3219 = vmatmul.mubr.msk.f32.vlgmr.msra.gmra.mrb[4].mxu0 %vm1204_vm7, %v1213_v54  ;;  %v1199_v54 = vld [vmem:[#allocation8 + $0x8d8] sm:$0xff] }
 0x33b   : > { %3220 = vmatprep.mubr.msk.f32.mxu0 %vm568_vm1, %v1212_v57  ;;  %3521 = vmatpush1.bf16.msra.mxu0 %v3520_v50  ;;  %v3554_v50 = vpack.c.bf16 %v1195_v29, %v1193_v26  ;;  %v3558_v56 = vpack.c.bf16 %v1199_v54, %v1197_v53  ;;  %v1196_v57 = vld [vmem:[#allocation8 + $0x8c0] sm:$0xff]  ;;  %v1865_v29 = vld [vmem:[#allocation8 + $0xf10] sm:$0xff] }
 0x33c   : > { %3523 = vmatprep.subr.bf16.mxu0 %v3522_v51  ;;  %v1192_v51 = vld [vmem:[#allocation8 + $0x8a0] sm:$0xff]  ;;  %v1869_v54 = vld [vmem:[#allocation8 + $0xf30] sm:$0xff] }
 0x33d   : > { %v3556_v55 = vpack.c.bf16 %v1194_v52, %v1192_v51  ;;  %v3712_v51 = vpack.c.bf16 %v1865_v29, %v1863_v47  ;;  %v1867_v53 = vld [vmem:[#allocation8 + $0xf20] sm:$0xff]  ;;  %v1567_v47 = vld [vmem:[#allocation8 + $0x928] sm:$0xff] }
 0x33e   : > { %1311 = vmatmul.mubr.f32.gmra.mrb[6].mxu0 %v1211_v5 }
 0x33f   : > { %3525 = vmatpush1.bf16.msra.mxu0 %v3524_v61  ;;  %3221 = vmatprep.mubr.msk.f32.mxu0 %vm568_vm1, %v1227_v58  ;;  %v1198_v61 = vld [vmem:[#allocation8 + $0x8d0] sm:$0xff]  ;;  %v3564_v58 = vpack.c.bf16 %v1202_v7, %v1200_v6  ;;  %v1878_v6 = vld [vmem:[#allocation8 + $0xf78] sm:$0xff] }
 0x340   : > { %3527 = vmatprep.subr.bf16.mxu0 %v3526_v63  ;;  %v1201_v63 = vld [vmem:[#allocation8 + $0x8e8] sm:$0xff]  ;;  %v3560_v4 = vpack.c.bf16 %v1198_v61, %v1196_v57  ;;  %v1011_v57 = vld [vmem:[#allocation10 + $0x2] sm:$0x3]  ;;  %v3716_v61 = vpack.c.bf16 %v1869_v54, %v1867_v53  ;;  %v1893_v54 = vld [vmem:[#allocation8 + $0xff0] sm:$0xff] }
 0x341   : > { %v3562_v5 = vpack.c.bf16 %v1203_v1, %v1201_v63  ;;  %v1871_v1 = vld [vmem:[#allocation8 + $0xf40] sm:$0xff]  ;;  %v1016_v7 = vrot.slane %v1011_v57, %v4951_v27 }
 0x342   : > { %v1891_v53 = vld [vmem:[#allocation8 + $0xfe0] sm:$0xff] }
 0x343   : > { %3529 = vmatpush1.bf16.msra.mxu0 %v3528_v37  ;;  %v1223_v37 = vrot.slane %v5039_v33, 2 }
 0x344   : > { %3531 = vmatprep.subr.bf16.mxu0 %v3530_v8  ;;  %v1221_v8 = vrot.slane %v5030_v19, 2 }
 0x346   : > { %v1226_v10 = vsel %vm1225_vm8, %v1221_v8, %v1223_v37  ;;  %v1228_v12 = vsel %vm1225_vm8, %v1223_v37, %v1221_v8 }
 0x347   : > { %3533 = vmatpush1.bf16.msra.mxu0 %v3532_v13  ;;  %v1450_v13 = vld [vmem:[#allocation8 + $0xb88] sm:$0xff] }
 0x348   : > { %3535 = vmatprep.subr.bf16.mxu0 %v3534_v14  ;;  %v1452_v14 = vld [vmem:[#allocation8 + $0xb98] sm:$0xff] }
 0x349   : > { %v3598_v17 = vpack.c.bf16 %v1452_v14, %v1450_v13  ;;  %v1882_v13 = vld [vmem:[#allocation8 + $0xf98] sm:$0xff] }
 0x34b   : > { %3537 = vmatpush1.bf16.msra.mxu0 %v3536_v23  ;;  %3599 = vmatprep.subr.bf16.mxu1 %v3598_v17  ;;  %v3602_v23 = vpack.c.bf16 %v1456_v62, %v1454_v59  ;;  %v1879_v59 = vld [vmem:[#allocation8 + $0xf80] sm:$0xff]  ;;  %v1881_v62 = vld [vmem:[#allocation8 + $0xf90] sm:$0xff] }
 0x34c   : > { %3539 = vmatprep.subr.bf16.mxu0 %v3538_v24  ;;  %3601 = vmatpush1.bf16.msra.mxu1 %v3600_v21  ;;  %v1453_v24 = vld [vmem:[#allocation8 + $0xba0] sm:$0xff] }
 0x34d   : > { %v3604_v28 = vpack.c.bf16 %v1455_v25, %v1453_v24  ;;  %3603 = vmatprep.subr.bf16.mxu1 %v3602_v23  ;;  %v1884_v24 = vld [vmem:[#allocation8 + $0xfa8] sm:$0xff]  ;;  %v1886_v25 = vld [vmem:[#allocation8 + $0xfb8] sm:$0xff] }
 0x34f   : > { %3541 = vmatpush1.bf16.msra.mxu0 %v3540_v32  ;;  %v3606_v32 = vpack.c.bf16 %v1460_v31, %v1458_v30 }
 0x350   : > { %3543 = vmatprep.subr.bf16.mxu0 %v3542_v48  ;;  %3605 = vmatpush1.bf16.msra.mxu1 %v3604_v28  ;;  %v1457_v48 = vld [vmem:[#allocation8 + $0xbc0] sm:$0xff] }
 0x351   : > { %v3608_v35 = vpack.c.bf16 %v1459_v34, %v1457_v48  ;;  %3607 = vmatprep.subr.bf16.mxu1 %v3606_v32  ;;  %v3728_v32 = vpack.c.bf16 %v1881_v62, %v1879_v59  ;;  %v3730_v48 = vpack.c.bf16 %v1886_v25, %v1884_v24  ;;  %v1883_v34 = vld [vmem:[#allocation8 + $0xfa0] sm:$0xff]  ;;  %v1580_v24 = vld [vmem:[#allocation8 + $0x990] sm:$0xff]  ;;  %v1583_v25 = vld [vmem:[#allocation8 + $0x9a8] sm:$0xff] }
 0x353   : > { %3545 = vmatpush1.bf16.msra.mxu0 %v3544_v38  ;;  %v1461_v38 = vld [vmem:[#allocation8 + $0xbe0] sm:$0xff] }
 0x354   : > { %3547 = vmatprep.subr.bf16.mxu0 %v3546_v39  ;;  %v3610_v39 = vpack.c.bf16 %v1464_v36, %v1462_v3  ;;  %3609 = vmatpush1.bf16.msra.mxu1 %v3608_v35  ;;  %v3612_v40 = vpack.c.bf16 %v1463_v60, %v1461_v38  ;;  %v1885_v35 = vld [vmem:[#allocation8 + $0xfb0] sm:$0xff]  ;;  %v1888_v3 = vld [vmem:[#allocation8 + $0xfc8] sm:$0xff]  ;;  %v1890_v36 = vld [vmem:[#allocation8 + $0xfd8] sm:$0xff] }
 0x355   : > { %v3732_v38 = vpack.c.bf16 %v1885_v35, %v1883_v34  ;;  %v3734_v60 = vpack.c.bf16 %v1890_v36, %v1888_v3  ;;  %v1587_v34 = vld [vmem:[#allocation8 + $0x9c8] sm:$0xff]  ;;  %v1589_v35 = vld [vmem:[#allocation8 + $0x9d8] sm:$0xff] }
 0x356   : > { %3611 = vmatprep.subr.bf16.mxu1 %v3610_v39  ;;  %v1562_v39 = vld [vmem:[#allocation8 + $0x900] sm:$0xff]  ;;  %v3638_v36 = vpack.c.bf16 %v1589_v35, %v1587_v34  ;;  %v1622_v34 = vld [vmem:[#allocation8 + $0xc58] sm:$0xff] }
 0x357   : > { %3549 = vmatpush1.bf16.msra.mxu0 %v3548_v43  ;;  %v3614_v43 = vpack.c.bf16 %v1565_v42, %v1563_v41  ;;  %v1889_v41 = vld [vmem:[#allocation8 + $0xfd0] sm:$0xff] }
 0x358   : > { %3551 = vmatprep.subr.bf16.mxu0 %v3550_v44  ;;  %3613 = vmatpush1.bf16.msra.mxu1 %v3612_v40  ;;  %v1864_v44 = vld [vmem:[#allocation8 + $0xf08] sm:$0xff]  ;;  %v1887_v40 = vld [vmem:[#allocation8 + $0xfc0] sm:$0xff]  ;;  %v1564_v42 = vld [vmem:[#allocation8 + $0x910] sm:$0xff] }
 0x359   : > { %3615 = vmatprep.subr.bf16.mxu1 %v3614_v43  ;;  %v3710_v26 = vpack.c.bf16 %v1866_v46, %v1864_v44  ;;  %v1892_v43 = vld [vmem:[#allocation8 + $0xfe8] sm:$0xff]  ;;  %v1894_v44 = vld [vmem:[#allocation8 + $0xff8] sm:$0xff] }
 0x35b   : > { %3553 = vmatpush1.bf16.msra.mxu0 %v3552_v49  ;;  %v1868_v49 = vld [vmem:[#allocation8 + $0xf28] sm:$0xff] }
 0x35c   : > { %3555 = vmatprep.subr.bf16.mxu0 %v3554_v50  ;;  %v1870_v50 = vld [vmem:[#allocation8 + $0xf38] sm:$0xff] }
 0x35d   : > { %v3714_v52 = vpack.c.bf16 %v1870_v50, %v1868_v49  ;;  %v3736_v49 = vpack.c.bf16 %v1889_v41, %v1887_v40  ;;  %v1593_v40 = vld [vmem:[#allocation8 + $0x9f8] sm:$0xff] }
 0x35f   : > { %3557 = vmatpush1.bf16.msra.mxu0 %v3556_v55  ;;  %v1872_v55 = vld [vmem:[#allocation8 + $0xf48] sm:$0xff] }
 0x360   : > { %3559 = vmatprep.subr.bf16.mxu0 %v3558_v56  ;;  %v1874_v56 = vld [vmem:[#allocation8 + $0xf58] sm:$0xff] }
 0x361   : > { %v3718_v63 = vpack.c.bf16 %v1874_v56, %v1872_v55 }
 0x363   : > { %3561 = vmatpush1.bf16.msra.mxu0 %v3560_v4  ;;  %v1873_v4 = vld [vmem:[#allocation8 + $0xf50] sm:$0xff] }
 0x364   : > { %3563 = vmatprep.subr.bf16.mxu0 %v3562_v5  ;;  %v1876_v5 = vld [vmem:[#allocation8 + $0xf68] sm:$0xff]  ;;  %v3720_v37 = vpack.c.bf16 %v1873_v4, %v1871_v1  ;;  %v1573_v4 = vld [vmem:[#allocation8 + $0x958] sm:$0xff] }
 0x365   : > { %v3722_v8 = vpack.c.bf16 %v1878_v6, %v1876_v5  ;;  %v1571_v1 = vld [vmem:[#allocation8 + $0x948] sm:$0xff] }
 0x367   : > { %3565 = vmatpush1.bf16.msra.mxu0 %v3564_v58  ;;  %v1020_v58 = vrot.slane %v1011_v57, %v4948_v22  ;;  %v1566_v57 = vld [vmem:[#allocation8 + $0x920] sm:$0xff] }
 0x368   : > { %3711 = vmatprep.subr.bf16.mxu0 %v3710_v26  ;;  %v1569_v26 = vld [vmem:[#allocation8 + $0x938] sm:$0xff] }
 0x369   : > { %v3618_v56 = vpack.c.bf16 %v1569_v26, %v1567_v47  ;;  %v1597_v47 = vld [vmem:[#allocation8 + $0xa18] sm:$0xff] }
 0x36a   : > { %1392 = vmatmul.mubr.f32.vlgmr.msra.gmra.mrb[4].mxu0 %v1226_v10  ;;  %v1877_v10 = vld [vmem:[#allocation8 + $0xf70] sm:$0xff] }
 0x36b   : > { %3222 = vmatprep.mubr.msk.f32.mxu0 %vm568_vm1, %v1233_v11  ;;  %3713 = vmatpush1.bf16.msra.mxu0 %v3712_v51  ;;  %v3724_v20 = vpack.c.bf16 %v1877_v10, %v1875_v9  ;;  %v3616_v51 = vpack.c.bf16 %v1564_v42, %v1562_v39  ;;  %v1575_v10 = vld [vmem:[#allocation8 + $0x968] sm:$0xff]  ;;  %v1588_v39 = vld [vmem:[#allocation8 + $0x9d0] sm:$0xff] }
 0x36c   : > { %3715 = vmatprep.subr.bf16.mxu0 %v3714_v52  ;;  %v3738_v52 = vpack.c.bf16 %v1894_v44, %v1892_v43  ;;  %v1590_v43 = vld [vmem:[#allocation8 + $0x9e0] sm:$0xff]  ;;  %v1592_v44 = vld [vmem:[#allocation8 + $0x9f0] sm:$0xff] }
 0x36d   : > { %v3644_v26 = vpack.c.bf16 %v1592_v44, %v1590_v43  ;;  %v1625_v43 = vld [vmem:[#allocation8 + $0xc70] sm:$0xff]  ;;  %v1628_v44 = vld [vmem:[#allocation8 + $0xc88] sm:$0xff] }
 0x36e   : > { %3223 = vmatmul.mubr.msk.f32.gmra.mrb[6].mxu0 %vm1220_vm9, %v1228_v12  ;;  %v1880_v12 = vld [vmem:[#allocation8 + $0xf88] sm:$0xff] }
 0x36f   : > { %3717 = vmatpush1.bf16.msra.mxu0 %v3716_v61  ;;  %v3726_v21 = vpack.c.bf16 %v1882_v13, %v1880_v12  ;;  %v1568_v61 = vld [vmem:[#allocation8 + $0x930] sm:$0xff] }
 0x370   : > { %3719 = vmatprep.subr.bf16.mxu0 %v3718_v63 }
 0x373   : > { %3721 = vmatpush1.bf16.msra.mxu0 %v3720_v37  ;;  %v1570_v37 = vld [vmem:[#allocation8 + $0x940] sm:$0xff] }
 0x374   : > { %3723 = vmatprep.subr.bf16.mxu0 %v3722_v8  ;;  %v1572_v8 = vld [vmem:[#allocation8 + $0x950] sm:$0xff] }
 0x375   : > { %v3624_v12 = vpack.c.bf16 %v1572_v8, %v1570_v37  ;;  %v1609_v37 = vld [vmem:[#allocation8 + $0xa78] sm:$0xff] }
 0x377   : > { %3725 = vmatpush1.bf16.msra.mxu0 %v3724_v20  ;;  %v1579_v20 = vld [vmem:[#allocation8 + $0x988] sm:$0xff] }
 0x378   : > { %3727 = vmatprep.subr.bf16.mxu0 %v3726_v21  ;;  %v1581_v21 = vld [vmem:[#allocation8 + $0x998] sm:$0xff] }
 0x379   : > { %v3630_v62 = vpack.c.bf16 %v1581_v21, %v1579_v20  ;;  %v1611_v20 = vld [vmem:[#allocation8 + $0xc00] sm:$0xff]  ;;  %v1613_v21 = vld [vmem:[#allocation8 + $0xc10] sm:$0xff] }
 0x37b   : > { %3729 = vmatpush1.bf16.msra.mxu0 %v3728_v32  ;;  %v1582_v32 = vld [vmem:[#allocation8 + $0x9a0] sm:$0xff] }
 0x37c   : > { %3731 = vmatprep.subr.bf16.mxu0 %v3730_v48  ;;  %v1584_v48 = vld [vmem:[#allocation8 + $0x9b0] sm:$0xff] }
 0x37d   : > { %v3636_v3 = vpack.c.bf16 %v1584_v48, %v1582_v32  ;;  %v1620_v48 = vld [vmem:[#allocation8 + $0xc48] sm:$0xff] }
 0x37f   : > { %3733 = vmatpush1.bf16.msra.mxu0 %v3732_v38  ;;  %v1586_v38 = vld [vmem:[#allocation8 + $0x9c0] sm:$0xff] }
 0x380   : > { %3735 = vmatprep.subr.bf16.mxu0 %v3734_v60  ;;  %v1591_v60 = vld [vmem:[#allocation8 + $0x9e8] sm:$0xff]  ;;  %v3640_v41 = vpack.c.bf16 %v1588_v39, %v1586_v38  ;;  %v1619_v38 = vld [vmem:[#allocation8 + $0xc40] sm:$0xff]  ;;  %v1621_v39 = vld [vmem:[#allocation8 + $0xc50] sm:$0xff] }
 0x381   : > { %v3642_v42 = vpack.c.bf16 %v1593_v40, %v1591_v60  ;;  %v1624_v40 = vld [vmem:[#allocation8 + $0xc68] sm:$0xff] }
 0x383   : > { %3737 = vmatpush1.bf16.msra.mxu0 %v3736_v49  ;;  %v1594_v49 = vld [vmem:[#allocation8 + $0xa00] sm:$0xff] }
 0x384   : > { %3739 = vmatprep.subr.bf16.mxu0 %v3738_v52  ;;  %v1599_v52 = vld [vmem:[#allocation8 + $0xa28] sm:$0xff] }
 0x43d   : > { %v1393_v11 = vpop.f32.mrb[4].mxu0 }
 0x43e   : > { %v4086_v14 = vadd.f32 %v1393_v11, %v1016_v7  ;;  %v1395_v17 = vpop.f32.mrb[5].mxu0  ;;  %v1577_v11 = vld [vmem:[#allocation8 + $0x978] sm:$0xff] }
 0x43f   : > { %v4087_v18 = vadd.f32 %v1395_v17, %v1020_v58  ;;  %v1574_v17 = vld [vmem:[#allocation8 + $0x960] sm:$0xff] }
 0x440   : > { %4256 = vtanh.f32 %v4086_v14  ;;  %v3626_v14 = vpack.c.bf16 %v1577_v11, %v1575_v10  ;;  %v1606_v11 = vld [vmem:[#allocation8 + $0xa60] sm:$0xff] }
 0x441   : > { %4258 = vtanh.f32 %v4087_v18  ;;  %v1399_v23 = vpop.f32.mrb[6].mxu0  ;;  %v1576_v18 = vld [vmem:[#allocation8 + $0x970] sm:$0xff] }
 0x442   : > { %v4088_v28 = vadd.f32 %v1399_v23, %v1016_v7  ;;  %v1401_v30 = vpop.f32.mrb[7].mxu0  ;;  %v3628_v59 = vpack.c.bf16 %v1576_v18, %v1574_v17  ;;  %v1578_v23 = vld [vmem:[#allocation8 + $0x980] sm:$0xff] }
 0x443   : > { %v4089_v31 = vadd.f32 %v1401_v30, %v1020_v58  ;;  %v3622_v58 = vpack.c.bf16 %v1573_v4, %v1571_v1  ;;  %v3632_v30 = vpack.c.bf16 %v1580_v24, %v1578_v23  ;;  %v1605_v1 = vld [vmem:[#allocation8 + $0xa58] sm:$0xff] }
 0x444   : > { %4260 = vtanh.f32 %v4088_v28  ;;  %v1585_v28 = vld [vmem:[#allocation8 + $0x9b8] sm:$0xff] }
 0x445   : > { %4262 = vtanh.f32 %v4089_v31  ;;  %v3634_v31 = vpack.c.bf16 %v1585_v28, %v1583_v25  ;;  %v1618_v23 = vld [vmem:[#allocation8 + $0xc38] sm:$0xff]  ;;  %v3664_v25 = vpack.c.bf16 %v1613_v21, %v1611_v20  ;;  %v1648_v20 = vld [vmem:[#allocation8 + $0xd28] sm:$0xff] }
 0x446   : > { %v1650_v21 = vld [vmem:[#allocation8 + $0xd38] sm:$0xff] }
 0x44a   : > { %v4257_v46 = vpop.eup %4256 }
 0x44b   : > { %v4259_v29 = vpop.eup %4258  ;;  %v5102_v55 = vadd.f32 %v4257_v46, %v5030_v19  ;;  %v3620_v19 = vpack.c.bf16 %v1568_v61, %v1566_v57  ;;  %v1595_v46 = vld [vmem:[#allocation8 + $0xa08] sm:$0xff]  ;;  %v1598_v57 = vld [vmem:[#allocation8 + $0xa20] sm:$0xff]  ;;  %v1600_v61 = vld [vmem:[#allocation8 + $0xa30] sm:$0xff] }
 0x44c   : > { %v5099_v50 = vadd.f32 %v4259_v29, %v5027_v16  ;;  %v3740_v16 = vpack.c.bf16 %v1893_v54, %v1891_v53  ;;  %v3646_v29 = vpack.c.bf16 %v1597_v47, %v1595_v46  ;;  %v1601_v53 = vld [vmem:[#allocation8 + $0xa38] sm:$0xff]  ;;  %v3652_v4 = vpack.c.bf16 %v1600_v61, %v1598_v57  ;;  %v1636_v57 = vld [vmem:[#allocation8 + $0xcc8] sm:$0xff] }
 0x44d   : > { %v1661_v24 = vrot.slane %v5102_v55, 4  ;;  %v1630_v46 = vld [vmem:[#allocation8 + $0xc98] sm:$0xff] }
 0x44e   : > { %v4261_v63 = vpop.eup %4260  ;;  %3224 = vmatprep.mubr.msk.f32.mxu1 %vm568_vm1, %v5099_v50  ;;  %v1662_v9 = vrot.slane %v5099_v50, 4  ;;  %3741 = vmatpush1.bf16.msra.mxu0 %v3740_v16  ;;  %v1602_v16 = vld [vmem:[#allocation8 + $0xa40] sm:$0xff]  ;;  %v3678_v15 = vpack.c.bf16 %v1630_v46, %v1628_v44  ;;  %v1638_v61 = vld [vmem:[#allocation8 + $0xcd8] sm:$0xff]  ;;  %v1897_v46 = vld [vmem:[#allocation8 + $0x1010] sm:$0xff] }
 0x44f   : > { %v4263_v5 = vpop.eup %4262  ;;  %1549 = vmatmul.mubr.f32.vlgmr.msra.gmra.mrb[4].mxu1 %v5102_v55  ;;  %v5111_v7 = vadd.f32 %v4261_v63, %v5039_v33  ;;  %v1603_v63 = vld [vmem:[#allocation8 + $0xa48] sm:$0xff]  ;;  %v1895_v44 = vld [vmem:[#allocation8 + $0x1000] sm:$0xff] }
 0x450   : > { %3617 = vmatpush1.bf16.msra.mxu1 %v3616_v51  ;;  %v5108_v6 = vadd.f32 %v4263_v5, %v5036_v45  ;;  %v1596_v51 = vld [vmem:[#allocation8 + $0xa10] sm:$0xff]  ;;  %v3654_v5 = vpack.c.bf16 %v1605_v1, %v1603_v63  ;;  %v3686_v1 = vpack.c.bf16 %v1638_v61, %v1636_v57  ;;  %v1910_v57 = vld [vmem:[#allocation8 + $0x1078] sm:$0xff]  ;;  %v1907_v61 = vld [vmem:[#allocation8 + $0x1060] sm:$0xff] }
 0x451   : > { %3619 = vmatprep.subr.bf16.mxu1 %v3618_v56  ;;  %v3648_v54 = vpack.c.bf16 %v1596_v51, %v1594_v49  ;;  %v3650_v56 = vpack.c.bf16 %v1601_v53, %v1599_v52  ;;  %v1632_v49 = vld [vmem:[#allocation8 + $0xca8] sm:$0xff]  ;;  %v1634_v51 = vld [vmem:[#allocation8 + $0xcb8] sm:$0xff] }
 0x452   : > { %3225 = vmatprep.mubr.msk.f32.mxu1 %vm568_vm1, %v5108_v6  ;;  %v1664_v45 = vrot.slane %v5108_v6, 4  ;;  %v3682_v53 = vpack.c.bf16 %v1634_v51, %v1632_v49  ;;  %v1901_v49 = vld [vmem:[#allocation8 + $0x1030] sm:$0xff]  ;;  %v1906_v51 = vld [vmem:[#allocation8 + $0x1058] sm:$0xff] }
 0x453   : > { %1555 = vmatmul.mubr.f32.gmra.mrb[6].mxu1 %v5111_v7 }
 0x454   : > { %3621 = vmatpush1.bf16.msra.mxu1 %v3620_v19  ;;  %v5126_v33 = vsel %vm1665_vm10, %v1664_v45, %v1662_v9  ;;  %v1604_v19 = vld [vmem:[#allocation8 + $0xa50] sm:$0xff]  ;;  %v1667_v35 = vsel %vm1665_vm10, %v1662_v9, %v1664_v45  ;;  %v3672_v9 = vpack.c.bf16 %v1621_v39, %v1619_v38  ;;  %v1655_v39 = vld [vmem:[#allocation8 + $0xd60] sm:$0xff] }
 0x455   : > { %3623 = vmatprep.subr.bf16.mxu1 %v3622_v58  ;;  %v1671_v13 = vsel %vm1659_vm11, %v5126_v33, 0.0  ;;  %v1607_v58 = vld [vmem:[#allocation8 + $0xa68] sm:$0xff]  ;;  %v3656_v8 = vpack.c.bf16 %v1604_v19, %v1602_v16  ;;  %v1642_v19 = vld [vmem:[#allocation8 + $0xcf8] sm:$0xff] }
 0x456   : > { %3226 = vmatprep.mubr.msk.f32.mxu1 %vm568_vm1, %v1671_v13  ;;  %v3658_v10 = vpack.c.bf16 %v1609_v37, %v1607_v58  ;;  %v1612_v13 = vld [vmem:[#allocation8 + $0xc08] sm:$0xff] }
 0x457   : > { %v1640_v16 = vld [vmem:[#allocation8 + $0xce8] sm:$0xff] }
 0x458   : > { %3625 = vmatpush1.bf16.msra.mxu1 %v3624_v12  ;;  %v1608_v12 = vld [vmem:[#allocation8 + $0xa70] sm:$0xff]  ;;  %v3690_v37 = vpack.c.bf16 %v1642_v19, %v1640_v16  ;;  %v2011_v16 = vld [vmem:[#allocation8 + $0xd98] sm:$0xff] }
 0x459   : > { %3627 = vmatprep.subr.bf16.mxu1 %v3626_v14  ;;  %v1614_v14 = vld [vmem:[#allocation8 + $0xc18] sm:$0xff]  ;;  %v3660_v17 = vpack.c.bf16 %v1608_v12, %v1606_v11  ;;  %v1644_v11 = vld [vmem:[#allocation8 + $0xd08] sm:$0xff] }
 0x45a   : > { %v3662_v18 = vpack.c.bf16 %v1614_v14, %v1612_v13  ;;  %v1646_v12 = vld [vmem:[#allocation8 + $0xd18] sm:$0xff] }
 0x45b   : > { %v3694_v14 = vpack.c.bf16 %v1646_v12, %v1644_v11  ;;  %v2302_v11 = vld [vmem:[#allocation8 + $0x1390] sm:$0xff]  ;;  %v2305_v12 = vld [vmem:[#allocation8 + $0x13a8] sm:$0xff] }
 0x45c   : > { %3629 = vmatpush1.bf16.msra.mxu1 %v3628_v59  ;;  %v1663_v59 = vrot.slane %v5111_v7, 4 }
 0x45d   : > { %3631 = vmatprep.subr.bf16.mxu1 %v3630_v62  ;;  %v1616_v62 = vld [vmem:[#allocation8 + $0xc28] sm:$0xff] }
 0x45e   : > { %v3666_v28 = vpack.c.bf16 %v1618_v23, %v1616_v62  ;;  %v5136_v32 = vsel %vm1665_vm10, %v1663_v59, %v1661_v24  ;;  %v5150_v60 = vsel %vm1665_vm10, %v1661_v24, %v1663_v59  ;;  %v3698_v62 = vpack.c.bf16 %v1650_v21, %v1648_v20  ;;  %v1647_v23 = vld [vmem:[#allocation8 + $0xd20] sm:$0xff]  ;;  %v1649_v24 = vld [vmem:[#allocation8 + $0xd30] sm:$0xff]  ;;  %v2309_v21 = vld [vmem:[#allocation8 + $0x13c8] sm:$0xff] }
 0x45f   : > { %v2306_v20 = vld [vmem:[#allocation8 + $0x13b0] sm:$0xff] }
 0x460   : > { %3633 = vmatpush1.bf16.msra.mxu1 %v3632_v30  ;;  %v1615_v30 = vld [vmem:[#allocation8 + $0xc20] sm:$0xff] }
 0x461   : > { %3635 = vmatprep.subr.bf16.mxu1 %v3634_v31  ;;  %v1617_v31 = vld [vmem:[#allocation8 + $0xc30] sm:$0xff] }
 0x464   : > { %3637 = vmatpush1.bf16.msra.mxu1 %v3636_v3  ;;  %v3668_v3 = vpack.c.bf16 %v1617_v31, %v1615_v30  ;;  %v3700_v30 = vpack.c.bf16 %v1649_v24, %v1647_v23 }
 0x465   : > { %3639 = vmatprep.subr.bf16.mxu1 %v3638_v36  ;;  %v3670_v36 = vpack.c.bf16 %v1622_v34, %v1620_v48  ;;  %v1651_v48 = vld [vmem:[#allocation8 + $0xd40] sm:$0xff]  ;;  %v1653_v34 = vld [vmem:[#allocation8 + $0xd50] sm:$0xff] }
 0x468   : > { %3641 = vmatpush1.bf16.msra.mxu1 %v3640_v41  ;;  %v1626_v41 = vld [vmem:[#allocation8 + $0xc78] sm:$0xff] }
 0x469   : > { %3643 = vmatprep.subr.bf16.mxu1 %v3642_v42  ;;  %v3674_v45 = vpack.c.bf16 %v1626_v41, %v1624_v40  ;;  %v1623_v42 = vld [vmem:[#allocation8 + $0xc60] sm:$0xff]  ;;  %v1657_v40 = vld [vmem:[#allocation8 + $0xd70] sm:$0xff] }
 0x46a   : > { %v3676_v47 = vpack.c.bf16 %v1625_v43, %v1623_v42  ;;  %v3708_v41 = vpack.c.bf16 %v1657_v40, %v1655_v39  ;;  %v1898_v42 = vld [vmem:[#allocation8 + $0x1018] sm:$0xff]  ;;  %v2317_v40 = vld [vmem:[#allocation8 + $0x1408] sm:$0xff] }
 0x46c   : > { %3645 = vmatpush1.bf16.msra.mxu1 %v3644_v26  ;;  %v1627_v26 = vld [vmem:[#allocation8 + $0xc80] sm:$0xff] }
 0x46d   : > { %3647 = vmatprep.subr.bf16.mxu1 %v3646_v29  ;;  %v1629_v29 = vld [vmem:[#allocation8 + $0xc90] sm:$0xff] }
 0x46e   : > { %v3680_v52 = vpack.c.bf16 %v1629_v29, %v1627_v26  ;;  %v1902_v26 = vld [vmem:[#allocation8 + $0x1038] sm:$0xff] }
 0x470   : > { %3649 = vmatpush1.bf16.msra.mxu1 %v3648_v54  ;;  %v1631_v54 = vld [vmem:[#allocation8 + $0xca0] sm:$0xff] }
 0x471   : > { %3651 = vmatprep.subr.bf16.mxu1 %v3650_v56  ;;  %v1633_v56 = vld [vmem:[#allocation8 + $0xcb0] sm:$0xff] }
 0x472   : > { %v3684_v63 = vpack.c.bf16 %v1633_v56, %v1631_v54  ;;  %v1908_v56 = vld [vmem:[#allocation8 + $0x1068] sm:$0xff] }
 0x474   : > { %3653 = vmatpush1.bf16.msra.mxu1 %v3652_v4  ;;  %v1635_v4 = vld [vmem:[#allocation8 + $0xcc0] sm:$0xff] }
 0x475   : > { %3655 = vmatprep.subr.bf16.mxu1 %v3654_v5  ;;  %v1637_v5 = vld [vmem:[#allocation8 + $0xcd0] sm:$0xff] }
 0x476   : > { %v3688_v58 = vpack.c.bf16 %v1637_v5, %v1635_v4  ;;  %v2009_v5 = vld [vmem:[#allocation8 + $0xd88] sm:$0xff] }
 0x477   : > { %v3758_v19 = vpack.c.bf16 %v2011_v16, %v2009_v5  ;;  %v2329_v5 = vld [vmem:[#allocation8 + $0x1468] sm:$0xff]  ;;  %v2331_v16 = vld [vmem:[#allocation8 + $0x1478] sm:$0xff] }
 0x478   : > { %3657 = vmatpush1.bf16.msra.mxu1 %v3656_v8  ;;  %v1639_v8 = vld [vmem:[#allocation8 + $0xce0] sm:$0xff] }
 0x479   : > { %3659 = vmatprep.subr.bf16.mxu1 %v3658_v10  ;;  %v1641_v10 = vld [vmem:[#allocation8 + $0xcf0] sm:$0xff] }
 0x47a   : > { %v3692_v13 = vpack.c.bf16 %v1641_v10, %v1639_v8  ;;  %v2300_v8 = vld [vmem:[#allocation8 + $0x1380] sm:$0xff] }
 0x47c   : > { %3661 = vmatpush1.bf16.msra.mxu1 %v3660_v17  ;;  %v1643_v17 = vld [vmem:[#allocation8 + $0xd00] sm:$0xff] }
 0x47d   : > { %3663 = vmatprep.subr.bf16.mxu1 %v3662_v18  ;;  %v1645_v18 = vld [vmem:[#allocation8 + $0xd10] sm:$0xff] }
 0x47e   : > { %v3696_v59 = vpack.c.bf16 %v1645_v18, %v1643_v17  ;;  %v2304_v18 = vld [vmem:[#allocation8 + $0x13a0] sm:$0xff] }
 0x47f   : > { %3227 = vmatmul.mubr.msk.f32.vlgmr.msra.gmra.mrb[4].mxu1 %vm1659_vm11, %v5136_v32  ;;  %v3860_v23 = vpack.c.bf16 %v2306_v20, %v2304_v18 }
 0x480   : > { %3228 = vmatprep.mubr.msk.f32.mxu1 %vm568_vm1, %v1667_v35  ;;  %3665 = vmatpush1.bf16.msra.mxu1 %v3664_v25  ;;  %v1652_v25 = vld [vmem:[#allocation8 + $0xd48] sm:$0xff] }
 0x481   : > { %3667 = vmatprep.subr.bf16.mxu1 %v3666_v28  ;;  %v1654_v28 = vld [vmem:[#allocation8 + $0xd58] sm:$0xff] }
 0x482   : > { %v3702_v31 = vpack.c.bf16 %v1654_v28, %v1652_v25  ;;  %v2308_v25 = vld [vmem:[#allocation8 + $0x13c0] sm:$0xff]  ;;  %v2310_v28 = vld [vmem:[#allocation8 + $0x13d0] sm:$0xff] }
 0x483   : > { %1757 = vmatmul.mubr.f32.gmra.mrb[6].mxu1 %v5150_v60 }
 0x484   : > { %3669 = vmatpush1.bf16.msra.mxu1 %v3668_v3  ;;  %3229 = vmatprep.mubr.msk.f32.mxu1 %vm568_vm1, %v1667_v35  ;;  %v1656_v35 = vld [vmem:[#allocation8 + $0xd68] sm:$0xff]  ;;  %v1658_v3 = vld [vmem:[#allocation8 + $0xd78] sm:$0xff] }
 0x485   : > { %3671 = vmatprep.subr.bf16.mxu1 %v3670_v36  ;;  %v3704_v36 = vpack.c.bf16 %v1653_v34, %v1651_v48  ;;  %v3706_v38 = vpack.c.bf16 %v1658_v3, %v1656_v35  ;;  %v3864_v35 = vpack.c.bf16 %v2310_v28, %v2308_v25 }
 0x488   : > { %3673 = vmatpush1.bf16.msra.mxu1 %v3672_v9  ;;  %v1679_v9 = vsel %vm1675_vm12, %v5126_v33, 0.0  ;;  %v1904_v33 = vld [vmem:[#allocation8 + $0x1048] sm:$0xff] }
 0x489   : > { %3675 = vmatprep.subr.bf16.mxu1 %v3674_v45  ;;  %v1896_v45 = vld [vmem:[#allocation8 + $0x1008] sm:$0xff] }
 0x48a   : > { %v3742_v43 = vpack.c.bf16 %v1898_v42, %v1896_v45 }
 0x48c   : > { %3677 = vmatpush1.bf16.msra.mxu1 %v3676_v47  ;;  %v3744_v47 = vpack.c.bf16 %v1897_v46, %v1895_v44  ;;  %3743 = vmatprep.subr.bf16.mxu0 %v3742_v43  ;;  %v2316_v46 = vld [vmem:[#allocation8 + $0x1400] sm:$0xff] }
 0x48d   : > { %3679 = vmatprep.subr.bf16.mxu1 %v3678_v15  ;;  %v1900_v15 = vld [vmem:[#allocation8 + $0x1028] sm:$0xff] }
 0x48e   : > { %3745 = vmatpush1.bf16.msra.mxu0 %v3744_v47  ;;  %v3746_v29 = vpack.c.bf16 %v1902_v26, %v1900_v15  ;;  %v2318_v47 = vld [vmem:[#allocation8 + $0x1410] sm:$0xff]  ;;  %v2321_v26 = vld [vmem:[#allocation8 + $0x1428] sm:$0xff] }
 0x490   : > { %3681 = vmatpush1.bf16.msra.mxu1 %v3680_v52  ;;  %3747 = vmatprep.subr.bf16.mxu0 %v3746_v29  ;;  %v3750_v52 = vpack.c.bf16 %v1906_v51, %v1904_v33  ;;  %v2323_v29 = vld [vmem:[#allocation8 + $0x1438] sm:$0xff]  ;;  %v3872_v33 = vpack.c.bf16 %v2318_v47, %v2316_v46 }
 0x491   : > { %3683 = vmatprep.subr.bf16.mxu1 %v3682_v53  ;;  %v1905_v53 = vld [vmem:[#allocation8 + $0x1050] sm:$0xff]  ;;  %v3874_v51 = vpack.c.bf16 %v2323_v29, %v2321_v26  ;;  %v2033_v29 = vld [vmem:[#allocation8 + $0xe48] sm:$0xff] }
 0x492   : > { %v2030_v26 = vld [vmem:[#allocation8 + $0xe30] sm:$0xff] }
 0x494   : > { %3685 = vmatpush1.bf16.msra.mxu1 %v3684_v63  ;;  %v3754_v63 = vpack.c.bf16 %v1910_v57, %v1908_v56  ;;  %v2008_v57 = vld [vmem:[#allocation8 + $0xd80] sm:$0xff] }
 0x495   : > { %3687 = vmatprep.subr.bf16.mxu1 %v3686_v1  ;;  %v1909_v1 = vld [vmem:[#allocation8 + $0x1070] sm:$0xff] }
 0x496   : > { %v3756_v4 = vpack.c.bf16 %v1909_v1, %v1907_v61  ;;  %v2326_v1 = vld [vmem:[#allocation8 + $0x1450] sm:$0xff] }
 0x498   : > { %3689 = vmatpush1.bf16.msra.mxu1 %v3688_v58  ;;  %v2301_v58 = vld [vmem:[#allocation8 + $0x1388] sm:$0xff] }
 0x499   : > { %3691 = vmatprep.subr.bf16.mxu1 %v3690_v37  ;;  %v2303_v37 = vld [vmem:[#allocation8 + $0x1398] sm:$0xff] }
 0x49a   : > { %v3854_v10 = vpack.c.bf16 %v2303_v37, %v2301_v58  ;;  %v2013_v58 = vld [vmem:[#allocation8 + $0xda8] sm:$0xff]  ;;  %v2015_v37 = vld [vmem:[#allocation8 + $0xdb8] sm:$0xff] }
 0x49b   : > { %v3762_v20 = vpack.c.bf16 %v2015_v37, %v2013_v58  ;;  %v2047_v58 = vld [vmem:[#allocation8 + $0xeb8] sm:$0xff] }
 0x49c   : > { %3693 = vmatpush1.bf16.msra.mxu1 %v3692_v13  ;;  %v2307_v13 = vld [vmem:[#allocation8 + $0x13b8] sm:$0xff] }
 0x49d   : > { %3695 = vmatprep.subr.bf16.mxu1 %v3694_v14  ;;  %v3856_v14 = vpack.c.bf16 %v2302_v11, %v2300_v8  ;;  %v3858_v17 = vpack.c.bf16 %v2307_v13, %v2305_v12  ;;  %v3882_v13 = vpack.c.bf16 %v2331_v16, %v2329_v5  ;;  %v2040_v5 = vld [vmem:[#allocation8 + $0xe80] sm:$0xff]  ;;  %v2042_v16 = vld [vmem:[#allocation8 + $0xe90] sm:$0xff] }
 0x49e   : > { %v3792_v37 = vpack.c.bf16 %v2042_v16, %v2040_v5  ;;  %v2084_v5 = vld [vmem:[#allocation8 + $0x1158] sm:$0xff] }
 0x4a0   : > { %3697 = vmatpush1.bf16.msra.mxu1 %v3696_v59  ;;  %v2311_v59 = vld [vmem:[#allocation8 + $0x13d8] sm:$0xff] }
 0x4a1   : > { %3699 = vmatprep.subr.bf16.mxu1 %v3698_v62  ;;  %v1466_v62 = vld [vmem:[#allocation10 + $0x4] sm:$0x3]  ;;  %v3862_v24 = vpack.c.bf16 %v2311_v59, %v2309_v21  ;;  %v2014_v59 = vld [vmem:[#allocation8 + $0xdb0] sm:$0xff] }
 0x4a2   : > { %v1471_v48 = vrot.slane %v1466_v62, %v4951_v27  ;;  %v1475_v34 = vrot.slane %v1466_v62, %v4948_v22  ;;  %v2012_v21 = vld [vmem:[#allocation8 + $0xda0] sm:$0xff] }
 0x4a4   : > { %3701 = vmatpush1.bf16.msra.mxu1 %v3700_v30  ;;  %v2313_v30 = vld [vmem:[#allocation8 + $0x13e8] sm:$0xff] }
 0x4a5   : > { %3703 = vmatprep.subr.bf16.mxu1 %v3702_v31  ;;  %v2315_v31 = vld [vmem:[#allocation8 + $0x13f8] sm:$0xff] }
 0x4a6   : > { %v3866_v3 = vpack.c.bf16 %v2315_v31, %v2313_v30 }
 0x4a8   : > { %3705 = vmatpush1.bf16.msra.mxu1 %v3704_v36  ;;  %v2312_v36 = vld [vmem:[#allocation8 + $0x13e0] sm:$0xff] }
 0x4a9   : > { %3707 = vmatprep.subr.bf16.mxu1 %v3706_v38  ;;  %v2314_v38 = vld [vmem:[#allocation8 + $0x13f0] sm:$0xff] }
 0x4aa   : > { %v3868_v43 = vpack.c.bf16 %v2314_v38, %v2312_v36  ;;  %v2020_v38 = vld [vmem:[#allocation8 + $0xde0] sm:$0xff] }
 0x4ac   : > { %3709 = vmatpush1.bf16.msra.mxu1 %v3708_v41  ;;  %v2319_v41 = vld [vmem:[#allocation8 + $0x1418] sm:$0xff] }
 0x4ad   : > { %3855 = vmatprep.subr.bf16.mxu1 %v3854_v10  ;;  %v3870_v44 = vpack.c.bf16 %v2319_v41, %v2317_v40  ;;  %v2027_v40 = vld [vmem:[#allocation8 + $0xe18] sm:$0xff] }
 0x4af   : > { %1838 = vmatmul.mubr.f32.vlgmr.msra.gmra.mrb[4].mxu1 %v5150_v60  ;;  %v3748_v60 = vpack.c.bf16 %v1901_v49, %v1899_v2 }
 0x4b0   : > { %3230 = vmatprep.mubr.msk.f32.mxu1 %vm568_vm1, %v1679_v9  ;;  %3857 = vmatpush1.bf16.msra.mxu1 %v3856_v14  ;;  %v2328_v14 = vld [vmem:[#allocation8 + $0x1460] sm:$0xff] }
 0x4b1   : > { %3749 = vmatpush1.bf16.msra.mxu0 %v3748_v60  ;;  %3859 = vmatprep.subr.bf16.mxu1 %v3858_v17  ;;  %v2330_v17 = vld [vmem:[#allocation8 + $0x1470] sm:$0xff] }
 0x4b2   : > { %3751 = vmatprep.subr.bf16.mxu0 %v3750_v52  ;;  %v2320_v52 = vld [vmem:[#allocation8 + $0x1420] sm:$0xff] }
 0x4b3   : > { %3231 = vmatmul.mubr.msk.f32.gmra.mrb[6].mxu1 %vm1675_vm12, %v5136_v32  ;;  %v1903_v32 = vld [vmem:[#allocation8 + $0x1040] sm:$0xff] }
 0x4b4   : > { %v3752_v54 = vpack.c.bf16 %v1905_v53, %v1903_v32  ;;  %3861 = vmatpush1.bf16.msra.mxu1 %v3860_v23  ;;  %v2322_v32 = vld [vmem:[#allocation8 + $0x1430] sm:$0xff]  ;;  %v2325_v53 = vld [vmem:[#allocation8 + $0x1448] sm:$0xff] }
 0x4b5   : > { %3863 = vmatprep.subr.bf16.mxu1 %v3862_v24  ;;  %v3876_v56 = vpack.c.bf16 %v2322_v32, %v2320_v52  ;;  %v2017_v23 = vld [vmem:[#allocation8 + $0xdc8] sm:$0xff]  ;;  %v2019_v24 = vld [vmem:[#allocation8 + $0xdd8] sm:$0xff] }
 0x4b6   : > { %3753 = vmatpush1.bf16.msra.mxu0 %v3752_v54  ;;  %v2327_v54 = vld [vmem:[#allocation8 + $0x1458] sm:$0xff]  ;;  %v3766_v31 = vpack.c.bf16 %v2019_v24, %v2017_v23  ;;  %v2037_v52 = vld [vmem:[#allocation8 + $0xe68] sm:$0xff] }
 0x4b7   : > { %3755 = vmatprep.subr.bf16.mxu0 %v3754_v63  ;;  %v3878_v61 = vpack.c.bf16 %v2327_v54, %v2325_v53  ;;  %v2324_v63 = vld [vmem:[#allocation8 + $0x1440] sm:$0xff]  ;;  %v2039_v32 = vld [vmem:[#allocation8 + $0xe78] sm:$0xff] }
 0x4b8   : > { %3865 = vmatpush1.bf16.msra.mxu1 %v3864_v35  ;;  %v3880_v10 = vpack.c.bf16 %v2326_v1, %v2324_v63  ;;  %v2021_v35 = vld [vmem:[#allocation8 + $0xde8] sm:$0xff]  ;;  %v3786_v54 = vpack.c.bf16 %v2039_v32, %v2037_v52  ;;  %v2043_v63 = vld [vmem:[#allocation8 + $0xe98] sm:$0xff]  ;;  %v2073_v32 = vld [vmem:[#allocation8 + $0x1100] sm:$0xff] }
 0x4b9   : > { %3867 = vmatprep.subr.bf16.mxu1 %v3866_v3  ;;  %v2023_v3 = vld [vmem:[#allocation8 + $0xdf8] sm:$0xff] }
 0x4ba   : > { %3757 = vmatpush1.bf16.msra.mxu0 %v3756_v4  ;;  %v2010_v4 = vld [vmem:[#allocation8 + $0xd90] sm:$0xff]  ;;  %v3770_v36 = vpack.c.bf16 %v2023_v3, %v2021_v35  ;;  %v2055_v23 = vld [vmem:[#allocation8 + $0xef8] sm:$0xff]  ;;  %v2057_v3 = vld [vmem:[#allocation8 + $0x1080] sm:$0xff] }
 0x4bb   : > { %3759 = vmatprep.subr.bf16.mxu0 %v3758_v19  ;;  %v3760_v12 = vpack.c.bf16 %v2010_v4, %v2008_v57  ;;  %v2038_v57 = vld [vmem:[#allocation8 + $0xe70] sm:$0xff] }
 0x4bc   : > { %3869 = vmatpush1.bf16.msra.mxu1 %v3868_v43  ;;  %v2029_v43 = vld [vmem:[#allocation8 + $0xe28] sm:$0xff] }
 0x4bd   : > { %3871 = vmatprep.subr.bf16.mxu1 %v3870_v44  ;;  %v2031_v44 = vld [vmem:[#allocation8 + $0xe38] sm:$0xff] }
 0x4be   : > { %v3778_v47 = vpack.c.bf16 %v2031_v44, %v2029_v43  ;;  %v2065_v44 = vld [vmem:[#allocation8 + $0x10c0] sm:$0xff] }
 0x4c0   : > { %3873 = vmatpush1.bf16.msra.mxu1 %v3872_v33  ;;  %v2032_v33 = vld [vmem:[#allocation8 + $0xe40] sm:$0xff] }
 0x4c1   : > { %3875 = vmatprep.subr.bf16.mxu1 %v3874_v51  ;;  %v2034_v51 = vld [vmem:[#allocation8 + $0xe50] sm:$0xff] }
 0x4c2   : > { %v3784_v53 = vpack.c.bf16 %v2034_v51, %v2032_v33  ;;  %v2076_v33 = vld [vmem:[#allocation8 + $0x1118] sm:$0xff] }
 0x4c4   : > { %3877 = vmatpush1.bf16.msra.mxu1 %v3876_v56  ;;  %v2036_v56 = vld [vmem:[#allocation8 + $0xe60] sm:$0xff] }
 0x4c5   : > { %3879 = vmatprep.subr.bf16.mxu1 %v3878_v61  ;;  %v2041_v61 = vld [vmem:[#allocation8 + $0xe88] sm:$0xff]  ;;  %v3788_v1 = vpack.c.bf16 %v2038_v57, %v2036_v56  ;;  %v2080_v56 = vld [vmem:[#allocation8 + $0x1138] sm:$0xff] }
 0x4c6   : > { %v3790_v4 = vpack.c.bf16 %v2043_v63, %v2041_v61  ;;  %v2077_v63 = vld [vmem:[#allocation8 + $0x1120] sm:$0xff] }
 0x4c8   : > { %3881 = vmatpush1.bf16.msra.mxu1 %v3880_v10  ;;  %v2044_v10 = vld [vmem:[#allocation8 + $0xea0] sm:$0xff] }
 0x4c9   : > { %3883 = vmatprep.subr.bf16.mxu1 %v3882_v13  ;;  %v2049_v13 = vld [vmem:[#allocation8 + $0xec8] sm:$0xff] }
 0x582   : > { %v1839_v39 = vpop.f32.mrb[4].mxu1 }
 0x583   : > { %v4090_v9 = vadd.f32 %v1839_v39, %v1471_v48  ;;  %v1841_v45 = vpop.f32.mrb[5].mxu1  ;;  %v2025_v39 = vld [vmem:[#allocation8 + $0xe08] sm:$0xff] }
 0x584   : > { %v4091_v42 = vadd.f32 %v1841_v45, %v1475_v34  ;;  %v2024_v45 = vld [vmem:[#allocation8 + $0xe00] sm:$0xff] }
 0x585   : > { %4264 = vtanh.f32 %v4090_v9  ;;  %v3774_v9 = vpack.c.bf16 %v2027_v40, %v2025_v39  ;;  %v2061_v40 = vld [vmem:[#allocation8 + $0x10a0] sm:$0xff] }
 0x586   : > { %4266 = vtanh.f32 %v4091_v42  ;;  %v1845_v15 = vpop.f32.mrb[6].mxu1  ;;  %v2026_v42 = vld [vmem:[#allocation8 + $0xe10] sm:$0xff] }
 0x587   : > { %v4092_v2 = vadd.f32 %v1845_v15, %v1471_v48  ;;  %v1847_v49 = vpop.f32.mrb[7].mxu1  ;;  %v2016_v48 = vld [vmem:[#allocation8 + $0xdc0] sm:$0xff]  ;;  %v3776_v46 = vpack.c.bf16 %v2026_v42, %v2024_v45  ;;  %v2068_v45 = vld [vmem:[#allocation8 + $0x10d8] sm:$0xff] }
 0x588   : > { %v4093_v60 = vadd.f32 %v1847_v49, %v1475_v34  ;;  %v2018_v34 = vld [vmem:[#allocation8 + $0xdd0] sm:$0xff]  ;;  %v2028_v15 = vld [vmem:[#allocation8 + $0xe20] sm:$0xff] }
 0x589   : > { %4268 = vtanh.f32 %v4092_v2  ;;  %v2035_v2 = vld [vmem:[#allocation8 + $0xe58] sm:$0xff]  ;;  %v3780_v49 = vpack.c.bf16 %v2030_v26, %v2028_v15 }
 0x58a   : > { %4270 = vtanh.f32 %v4093_v60  ;;  %v3782_v60 = vpack.c.bf16 %v2035_v2, %v2033_v29  ;;  %v2072_v15 = vld [vmem:[#allocation8 + $0x10f8] sm:$0xff]  ;;  %v2069_v2 = vld [vmem:[#allocation8 + $0x10e0] sm:$0xff] }
 0x58f   : > { %v4265_v19 = vpop.eup %4264 }
 0x590   : > { %v4267_v8 = vpop.eup %4266  ;;  %v5165_v18 = vadd.f32 %v4265_v19, %v5102_v55  ;;  %v3764_v55 = vpack.c.bf16 %v2014_v59, %v2012_v21  ;;  %v2045_v19 = vld [vmem:[#allocation8 + $0xea8] sm:$0xff]  ;;  %v2048_v21 = vld [vmem:[#allocation8 + $0xec0] sm:$0xff]  ;;  %v2050_v59 = vld [vmem:[#allocation8 + $0xed0] sm:$0xff] }
 0x591   : > { %v5162_v11 = vadd.f32 %v4267_v8, %v5099_v50  ;;  %v3884_v50 = vpack.c.bf16 %v2330_v17, %v2328_v14  ;;  %v3794_v8 = vpack.c.bf16 %v2047_v58, %v2045_v19  ;;  %v2051_v14 = vld [vmem:[#allocation8 + $0xed8] sm:$0xff]  ;;  %v3800_v24 = vpack.c.bf16 %v2050_v59, %v2048_v21  ;;  %v2081_v58 = vld [vmem:[#allocation8 + $0x1140] sm:$0xff] }
 0x592   : > { %v2092_v21 = vld [vmem:[#allocation8 + $0x1198] sm:$0xff] }
 0x593   : > { %v4269_v62 = vpop.eup %4268  ;;  %3232 = vmatprep.mubr.msk.f32.mxu0 %vm568_vm1, %v5162_v11  ;;  %3885 = vmatpush1.bf16.msra.mxu1 %v3884_v50  ;;  %v2052_v50 = vld [vmem:[#allocation8 + $0xee0] sm:$0xff] }
 0x594   : > { %v4271_v25 = vpop.eup %4270  ;;  %1995 = vmatmul.mubr.f32.vlgmr.msra.gmra.mrb[8].mxu0 %v5165_v18  ;;  %v5174_v30 = vadd.f32 %v4269_v62, %v5111_v7  ;;  %v2022_v7 = vld [vmem:[#allocation8 + $0xdf0] sm:$0xff]  ;;  %v2053_v62 = vld [vmem:[#allocation8 + $0xee8] sm:$0xff] }
 0x595   : > { %3761 = vmatpush1.bf16.msra.mxu0 %v3760_v12  ;;  %v5171_v28 = vadd.f32 %v4271_v25, %v5108_v6  ;;  %v3768_v6 = vpack.c.bf16 %v2018_v34, %v2016_v48  ;;  %v3772_v41 = vpack.c.bf16 %v2022_v7, %v2020_v38  ;;  %v2046_v12 = vld [vmem:[#allocation8 + $0xeb0] sm:$0xff]  ;;  %v3802_v25 = vpack.c.bf16 %v2055_v23, %v2053_v62  ;;  %v2060_v48 = vld [vmem:[#allocation8 + $0x1098] sm:$0xff]  ;;  %v2089_v23 = vld [vmem:[#allocation8 + $0x1180] sm:$0xff] }
 0x596   : > { %3763 = vmatprep.subr.bf16.mxu0 %v3762_v20  ;;  %v3796_v17 = vpack.c.bf16 %v2046_v12, %v2044_v10  ;;  %v3798_v20 = vpack.c.bf16 %v2051_v14, %v2049_v13  ;;  %v2064_v38 = vld [vmem:[#allocation8 + $0x10b8] sm:$0xff]  ;;  %v2085_v14 = vld [vmem:[#allocation8 + $0x1160] sm:$0xff] }
 0x597   : > { %3233 = vmatprep.mubr.msk.f32.mxu0 %vm568_vm1, %v5171_v28  ;;  %v2088_v10 = vld [vmem:[#allocation8 + $0x1178] sm:$0xff] }
 0x598   : > { %2001 = vmatmul.mubr.f32.gmra.mrb[10].mxu0 %v5174_v30 }
 0x599   : > { %3765 = vmatpush1.bf16.msra.mxu0 %v3764_v55  ;;  %2187 = vmatprep.mubr.f32.mxu0 %v4605_v0  ;;  %v2054_v55 = vld [vmem:[#allocation8 + $0xef0] sm:$0xff] }
 0x59a   : > { %3767 = vmatprep.subr.bf16.mxu0 %v3766_v31  ;;  %v2058_v31 = vld [vmem:[#allocation8 + $0x1088] sm:$0xff]  ;;  %v3804_v34 = vpack.c.bf16 %v2054_v55, %v2052_v50  ;;  %v2096_v50 = vld [vmem:[#allocation8 + $0x11b8] sm:$0xff] }
 0x59b   : > { %v3806_v35 = vpack.c.bf16 %v2060_v48, %v2058_v31  ;;  %v2093_v48 = vld [vmem:[#allocation8 + $0x11a0] sm:$0xff] }
 0x59d   : > { %3769 = vmatpush1.bf16.msra.mxu0 %v3768_v6  ;;  %v2059_v6 = vld [vmem:[#allocation8 + $0x1090] sm:$0xff] }
 0x59e   : > { %3771 = vmatprep.subr.bf16.mxu0 %v3770_v36  ;;  %v2062_v36 = vld [vmem:[#allocation8 + $0x10a8] sm:$0xff]  ;;  %v3808_v7 = vpack.c.bf16 %v2059_v6, %v2057_v3  ;;  %v2100_v3 = vld [vmem:[#allocation8 + $0x11d8] sm:$0xff] }
 0x59f   : > { %v3810_v39 = vpack.c.bf16 %v2064_v38, %v2062_v36  ;;  %v2097_v38 = vld [vmem:[#allocation8 + $0x11c0] sm:$0xff] }
 0x5a1   : > { %3773 = vmatpush1.bf16.msra.mxu0 %v3772_v41  ;;  %v2063_v41 = vld [vmem:[#allocation8 + $0x10b0] sm:$0xff] }
 0x5a2   : > { %3775 = vmatprep.subr.bf16.mxu0 %v3774_v9  ;;  %v2066_v9 = vld [vmem:[#allocation8 + $0x10c8] sm:$0xff]  ;;  %v3812_v42 = vpack.c.bf16 %v2063_v41, %v2061_v40  ;;  %v2104_v40 = vld [vmem:[#allocation8 + $0x11f8] sm:$0xff] }
 0x5a3   : > { %v3814_v43 = vpack.c.bf16 %v2068_v45, %v2066_v9  ;;  %v2101_v45 = vld [vmem:[#allocation8 + $0x11e0] sm:$0xff] }
 0x5a5   : > { %3777 = vmatpush1.bf16.msra.mxu0 %v3776_v46  ;;  %v2067_v46 = vld [vmem:[#allocation8 + $0x10d0] sm:$0xff] }
 0x5a6   : > { %3779 = vmatprep.subr.bf16.mxu0 %v3778_v47  ;;  %v2070_v47 = vld [vmem:[#allocation8 + $0x10e8] sm:$0xff]  ;;  %v3816_v26 = vpack.c.bf16 %v2067_v46, %v2065_v44  ;;  %v2335_v46 = vld [vmem:[#allocation8 + $0x1498] sm:$0xff] }
 0x5a7   : > { %v3818_v29 = vpack.c.bf16 %v2072_v15, %v2070_v47  ;;  %v2333_v44 = vld [vmem:[#allocation8 + $0x1488] sm:$0xff]  ;;  %v2332_v15 = vld [vmem:[#allocation8 + $0x1480] sm:$0xff] }
 0x5a8   : > { %v3886_v47 = vpack.c.bf16 %v2335_v46, %v2333_v44  ;;  %v2475_v44 = vld [vmem:[#allocation8 + $0x18b0] sm:$0xff]  ;;  %v2478_v46 = vld [vmem:[#allocation8 + $0x18c8] sm:$0xff] }
 0x5a9   : > { %3781 = vmatpush1.bf16.msra.mxu0 %v3780_v49  ;;  %v2071_v49 = vld [vmem:[#allocation8 + $0x10f0] sm:$0xff] }
 0x5aa   : > { %3783 = vmatprep.subr.bf16.mxu0 %v3782_v60  ;;  %v2074_v60 = vld [vmem:[#allocation8 + $0x1108] sm:$0xff]  ;;  %v3820_v51 = vpack.c.bf16 %v2071_v49, %v2069_v2  ;;  %3887 = vmatprep.subr.bf16.mxu1 %v3886_v47  ;;  %v2339_v49 = vld [vmem:[#allocation8 + $0x14b8] sm:$0xff] }
 0x5ab   : > { %v3822_v52 = vpack.c.bf16 %v2076_v33, %v2074_v60  ;;  %v2337_v2 = vld [vmem:[#allocation8 + $0x14a8] sm:$0xff]  ;;  %v2336_v33 = vld [vmem:[#allocation8 + $0x14a0] sm:$0xff]  ;;  %v2480_v47 = vld [vmem:[#allocation8 + $0x18d8] sm:$0xff] }
 0x5ac   : > { %v3890_v60 = vpack.c.bf16 %v2339_v49, %v2337_v2  ;;  %v2479_v2 = vld [vmem:[#allocation8 + $0x18d0] sm:$0xff]  ;;  %v2482_v49 = vld [vmem:[#allocation8 + $0x18e8] sm:$0xff] }
 0x5ad   : > { %3785 = vmatpush1.bf16.msra.mxu0 %v3784_v53  ;;  %v2075_v53 = vld [vmem:[#allocation8 + $0x1110] sm:$0xff] }
 0x5ae   : > { %3787 = vmatprep.subr.bf16.mxu0 %v3786_v54  ;;  %v2078_v54 = vld [vmem:[#allocation8 + $0x1128] sm:$0xff]  ;;  %v3824_v57 = vpack.c.bf16 %v2075_v53, %v2073_v32  ;;  %v2343_v53 = vld [vmem:[#allocation8 + $0x14d8] sm:$0xff] }
 0x5af   : > { %v3826_v61 = vpack.c.bf16 %v2080_v56, %v2078_v54  ;;  %v2341_v32 = vld [vmem:[#allocation8 + $0x14c8] sm:$0xff]  ;;  %v2342_v56 = vld [vmem:[#allocation8 + $0x14d0] sm:$0xff] }
 0x5b0   : > { %v3894_v54 = vpack.c.bf16 %v2343_v53, %v2341_v32  ;;  %v2483_v32 = vld [vmem:[#allocation8 + $0x18f0] sm:$0xff] }
 0x5b1   : > { %3789 = vmatpush1.bf16.msra.mxu0 %v3788_v1  ;;  %v2079_v1 = vld [vmem:[#allocation8 + $0x1130] sm:$0xff] }
 0x5b2   : > { %3791 = vmatprep.subr.bf16.mxu0 %v3790_v4  ;;  %v2082_v4 = vld [vmem:[#allocation8 + $0x1148] sm:$0xff]  ;;  %v3828_v16 = vpack.c.bf16 %v2079_v1, %v2077_v63  ;;  %v2347_v63 = vld [vmem:[#allocation8 + $0x14f8] sm:$0xff]  ;;  %v2344_v1 = vld [vmem:[#allocation8 + $0x14e0] sm:$0xff] }
 0x5b3   : > { %v3830_v19 = vpack.c.bf16 %v2084_v5, %v2082_v4  ;;  %v2346_v4 = vld [vmem:[#allocation8 + $0x14f0] sm:$0xff] }
 0x5b5   : > { %3793 = vmatpush1.bf16.msra.mxu0 %v3792_v37  ;;  %v2083_v37 = vld [vmem:[#allocation8 + $0x1150] sm:$0xff] }
 0x5b6   : > { %3795 = vmatprep.subr.bf16.mxu0 %v3794_v8  ;;  %v2086_v8 = vld [vmem:[#allocation8 + $0x1168] sm:$0xff]  ;;  %v3832_v12 = vpack.c.bf16 %v2083_v37, %v2081_v58  ;;  %v2456_v58 = vld [vmem:[#allocation8 + $0x1818] sm:$0xff]  ;;  %v2453_v37 = vld [vmem:[#allocation8 + $0x1800] sm:$0xff] }
 0x5b7   : > { %v3834_v13 = vpack.c.bf16 %v2088_v10, %v2086_v8  ;;  %v2455_v10 = vld [vmem:[#allocation8 + $0x1810] sm:$0xff] }
 0x5b9   : > { %3797 = vmatpush1.bf16.msra.mxu0 %v3796_v17  ;;  %v2087_v17 = vld [vmem:[#allocation8 + $0x1170] sm:$0xff] }
 0x5ba   : > { %3799 = vmatprep.subr.bf16.mxu0 %v3798_v20  ;;  %v2090_v20 = vld [vmem:[#allocation8 + $0x1188] sm:$0xff]  ;;  %v3836_v59 = vpack.c.bf16 %v2087_v17, %v2085_v14  ;;  %v3904_v14 = vpack.c.bf16 %v2455_v10, %v2453_v37 }
 0x5bb   : > { %v3838_v62 = vpack.c.bf16 %v2092_v21, %v2090_v20  ;;  %v2457_v20 = vld [vmem:[#allocation8 + $0x1820] sm:$0xff]  ;;  %v2459_v21 = vld [vmem:[#allocation8 + $0x1830] sm:$0xff] }
 0x5bd   : > { %3801 = vmatpush1.bf16.msra.mxu0 %v3800_v24  ;;  %v2091_v24 = vld [vmem:[#allocation8 + $0x1190] sm:$0xff] }
 0x5be   : > { %3803 = vmatprep.subr.bf16.mxu0 %v3802_v25  ;;  %v2094_v25 = vld [vmem:[#allocation8 + $0x11a8] sm:$0xff]  ;;  %v3840_v55 = vpack.c.bf16 %v2091_v24, %v2089_v23  ;;  %v3908_v23 = vpack.c.bf16 %v2459_v21, %v2457_v20  ;;  %v2485_v21 = vld [vmem:[#allocation8 + $0x1900] sm:$0xff] }
 0x5bf   : > { %v3842_v31 = vpack.c.bf16 %v2096_v50, %v2094_v25  ;;  %v2461_v25 = vld [vmem:[#allocation8 + $0x1840] sm:$0xff]  ;;  %v2463_v50 = vld [vmem:[#allocation8 + $0x1850] sm:$0xff] }
 0x5c1   : > { %3805 = vmatpush1.bf16.msra.mxu0 %v3804_v34  ;;  %v2095_v34 = vld [vmem:[#allocation8 + $0x11b0] sm:$0xff] }
 0x5c2   : > { %3807 = vmatprep.subr.bf16.mxu0 %v3806_v35  ;;  %v2098_v35 = vld [vmem:[#allocation8 + $0x11c8] sm:$0xff]  ;;  %v3844_v6 = vpack.c.bf16 %v2095_v34, %v2093_v48  ;;  %v3912_v48 = vpack.c.bf16 %v2463_v50, %v2461_v25  ;;  %v2489_v25 = vld [vmem:[#allocation8 + $0x1920] sm:$0xff]  ;;  %v2491_v50 = vld [vmem:[#allocation8 + $0x1930] sm:$0xff] }
 0x5c3   : > { %v3846_v36 = vpack.c.bf16 %v2100_v3, %v2098_v35  ;;  %v2465_v35 = vld [vmem:[#allocation8 + $0x1860] sm:$0xff]  ;;  %v2467_v3 = vld [vmem:[#allocation8 + $0x1870] sm:$0xff] }
 0x5c4   : > { %2188 = vmatmul.mubr.f32.vlgmr.msra.gmra.mrb[8].mxu0 %v4605_v0 }
 0x5c5   : > { %3234 = vmatprep.mubr.msk.f32.mxu0 %vm568_vm1, %v5162_v11  ;;  %3809 = vmatpush1.bf16.msra.mxu0 %v3808_v7  ;;  %v2099_v7 = vld [vmem:[#allocation8 + $0x11d0] sm:$0xff] }
 0x5c6   : > { %3811 = vmatprep.subr.bf16.mxu0 %v3810_v39  ;;  %v2102_v39 = vld [vmem:[#allocation8 + $0x11e8] sm:$0xff]  ;;  %v3848_v41 = vpack.c.bf16 %v2099_v7, %v2097_v38  ;;  %v3916_v38 = vpack.c.bf16 %v2467_v3, %v2465_v35  ;;  %v2495_v35 = vld [vmem:[#allocation8 + $0x1950] sm:$0xff] }
 0x5c7   : > { %v3850_v9 = vpack.c.bf16 %v2104_v40, %v2102_v39  ;;  %v2469_v39 = vld [vmem:[#allocation8 + $0x1880] sm:$0xff]  ;;  %v2471_v40 = vld [vmem:[#allocation8 + $0x1890] sm:$0xff]  ;;  %v2498_v3 = vld [vmem:[#allocation8 + $0x1968] sm:$0xff] }
 0x5c8   : > { %2194 = vmatmul.mubr.f32.gmra.mrb[10].mxu0 %v5165_v18 }
 0x5c9   : > { %3813 = vmatpush1.bf16.msra.mxu0 %v3812_v42  ;;  %3235 = vmatprep.mubr.msk.f32.mxu0 %vm568_vm1, %v5171_v28  ;;  %v2103_v42 = vld [vmem:[#allocation8 + $0x11f0] sm:$0xff] }
 0x5ca   : > { %3815 = vmatprep.subr.bf16.mxu0 %v3814_v43  ;;  %v3852_v43 = vpack.c.bf16 %v2103_v42, %v2101_v45  ;;  %v3920_v45 = vpack.c.bf16 %v2471_v40, %v2469_v39 }
 0x5cd   : > { %3817 = vmatpush1.bf16.msra.mxu0 %v3816_v26  ;;  %v2334_v26 = vld [vmem:[#allocation8 + $0x1490] sm:$0xff] }
 0x5ce   : > { %3819 = vmatprep.subr.bf16.mxu0 %v3818_v29  ;;  %v3888_v29 = vpack.c.bf16 %v2334_v26, %v2332_v15  ;;  %v3926_v26 = vpack.c.bf16 %v2480_v47, %v2478_v46  ;;  %v2613_v46 = vld [vmem:[#allocation8 + $0x1cb8] sm:$0xff] }
 0x5d0   : > { %3889 = vmatpush1.bf16.msra.mxu1 %v3888_v29  ;;  %v2477_v29 = vld [vmem:[#allocation8 + $0x18c0] sm:$0xff] }
 0x5d1   : > { %3821 = vmatpush1.bf16.msra.mxu0 %v3820_v51  ;;  %v2338_v51 = vld [vmem:[#allocation8 + $0x14b0] sm:$0xff]  ;;  %3891 = vmatprep.subr.bf16.mxu1 %v3890_v60  ;;  %v2484_v60 = vld [vmem:[#allocation8 + $0x18f8] sm:$0xff] }
 0x5d2   : > { %3823 = vmatprep.subr.bf16.mxu0 %v3822_v52  ;;  %v3892_v52 = vpack.c.bf16 %v2338_v51, %v2336_v33  ;;  %v3928_v33 = vpack.c.bf16 %v2479_v2, %v2477_v29  ;;  %v3930_v51 = vpack.c.bf16 %v2484_v60, %v2482_v49  ;;  %v2612_v29 = vld [vmem:[#allocation8 + $0x1cb0] sm:$0xff]  ;;  %v2615_v2 = vld [vmem:[#allocation8 + $0x1cc8] sm:$0xff]  ;;  %v2617_v49 = vld [vmem:[#allocation8 + $0x1cd8] sm:$0xff] }
 0x5d4   : > { %3893 = vmatpush1.bf16.msra.mxu1 %v3892_v52  ;;  %v2481_v52 = vld [vmem:[#allocation8 + $0x18e0] sm:$0xff] }
 0x5d5   : > { %3825 = vmatpush1.bf16.msra.mxu0 %v3824_v57  ;;  %v2345_v57 = vld [vmem:[#allocation8 + $0x14e8] sm:$0xff]  ;;  %3895 = vmatprep.subr.bf16.mxu1 %v3894_v54  ;;  %v3932_v53 = vpack.c.bf16 %v2483_v32, %v2481_v52  ;;  %v1912_v54 = vld [vmem:[#allocation10 + $0x6] sm:$0x3]  ;;  %v2616_v52 = vld [vmem:[#allocation8 + $0x1cd0] sm:$0xff] }
 0x5d6   : > { %3827 = vmatprep.subr.bf16.mxu0 %v3826_v61  ;;  %v3898_v5 = vpack.c.bf16 %v2347_v63, %v2345_v57  ;;  %v2619_v32 = vld [vmem:[#allocation8 + $0x1ce8] sm:$0xff] }
 0x5d9   : > { %3829 = vmatpush1.bf16.msra.mxu0 %v3828_v16  ;;  %v3900_v16 = vpack.c.bf16 %v2346_v4, %v2344_v1 }
 0x5da   : > { %3831 = vmatprep.subr.bf16.mxu0 %v3830_v19  ;;  %v2454_v19 = vld [vmem:[#allocation8 + $0x1808] sm:$0xff] }
 0x5db   : > { %v3902_v8 = vpack.c.bf16 %v2456_v58, %v2454_v19 }
 0x5dd   : > { %3833 = vmatpush1.bf16.msra.mxu0 %v3832_v12  ;;  %v2458_v12 = vld [vmem:[#allocation8 + $0x1828] sm:$0xff] }
 0x5de   : > { %3835 = vmatprep.subr.bf16.mxu0 %v3834_v13  ;;  %v2460_v13 = vld [vmem:[#allocation8 + $0x1838] sm:$0xff] }
 0x5df   : > { %v3906_v17 = vpack.c.bf16 %v2460_v13, %v2458_v12 }
 0x5e1   : > { %3837 = vmatpush1.bf16.msra.mxu0 %v3836_v59  ;;  %v2462_v59 = vld [vmem:[#allocation8 + $0x1848] sm:$0xff] }
 0x5e2   : > { %3839 = vmatprep.subr.bf16.mxu0 %v3838_v62  ;;  %v2464_v62 = vld [vmem:[#allocation8 + $0x1858] sm:$0xff] }
 0x5e3   : > { %v3910_v24 = vpack.c.bf16 %v2464_v62, %v2462_v59  ;;  %v2487_v59 = vld [vmem:[#allocation8 + $0x1910] sm:$0xff] }
 0x5e4   : > { %v3936_v62 = vpack.c.bf16 %v2487_v59, %v2485_v21 }
 0x5e5   : > { %3841 = vmatpush1.bf16.msra.mxu0 %v3840_v55  ;;  %v2466_v55 = vld [vmem:[#allocation8 + $0x1868] sm:$0xff] }
 0x5e6   : > { %3843 = vmatprep.subr.bf16.mxu0 %v3842_v31  ;;  %v2468_v31 = vld [vmem:[#allocation8 + $0x1878] sm:$0xff] }
 0x5e7   : > { %v3914_v34 = vpack.c.bf16 %v2468_v31, %v2466_v55  ;;  %v2494_v55 = vld [vmem:[#allocation8 + $0x1948] sm:$0xff]  ;;  %v2496_v31 = vld [vmem:[#allocation8 + $0x1958] sm:$0xff] }
 0x5e9   : > { %3845 = vmatpush1.bf16.msra.mxu0 %v3844_v6  ;;  %v2470_v6 = vld [vmem:[#allocation8 + $0x1888] sm:$0xff] }
 0x5ea   : > { %3847 = vmatprep.subr.bf16.mxu0 %v3846_v36  ;;  %v2472_v36 = vld [vmem:[#allocation8 + $0x1898] sm:$0xff] }
 0x5eb   : > { %v3918_v7 = vpack.c.bf16 %v2472_v36, %v2470_v6  ;;  %v2500_v36 = vld [vmem:[#allocation8 + $0x1978] sm:$0xff] }
 0x5ec   : > { %v3946_v39 = vpack.c.bf16 %v2500_v36, %v2498_v3 }
 0x5ed   : > { %3849 = vmatpush1.bf16.msra.mxu0 %v3848_v41  ;;  %v2474_v41 = vld [vmem:[#allocation8 + $0x18a8] sm:$0xff] }
 0x5ee   : > { %3851 = vmatprep.subr.bf16.mxu0 %v3850_v9  ;;  %v2476_v9 = vld [vmem:[#allocation8 + $0x18b8] sm:$0xff] }
 0x5ef   : > { %v3922_v42 = vpack.c.bf16 %v2476_v9, %v2474_v41  ;;  %v2607_v41 = vld [vmem:[#allocation8 + $0x1c88] sm:$0xff]  ;;  %v2609_v9 = vld [vmem:[#allocation8 + $0x1c98] sm:$0xff] }
 0x5f1   : > { %3853 = vmatpush1.bf16.msra.mxu0 %v3852_v43  ;;  %v2473_v43 = vld [vmem:[#allocation8 + $0x18a0] sm:$0xff] }
 0x5f2   : > { %3903 = vmatprep.subr.bf16.mxu0 %v3902_v8  ;;  %v3924_v15 = vpack.c.bf16 %v2475_v44, %v2473_v43  ;;  %v2608_v43 = vld [vmem:[#allocation8 + $0x1c90] sm:$0xff]  ;;  %v2611_v44 = vld [vmem:[#allocation8 + $0x1ca8] sm:$0xff] }
 0x5f4   : > { %2275 = vmatmul.mubr.f32.vlgmr.msra.gmra.mrb[8].mxu0 %v5174_v30 }
 0x5f5   : > { %2280 = vmatprep.mubr.f32.mxu0 %v4605_v0  ;;  %3905 = vmatpush1.bf16.msra.mxu0 %v3904_v14 }
 0x5f6   : > { %3907 = vmatprep.subr.bf16.mxu0 %v3906_v17 }
 0x5f8   : > { %2281 = vmatmul.mubr.f32.gmra.mrb[10].mxu0 %v4605_v0  ;;  %v2340_v0 = vld [vmem:[#allocation8 + $0x14c0] sm:$0xff] }
 0x5f9   : > { %v3896_v61 = vpack.c.bf16 %v2342_v56, %v2340_v0  ;;  %3909 = vmatpush1.bf16.msra.mxu0 %v3908_v23  ;;  %v1917_v0 = vrot.slane %v1912_v54, %v4951_v27  ;;  %v1921_v56 = vrot.slane %v1912_v54, %v4948_v22  ;;  %v2490_v23 = vld [vmem:[#allocation8 + $0x1928] sm:$0xff] }
 0x5fa   : > { %3911 = vmatprep.subr.bf16.mxu0 %v3910_v24  ;;  %v2492_v24 = vld [vmem:[#allocation8 + $0x1938] sm:$0xff] }
 0x5fb   : > { %3897 = vmatpush1.bf16.msra.mxu1 %v3896_v61 }
 0x5fc   : > { %3899 = vmatprep.subr.bf16.mxu1 %v3898_v5 }
 0x5fd   : > { %3913 = vmatpush1.bf16.msra.mxu0 %v3912_v48  ;;  %v3942_v48 = vpack.c.bf16 %v2496_v31, %v2494_v55  ;;  %v2636_v55 = vld [vmem:[#allocation8 + $0x1d70] sm:$0xff] }
 0x5fe   : > { %3915 = vmatprep.subr.bf16.mxu0 %v3914_v34  ;;  %v2493_v34 = vld [vmem:[#allocation8 + $0x1940] sm:$0xff] }
 0x5ff   : > { %3901 = vmatpush1.bf16.msra.mxu1 %v3900_v16  ;;  %v3944_v6 = vpack.c.bf16 %v2495_v35, %v2493_v34 }
 0x601   : > { %3917 = vmatpush1.bf16.msra.mxu0 %v3916_v38  ;;  %v2497_v38 = vld [vmem:[#allocation8 + $0x1960] sm:$0xff] }
 0x602   : > { %3919 = vmatprep.subr.bf16.mxu0 %v3918_v7  ;;  %v2499_v7 = vld [vmem:[#allocation8 + $0x1970] sm:$0xff] }
 0x603   : > { %v3948_v40 = vpack.c.bf16 %v2499_v7, %v2497_v38 }
 0x605   : > { %3921 = vmatpush1.bf16.msra.mxu0 %v3920_v45  ;;  %v2606_v45 = vld [vmem:[#allocation8 + $0x1c80] sm:$0xff] }
 0x606   : > { %3923 = vmatprep.subr.bf16.mxu0 %v3922_v42  ;;  %v3950_v42 = vpack.c.bf16 %v2609_v9, %v2607_v41  ;;  %v3952_v47 = vpack.c.bf16 %v2608_v43, %v2606_v45 }
 0x608   : > { %3951 = vmatprep.subr.bf16.mxu1 %v3950_v42 }
 0x609   : > { %3925 = vmatpush1.bf16.msra.mxu0 %v3924_v15  ;;  %v3954_v15 = vpack.c.bf16 %v2613_v46, %v2611_v44 }
 0x60a   : > { %3927 = vmatprep.subr.bf16.mxu0 %v3926_v26  ;;  %v2610_v26 = vld [vmem:[#allocation8 + $0x1ca0] sm:$0xff] }
 0x60b   : > { %v3956_v60 = vpack.c.bf16 %v2612_v29, %v2610_v26  ;;  %v2638_v29 = vld [vmem:[#allocation8 + $0x1d80] sm:$0xff] }
 0x60d   : > { %3929 = vmatpush1.bf16.msra.mxu0 %v3928_v33  ;;  %v3958_v33 = vpack.c.bf16 %v2617_v49, %v2615_v2  ;;  %v2640_v2 = vld [vmem:[#allocation8 + $0x1d90] sm:$0xff] }
 0x60e   : > { %3931 = vmatprep.subr.bf16.mxu0 %v3930_v51  ;;  %v2614_v51 = vld [vmem:[#allocation8 + $0x1cc0] sm:$0xff]  ;;  %v3984_v49 = vpack.c.bf16 %v2640_v2, %v2638_v29 }
 0x60f   : > { %v3960_v54 = vpack.c.bf16 %v2616_v52, %v2614_v51  ;;  %v2642_v51 = vld [vmem:[#allocation8 + $0x1da0] sm:$0xff]  ;;  %v2644_v52 = vld [vmem:[#allocation8 + $0x1db0] sm:$0xff] }
 0x611   : > { %3933 = vmatpush1.bf16.msra.mxu0 %v3932_v53  ;;  %v2621_v53 = vld [vmem:[#allocation8 + $0x1cf8] sm:$0xff] }
 0x6c7   : > { %v2276_v57 = vpop.f32.mrb[8].mxu0 }
 0x6c8   : > { %v4094_v61 = vadd.f32 %v2276_v57, %v1917_v0  ;;  %v2278_v63 = vpop.f32.mrb[9].mxu0  ;;  %v2620_v57 = vld [vmem:[#allocation8 + $0x1cf0] sm:$0xff] }
 0x6c9   : > { %v4095_v1 = vadd.f32 %v2278_v63, %v1921_v56  ;;  %v2625_v63 = vld [vmem:[#allocation8 + $0x1d18] sm:$0xff] }
 0x6ca   : > { %4272 = vtanh.f32 %v4094_v61  ;;  %v2623_v61 = vld [vmem:[#allocation8 + $0x1d08] sm:$0xff] }
 0x6cb   : > { %4274 = vtanh.f32 %v4095_v1  ;;  %v2282_v4 = vpop.f32.mrb[10].mxu0 }
 0x6cc   : > { %v4096_v5 = vadd.f32 %v2282_v4, %v1917_v0  ;;  %v2284_v16 = vpop.f32.mrb[11].mxu0  ;;  %v3962_v0 = vpack.c.bf16 %v2621_v53, %v2619_v32  ;;  %v3966_v4 = vpack.c.bf16 %v2625_v63, %v2623_v61  ;;  %v2647_v32 = vld [vmem:[#allocation8 + $0x1dc8] sm:$0xff]  ;;  %v2649_v53 = vld [vmem:[#allocation8 + $0x1dd8] sm:$0xff] }
 0x6cd   : > { %v4097_v19 = vadd.f32 %v2284_v16, %v1921_v56  ;;  %v2618_v56 = vld [vmem:[#allocation8 + $0x1ce0] sm:$0xff]  ;;  %v2624_v16 = vld [vmem:[#allocation8 + $0x1d10] sm:$0xff]  ;;  %v2653_v63 = vld [vmem:[#allocation8 + $0x1df8] sm:$0xff] }
 0x6ce   : > { %4276 = vtanh.f32 %v4096_v5  ;;  %v3964_v1 = vpack.c.bf16 %v2620_v57, %v2618_v56  ;;  %v2622_v5 = vld [vmem:[#allocation8 + $0x1d00] sm:$0xff]  ;;  %v2648_v56 = vld [vmem:[#allocation8 + $0x1dd0] sm:$0xff]  ;;  %v2651_v57 = vld [vmem:[#allocation8 + $0x1de8] sm:$0xff] }
 0x6cf   : > { %4278 = vtanh.f32 %v4097_v19  ;;  %v2627_v19 = vld [vmem:[#allocation8 + $0x1d28] sm:$0xff] }
 0x6d4   : > { %v4273_v58 = vpop.eup %4272 }
 0x6d5   : > { %v4275_v37 = vpop.eup %4274  ;;  %v5195_v10 = vadd.f32 %v4273_v58, %v5165_v18  ;;  %v2488_v18 = vld [vmem:[#allocation8 + $0x1918] sm:$0xff] }
 0x6d6   : > { %v5192_v8 = vadd.f32 %v4275_v37, %v5162_v11  ;;  %v2486_v11 = vld [vmem:[#allocation8 + $0x1908] sm:$0xff]  ;;  %v2629_v58 = vld [vmem:[#allocation8 + $0x1d38] sm:$0xff]  ;;  %v3968_v37 = vpack.c.bf16 %v2624_v16, %v2622_v5  ;;  %v3994_v5 = vpack.c.bf16 %v2653_v63, %v2651_v57 }
 0x6d7   : > { %v3934_v20 = vpack.c.bf16 %v2488_v18, %v2486_v11  ;;  %v2628_v11 = vld [vmem:[#allocation8 + $0x1d30] sm:$0xff]  ;;  %v2631_v18 = vld [vmem:[#allocation8 + $0x1d48] sm:$0xff] }
 0x6d8   : > { %v4277_v12 = vpop.eup %4276  ;;  %3236 = vmatprep.mubr.msk.f32.mxu1 %vm568_vm1, %v5192_v8 }
 0x6d9   : > { %v4279_v13 = vpop.eup %4278  ;;  %2432 = vmatmul.mubr.f32.vlgmr.msra.gmra.mrb[8].mxu1 %v5195_v10  ;;  %v5204_v17 = vadd.f32 %v4277_v12, %v5174_v30  ;;  %3935 = vmatprep.subr.bf16.mxu0 %v3934_v20  ;;  %v3940_v30 = vpack.c.bf16 %v2491_v50, %v2489_v25  ;;  %v3970_v12 = vpack.c.bf16 %v2629_v58, %v2627_v19  ;;  %v2633_v20 = vld [vmem:[#allocation8 + $0x1d58] sm:$0xff]  ;;  %v2760_v19 = vld [vmem:[#allocation8 + $0x2108] sm:$0xff] }
 0x6da   : > { %v5201_v14 = vadd.f32 %v4279_v13, %v5171_v28  ;;  %3937 = vmatpush1.bf16.msra.mxu0 %v3936_v62  ;;  %v3938_v28 = vpack.c.bf16 %v2492_v24, %v2490_v23  ;;  %3953 = vmatpush1.bf16.msra.mxu1 %v3952_v47  ;;  %v2626_v13 = vld [vmem:[#allocation8 + $0x1d20] sm:$0xff]  ;;  %v3974_v59 = vpack.c.bf16 %v2633_v20, %v2631_v18  ;;  %v2632_v23 = vld [vmem:[#allocation8 + $0x1d50] sm:$0xff]  ;;  %v2635_v24 = vld [vmem:[#allocation8 + $0x1d68] sm:$0xff] }
 0x6db   : > { %3955 = vmatprep.subr.bf16.mxu1 %v3954_v15  ;;  %v3972_v21 = vpack.c.bf16 %v2628_v11, %v2626_v13  ;;  %v2630_v62 = vld [vmem:[#allocation8 + $0x1d40] sm:$0xff]  ;;  %v2762_v58 = vld [vmem:[#allocation8 + $0x2118] sm:$0xff]  ;;  %v2761_v13 = vld [vmem:[#allocation8 + $0x2110] sm:$0xff] }
 0x6dc   : > { %3237 = vmatprep.mubr.msk.f32.mxu1 %vm568_vm1, %v5201_v14  ;;  %3939 = vmatprep.subr.bf16.mxu0 %v3938_v28  ;;  %v2637_v28 = vld [vmem:[#allocation8 + $0x1d78] sm:$0xff]  ;;  %v3976_v25 = vpack.c.bf16 %v2632_v23, %v2630_v62  ;;  %v2764_v11 = vld [vmem:[#allocation8 + $0x2128] sm:$0xff]  ;;  %v2765_v62 = vld [vmem:[#allocation8 + $0x2130] sm:$0xff] }
 0x6dd   : > { %2438 = vmatmul.mubr.f32.gmra.mrb[10].mxu1 %v5204_v17  ;;  %v3978_v50 = vpack.c.bf16 %v2637_v28, %v2635_v24  ;;  %v2766_v18 = vld [vmem:[#allocation8 + $0x2138] sm:$0xff]  ;;  %v2768_v23 = vld [vmem:[#allocation8 + $0x2148] sm:$0xff] }
 0x6de   : > { %3941 = vmatpush1.bf16.msra.mxu0 %v3940_v30  ;;  %3957 = vmatpush1.bf16.msra.mxu1 %v3956_v60  ;;  %v2634_v30 = vld [vmem:[#allocation8 + $0x1d60] sm:$0xff]  ;;  %v2643_v60 = vld [vmem:[#allocation8 + $0x1da8] sm:$0xff]  ;;  %v2770_v24 = vld [vmem:[#allocation8 + $0x2158] sm:$0xff] }
 0x6df   : > { %3943 = vmatprep.subr.bf16.mxu0 %v3942_v48  ;;  %3959 = vmatprep.subr.bf16.mxu1 %v3958_v33  ;;  %v3980_v31 = vpack.c.bf16 %v2636_v55, %v2634_v30  ;;  %v2349_v48 = vld [vmem:[#allocation10 + $0x8] sm:$0x3]  ;;  %v2645_v33 = vld [vmem:[#allocation8 + $0x1db8] sm:$0xff]  ;;  %v2769_v30 = vld [vmem:[#allocation8 + $0x2150] sm:$0xff] }
 0x6e0   : > { %v2354_v34 = vrot.slane %v2349_v48, %v4951_v27  ;;  %v2358_v35 = vrot.slane %v2349_v48, %v4948_v22  ;;  %v2772_v55 = vld [vmem:[#allocation8 + $0x2168] sm:$0xff] }
 0x6e2   : > { %3945 = vmatpush1.bf16.msra.mxu0 %v3944_v6  ;;  %3961 = vmatpush1.bf16.msra.mxu1 %v3960_v54  ;;  %v3990_v54 = vpack.c.bf16 %v2649_v53, %v2647_v32  ;;  %v2789_v32 = vld [vmem:[#allocation8 + $0x21f0] sm:$0xff] }
 0x6e3   : > { %3947 = vmatprep.subr.bf16.mxu0 %v3946_v39  ;;  %3963 = vmatprep.subr.bf16.mxu1 %v3962_v0  ;;  %v2646_v0 = vld [vmem:[#allocation8 + $0x1dc0] sm:$0xff] }
 0x6e4   : > { %v3992_v61 = vpack.c.bf16 %v2648_v56, %v2646_v0 }
 0x6e6   : > { %3949 = vmatpush1.bf16.msra.mxu0 %v3948_v40  ;;  %3965 = vmatpush1.bf16.msra.mxu1 %v3964_v1  ;;  %v2650_v1 = vld [vmem:[#allocation8 + $0x1de0] sm:$0xff] }
 0x6e7   : > { %3967 = vmatprep.subr.bf16.mxu1 %v3966_v4  ;;  %v2652_v4 = vld [vmem:[#allocation8 + $0x1df0] sm:$0xff] }
 0x6e8   : > { %v3996_v16 = vpack.c.bf16 %v2652_v4, %v2650_v1 }
 0x6ea   : > { %3969 = vmatpush1.bf16.msra.mxu1 %v3968_v37  ;;  %v2759_v37 = vld [vmem:[#allocation8 + $0x2100] sm:$0xff] }
 0x6eb   : > { %3971 = vmatprep.subr.bf16.mxu1 %v3970_v12  ;;  %v3998_v12 = vpack.c.bf16 %v2762_v58, %v2760_v19  ;;  %v4000_v20 = vpack.c.bf16 %v2761_v13, %v2759_v37 }
 0x6ed   : > { %3999 = vmatprep.subr.bf16.mxu0 %v3998_v12 }
 0x6ee   : > { %3973 = vmatpush1.bf16.msra.mxu1 %v3972_v21  ;;  %v4002_v21 = vpack.c.bf16 %v2766_v18, %v2764_v11 }
 0x6ef   : > { %3975 = vmatprep.subr.bf16.mxu1 %v3974_v59  ;;  %v2763_v59 = vld [vmem:[#allocation8 + $0x2120] sm:$0xff] }
 0x6f0   : > { %v4004_v28 = vpack.c.bf16 %v2765_v62, %v2763_v59  ;;  %v2791_v62 = vld [vmem:[#allocation8 + $0x2200] sm:$0xff] }
 0x6f2   : > { %3977 = vmatpush1.bf16.msra.mxu1 %v3976_v25  ;;  %v4006_v25 = vpack.c.bf16 %v2770_v24, %v2768_v23  ;;  %v2793_v23 = vld [vmem:[#allocation8 + $0x2210] sm:$0xff] }
 0x6f3   : > { %3979 = vmatprep.subr.bf16.mxu1 %v3978_v50  ;;  %v2767_v50 = vld [vmem:[#allocation8 + $0x2140] sm:$0xff]  ;;  %v4032_v24 = vpack.c.bf16 %v2793_v23, %v2791_v62 }
 0x6f4   : > { %v4008_v48 = vpack.c.bf16 %v2769_v30, %v2767_v50  ;;  %v2795_v50 = vld [vmem:[#allocation8 + $0x2220] sm:$0xff]  ;;  %v2797_v30 = vld [vmem:[#allocation8 + $0x2230] sm:$0xff] }
 0x6f6   : > { %3981 = vmatpush1.bf16.msra.mxu1 %v3980_v31  ;;  %v2774_v31 = vld [vmem:[#allocation8 + $0x2178] sm:$0xff] }
 0x7ac   : > { %v2433_v3 = vpop.f32.mrb[8].mxu1 }
 0x7ad   : > { %v2434_v6 = vadd.f32 %v2433_v3, %v2354_v34  ;;  %v2435_v36 = vpop.f32.mrb[9].mxu1  ;;  %v2773_v3 = vld [vmem:[#allocation8 + $0x2170] sm:$0xff] }
 0x7ae   : > { %v2436_v38 = vadd.f32 %v2435_v36, %v2358_v35  ;;  %v2778_v36 = vld [vmem:[#allocation8 + $0x2198] sm:$0xff] }
 0x7af   : > { %4280 = vtanh.f32 %v2434_v6  ;;  %v2776_v6 = vld [vmem:[#allocation8 + $0x2188] sm:$0xff] }
 0x7b0   : > { %4282 = vtanh.f32 %v2436_v38  ;;  %v2439_v7 = vpop.f32.mrb[10].mxu1 }
 0x7b1   : > { %v2440_v39 = vadd.f32 %v2439_v7, %v2354_v34  ;;  %v2441_v40 = vpop.f32.mrb[11].mxu1  ;;  %v4010_v34 = vpack.c.bf16 %v2774_v31, %v2772_v55  ;;  %v4014_v7 = vpack.c.bf16 %v2778_v36, %v2776_v6  ;;  %v2800_v55 = vld [vmem:[#allocation8 + $0x2248] sm:$0xff]  ;;  %v2802_v31 = vld [vmem:[#allocation8 + $0x2258] sm:$0xff] }
 0x7b2   : > { %v2442_v41 = vadd.f32 %v2441_v40, %v2358_v35  ;;  %v2771_v35 = vld [vmem:[#allocation8 + $0x2160] sm:$0xff]  ;;  %v2777_v40 = vld [vmem:[#allocation8 + $0x2190] sm:$0xff]  ;;  %v2806_v36 = vld [vmem:[#allocation8 + $0x2278] sm:$0xff] }
 0x7b3   : > { %4284 = vtanh.f32 %v2440_v39  ;;  %v4012_v38 = vpack.c.bf16 %v2773_v3, %v2771_v35  ;;  %v2775_v39 = vld [vmem:[#allocation8 + $0x2180] sm:$0xff]  ;;  %v2801_v35 = vld [vmem:[#allocation8 + $0x2250] sm:$0xff]  ;;  %v2804_v3 = vld [vmem:[#allocation8 + $0x2268] sm:$0xff] }
 0x7b4   : > { %4286 = vtanh.f32 %v2442_v41  ;;  %v2780_v41 = vld [vmem:[#allocation8 + $0x21a8] sm:$0xff] }
 0x7b9   : > { %v4281_v9 = vpop.eup %4280 }
 0x7ba   : > { %v4283_v45 = vpop.eup %4282  ;;  %v5215_v43 = vadd.f32 %v4281_v9, %v5195_v10  ;;  %v2641_v10 = vld [vmem:[#allocation8 + $0x1d98] sm:$0xff] }
 0x7bb   : > { %v5212_v42 = vadd.f32 %v4283_v45, %v5192_v8  ;;  %v2639_v8 = vld [vmem:[#allocation8 + $0x1d88] sm:$0xff]  ;;  %v2782_v9 = vld [vmem:[#allocation8 + $0x21b8] sm:$0xff]  ;;  %v4016_v45 = vpack.c.bf16 %v2777_v40, %v2775_v39  ;;  %v4042_v39 = vpack.c.bf16 %v2806_v36, %v2804_v3 }
 0x7bc   : > { %v3982_v26 = vpack.c.bf16 %v2641_v10, %v2639_v8  ;;  %v2781_v8 = vld [vmem:[#allocation8 + $0x21b0] sm:$0xff]  ;;  %v2784_v10 = vld [vmem:[#allocation8 + $0x21c8] sm:$0xff] }
 0x7bd   : > { %v4285_v44 = vpop.eup %4284  ;;  %3238 = vmatprep.mubr.msk.f32.mxu0 %vm568_vm1, %v5212_v42 }
 0x7be   : > { %v4287_v46 = vpop.eup %4286  ;;  %2585 = vmatmul.mubr.f32.vlgmr.msra.gmra.mrb[12].mxu0 %v5215_v43  ;;  %v5224_v15 = vadd.f32 %v4285_v44, %v5204_v17  ;;  %3983 = vmatprep.subr.bf16.mxu1 %v3982_v26  ;;  %v3988_v17 = vpack.c.bf16 %v2644_v52, %v2642_v51  ;;  %v4018_v44 = vpack.c.bf16 %v2782_v9, %v2780_v41  ;;  %v2786_v26 = vld [vmem:[#allocation8 + $0x21d8] sm:$0xff]  ;;  %v2911_v41 = vld [vmem:[#allocation11] sm:$0xff] }
 0x7bf   : > { %v5221_v47 = vadd.f32 %v4287_v46, %v5201_v14  ;;  %3985 = vmatpush1.bf16.msra.mxu1 %v3984_v49  ;;  %v3986_v14 = vpack.c.bf16 %v2645_v33, %v2643_v60  ;;  %4001 = vmatpush1.bf16.msra.mxu0 %v4000_v20  ;;  %v2779_v46 = vld [vmem:[#allocation8 + $0x21a0] sm:$0xff]  ;;  %v4022_v2 = vpack.c.bf16 %v2786_v26, %v2784_v10  ;;  %v2785_v60 = vld [vmem:[#allocation8 + $0x21d0] sm:$0xff]  ;;  %v2788_v33 = vld [vmem:[#allocation8 + $0x21e8] sm:$0xff] }
 0x7c0   : > { %4003 = vmatprep.subr.bf16.mxu0 %v4002_v21  ;;  %v4020_v29 = vpack.c.bf16 %v2781_v8, %v2779_v46  ;;  %v2783_v49 = vld [vmem:[#allocation8 + $0x21c0] sm:$0xff]  ;;  %v2912_v9 = vld [vmem:[#allocation11 + $0x8] sm:$0xff]  ;;  %v2914_v8 = vld [vmem:[#allocation11 + $0x18] sm:$0xff] }
 0x7c1   : > { %3239 = vmatprep.mubr.msk.f32.mxu0 %vm568_vm1, %v5221_v47  ;;  %3987 = vmatprep.subr.bf16.mxu1 %v3986_v14  ;;  %v2790_v14 = vld [vmem:[#allocation8 + $0x21f8] sm:$0xff]  ;;  %v4024_v51 = vpack.c.bf16 %v2785_v60, %v2783_v49  ;;  %v4047_v46 = vpack.c.bf16 %v2912_v9, %v2911_v41  ;;  %v2915_v26 = vld [vmem:[#allocation11 + $0x20] sm:$0xff]  ;;  %v2917_v49 = vld [vmem:[#allocation11 + $0x30] sm:$0xff] }
 0x7c2   : > { %2591 = vmatmul.mubr.f32.gmra.mrb[14].mxu0 %v5224_v15  ;;  %v4026_v52 = vpack.c.bf16 %v2790_v14, %v2788_v33  ;;  %v2918_v60 = vld [vmem:[#allocation11 + $0x38] sm:$0xff]  ;;  %v2919_v14 = vld [vmem:[#allocation11 + $0x40] sm:$0xff] }
 0x7c3   : > { %3989 = vmatpush1.bf16.msra.mxu1 %v3988_v17  ;;  %4005 = vmatpush1.bf16.msra.mxu0 %v4004_v28  ;;  %v2787_v17 = vld [vmem:[#allocation8 + $0x21e0] sm:$0xff]  ;;  %v2796_v28 = vld [vmem:[#allocation8 + $0x2228] sm:$0xff]  ;;  %v4056_v33 = vpack.c.bf16 %v2918_v60, %v2917_v49  ;;  %v3244_v60 = vld [vmem:[#allocation13] ss:$0 sm:$0xff] }
 0x7c4   : > { %3991 = vmatprep.subr.bf16.mxu1 %v3990_v54  ;;  %4007 = vmatprep.subr.bf16.mxu0 %v4006_v25  ;;  %v4028_v53 = vpack.c.bf16 %v2789_v32, %v2787_v17  ;;  %v2502_v54 = vld [vmem:[#allocation10 + $0xa] sm:$0x3]  ;;  %v2798_v25 = vld [vmem:[#allocation8 + $0x2238] sm:$0xff]  ;;  %v2921_v17 = vld [vmem:[#allocation11 + $0x50] sm:$0xff] }
 0x7c5   : > { %v2507_v0 = vrot.slane %v2502_v54, %v4951_v27  ;;  %v2511_v56 = vrot.slane %v2502_v54, %v4948_v22  ;;  %v2922_v32 = vld [vmem:[#allocation11 + $0x58] sm:$0xff]  ;;  %v2923_v54 = vld [vmem:[#allocation11 + $0x60] sm:$0xff] }
 0x7c7   : > { %3993 = vmatpush1.bf16.msra.mxu1 %v3992_v61  ;;  %4009 = vmatpush1.bf16.msra.mxu0 %v4008_v48  ;;  %v4038_v48 = vpack.c.bf16 %v2802_v31, %v2800_v55 }
 0x7c8   : > { %3995 = vmatprep.subr.bf16.mxu1 %v3994_v5  ;;  %4011 = vmatprep.subr.bf16.mxu0 %v4010_v34  ;;  %v2799_v34 = vld [vmem:[#allocation8 + $0x2240] sm:$0xff] }
 0x7c9   : > { %v4040_v6 = vpack.c.bf16 %v2801_v35, %v2799_v34  ;;  %v2932_v34 = vld [vmem:[#allocation11 + $0xa8] sm:$0xff] }
 0x7cb   : > { %3997 = vmatpush1.bf16.msra.mxu1 %v3996_v16  ;;  %4013 = vmatpush1.bf16.msra.mxu0 %v4012_v38  ;;  %v2803_v38 = vld [vmem:[#allocation8 + $0x2260] sm:$0xff] }
 0x7cc   : > { %4015 = vmatprep.subr.bf16.mxu0 %v4014_v7  ;;  %v2805_v7 = vld [vmem:[#allocation8 + $0x2270] sm:$0xff] }
 0x7cd   : > { %v4044_v40 = vpack.c.bf16 %v2805_v7, %v2803_v38 }
 0x7cf   : > { %4017 = vmatpush1.bf16.msra.mxu0 %v4016_v45  ;;  %v2913_v45 = vld [vmem:[#allocation11 + $0x10] sm:$0xff] }
 0x7d0   : > { %4019 = vmatprep.subr.bf16.mxu0 %v4018_v44  ;;  %v4606_v44 = vmov 0.0|0.0   ;;  %v4050_v10 = vpack.c.bf16 %v2914_v8, %v2913_v45 }
 0x7d1   : > { %4046 = vmatprep.subr.bf16.mxu1 %v4606_v44 }
 0x7d3   : > { %4021 = vmatpush1.bf16.msra.mxu0 %v4020_v29  ;;  %v2916_v29 = vld [vmem:[#allocation11 + $0x28] sm:$0xff] }
 0x7d4   : > { %4023 = vmatprep.subr.bf16.mxu0 %v4022_v2  ;;  %v4053_v2 = vpack.c.bf16 %v2916_v29, %v2915_v26 }
 0x7d7   : > { %4025 = vmatpush1.bf16.msra.mxu0 %v4024_v51  ;;  %v2920_v51 = vld [vmem:[#allocation11 + $0x48] sm:$0xff] }
 0x7d8   : > { %4027 = vmatprep.subr.bf16.mxu0 %v4026_v52  ;;  %v4059_v52 = vpack.c.bf16 %v2920_v51, %v2919_v14 }
 0x7db   : > { %4029 = vmatpush1.bf16.msra.mxu0 %v4028_v53  ;;  %v4062_v53 = vpack.c.bf16 %v2922_v32, %v2921_v17 }
 0x891   : > { %v2586_v57 = vpop.f32.mrb[12].mxu0 }
 0x892   : > { %v2587_v61 = vadd.f32 %v2586_v57, %v2507_v0  ;;  %v2588_v63 = vpop.f32.mrb[13].mxu0  ;;  %v2925_v57 = vld [vmem:[#allocation11 + $0x70] sm:$0xff] }
 0x893   : > { %v2589_v1 = vadd.f32 %v2588_v63, %v2511_v56 }
 0x894   : > { %4288 = vtanh.f32 %v2587_v61  ;;  %v2926_v61 = vld [vmem:[#allocation11 + $0x78] sm:$0xff] }
 0x895   : > { %4290 = vtanh.f32 %v2589_v1  ;;  %v2592_v4 = vpop.f32.mrb[14].mxu0  ;;  %v4068_v63 = vpack.c.bf16 %v2926_v61, %v2925_v57  ;;  %v2655_v1 = vld [vmem:[#allocation10 + $0xc] sm:$0x3]  ;;  %v383_v61 = vld [vmem:[%s4921_s14 + $0x18] sm:$0xff] }
 0x896   : > { %v2593_v5 = vadd.f32 %v2592_v4, %v2507_v0  ;;  %v2594_v16 = vpop.f32.mrb[15].mxu0  ;;  %v2924_v0 = vld [vmem:[#allocation11 + $0x68] sm:$0xff]  ;;  %v2660_v4 = vrot.slane %v2655_v1, %v4951_v27 }
 0x897   : > { %v2595_v19 = vadd.f32 %v2594_v16, %v2511_v56  ;;  %v4065_v56 = vpack.c.bf16 %v2924_v0, %v2923_v54  ;;  %v4312_v0 = vld [vmem:[%s4921_s14] sm:$0xff] }
 0x898   : > { %4292 = vtanh.f32 %v2593_v5  ;;  %v2664_v5 = vrot.slane %v2655_v1, %v4948_v22 }
 0x899   : > { %4294 = vtanh.f32 %v2595_v19 }
 0x89e   : > { %v4289_v58 = vpop.eup %4288 }
 0x89f   : > { %v4291_v37 = vpop.eup %4290  ;;  %v5235_v13 = vadd.f32 %v4289_v58, %v5215_v43  ;;  %v2794_v43 = vld [vmem:[#allocation8 + $0x2218] sm:$0xff] }
 0x8a0   : > { %v5232_v12 = vadd.f32 %v4291_v37, %v5212_v42  ;;  %v2792_v42 = vld [vmem:[#allocation8 + $0x2208] sm:$0xff] }
 0x8a1   : > { %v4030_v59 = vpack.c.bf16 %v2794_v43, %v2792_v42 }
 0x8a2   : > { %v4293_v11 = vpop.eup %4292  ;;  %3240 = vmatprep.mubr.msk.f32.mxu1 %vm568_vm1, %v5232_v12 }
 0x8a3   : > { %v4295_v18 = vpop.eup %4294  ;;  %2738 = vmatmul.mubr.f32.vlgmr.msra.gmra.mrb[12].mxu1 %v5235_v13  ;;  %v5244_v21 = vadd.f32 %v4293_v11, %v5224_v15  ;;  %4031 = vmatprep.subr.bf16.mxu0 %v4030_v59  ;;  %v4036_v15 = vpack.c.bf16 %v2797_v30, %v2795_v50  ;;  %v2927_v30 = vld [vmem:[#allocation11 + $0x80] sm:$0xff] }
 0x8a4   : > { %v5241_v20 = vadd.f32 %v4295_v18, %v5221_v47  ;;  %4033 = vmatpush1.bf16.msra.mxu0 %v4032_v24  ;;  %v4034_v47 = vpack.c.bf16 %v2798_v25, %v2796_v28  ;;  %4048 = vmatpush1.bf16.msra.mxu1 %v4047_v46 }
 0x8a5   : > { %4049 = vmatprep.subr.bf16.mxu1 %v4606_v44 }
 0x8a6   : > { %3241 = vmatprep.mubr.msk.f32.mxu1 %vm568_vm1, %v5241_v20  ;;  %4035 = vmatprep.subr.bf16.mxu0 %v4034_v47 }
 0x8a7   : > { %2744 = vmatmul.mubr.f32.gmra.mrb[14].mxu1 %v5244_v21 }
 0x8a8   : > { %4037 = vmatpush1.bf16.msra.mxu0 %v4036_v15  ;;  %4051 = vmatpush1.bf16.msra.mxu1 %v4050_v10  ;;  %v2928_v15 = vld [vmem:[#allocation11 + $0x88] sm:$0xff] }
 0x8a9   : > { %4039 = vmatprep.subr.bf16.mxu0 %v4038_v48  ;;  %4052 = vmatprep.subr.bf16.mxu1 %v4606_v44  ;;  %v4071_v55 = vpack.c.bf16 %v2928_v15, %v2927_v30  ;;  %v2931_v48 = vld [vmem:[#allocation11 + $0xa0] sm:$0xff] }
 0x8aa   : > { %v4077_v35 = vpack.c.bf16 %v2932_v34, %v2931_v48 }
 0x8ac   : > { %4041 = vmatpush1.bf16.msra.mxu0 %v4040_v6  ;;  %4054 = vmatpush1.bf16.msra.mxu1 %v4053_v2  ;;  %v2808_v6 = vld [vmem:[#allocation10 + $0xe] sm:$0x3] }
 0x8ad   : > { %4043 = vmatprep.subr.bf16.mxu0 %v4042_v39  ;;  %4055 = vmatprep.subr.bf16.mxu1 %v4606_v44  ;;  %v2813_v36 = vrot.slane %v2808_v6, %v4951_v27  ;;  %v2817_v38 = vrot.slane %v2808_v6, %v4948_v22 }
 0x8b0   : > { %4045 = vmatpush1.bf16.msra.mxu0 %v4044_v40  ;;  %4057 = vmatpush1.bf16.msra.mxu1 %v4056_v33 }
 0x8b1   : > { %4058 = vmatprep.subr.bf16.mxu1 %v4606_v44 }
 0x8b4   : > { %4060 = vmatpush1.bf16.msra.mxu1 %v4059_v52 }
 0x8b5   : > { %4061 = vmatprep.subr.bf16.mxu1 %v4606_v44 }
 0x8b8   : > { %4063 = vmatpush1.bf16.msra.mxu1 %v4062_v53  ;;  %v381_v53 = vld [vmem:[%s4921_s14 + $0x8] sm:$0xff] }
 0x8b9   : > { %4064 = vmatprep.subr.bf16.mxu1 %v4606_v44 }
 0x8bc   : > { %4066 = vmatpush1.bf16.msra.mxu1 %v4065_v56 }
 0x8bd   : > { %4067 = vmatprep.subr.bf16.mxu1 %v4606_v44 }
 0x8c0   : > { %4069 = vmatpush1.bf16.msra.mxu1 %v4068_v63 }
 0x8c1   : > { %4070 = vmatprep.subr.bf16.mxu1 %v4606_v44 }
 0x8c4   : > { %4072 = vmatpush1.bf16.msra.mxu1 %v4071_v55 }
 0x8c5   : > { %4073 = vmatprep.subr.bf16.mxu1 %v4606_v44 }
 0x976   : > { %v2739_v16 = vpop.f32.mrb[12].mxu1 }
 0x977   : > { %v2740_v19 = vadd.f32 %v2739_v16, %v2660_v4  ;;  %v2741_v58 = vpop.f32.mrb[13].mxu1 }
 0x978   : > { %v2742_v37 = vadd.f32 %v2741_v58, %v2664_v5 }
 0x979   : > { %4296 = vtanh.f32 %v2740_v19 }
 0x97a   : > { %4298 = vtanh.f32 %v2742_v37  ;;  %v2745_v11 = vpop.f32.mrb[14].mxu1 }
 0x97b   : > { %v2746_v18 = vadd.f32 %v2745_v11, %v2660_v4  ;;  %v2747_v42 = vpop.f32.mrb[15].mxu1  ;;  %v4313_v4 = vld [vmem:[%s4921_s14 + $0x10] sm:$0xff] }
 0x97c   : > { %v2748_v43 = vadd.f32 %v2747_v42, %v2664_v5 }
 0x97d   : > { %4300 = vtanh.f32 %v2746_v18 }
 0x97e   : > { %4302 = vtanh.f32 %v2748_v43 }
 0x983   : > { %v4297_v59 = vpop.eup %4296 }
 0x984   : > { %v4299_v62 = vpop.eup %4298  ;;  %v2754_v24 = vadd.f32 %v4297_v59, %v5235_v13  ;;  %v2930_v13 = vld [vmem:[#allocation11 + $0x98] sm:$0xff] }
 0x985   : > { %v2755_v23 = vadd.f32 %v4299_v62, %v5232_v12  ;;  %v2929_v12 = vld [vmem:[#allocation11 + $0x90] sm:$0xff] }
 0x986   : > { %v4074_v31 = vpack.c.bf16 %v2930_v13, %v2929_v12 }
 0x987   : > { %v4301_v28 = vpop.eup %4300  ;;  %3242 = vmatprep.mubr.msk.f32.mxu0 %vm568_vm1, %v2755_v23 }
 0x988   : > { %v4303_v25 = vpop.eup %4302  ;;  %2891 = vmatmul.mubr.f32.vlgmr.msra.gmra.mrb[16].mxu0 %v2754_v24  ;;  %v2756_v50 = vadd.f32 %v4301_v28, %v5244_v21  ;;  %4075 = vmatpush1.bf16.msra.mxu1 %v4074_v31  ;;  %v2934_v21 = vld [vmem:[#allocation11 + $0xb8] sm:$0xff] }
 0x989   : > { %v2757_v47 = vadd.f32 %v4303_v25, %v5241_v20  ;;  %4076 = vmatprep.subr.bf16.mxu1 %v4606_v44  ;;  %v2933_v20 = vld [vmem:[#allocation11 + $0xb0] sm:$0xff] }
 0x98a   : > { %v4080_v3 = vpack.c.bf16 %v2934_v21, %v2933_v20 }
 0x98b   : > { %3243 = vmatprep.mubr.msk.f32.mxu0 %vm568_vm1, %v2757_v47 }
 0x98c   : > { %2897 = vmatmul.mubr.f32.gmra.mrb[18].mxu0 %v2756_v50  ;;  %4078 = vmatpush1.bf16.msra.mxu1 %v4077_v35 }
 0x98d   : > { %4079 = vmatprep.subr.bf16.mxu1 %v4606_v44 }
 0x990   : > { %4081 = vmatpush1.bf16.msra.mxu1 %v4080_v3 }
 0xa5b   : > { %v2892_v7 = vpop.f32.mrb[16].mxu0 }
 0xa5c   : > { %v2893_v39 = vadd.f32 %v2892_v7, %v2813_v36  ;;  %v2894_v40 = vpop.f32.mrb[17].mxu0 }
 0xa5d   : > { %v2895_v41 = vadd.f32 %v2894_v40, %v2817_v38 }
 0xa5e   : > { %4304 = vtanh.f32 %v2893_v39 }
 0xa5f   : > { %4306 = vtanh.f32 %v2895_v41  ;;  %v2898_v9 = vpop.f32.mrb[18].mxu0 }
 0xa60   : > { %v2899_v45 = vadd.f32 %v2898_v9, %v2813_v36  ;;  %v2900_v46 = vpop.f32.mrb[19].mxu0 }
 0xa61   : > { %v2901_v8 = vadd.f32 %v2900_v46, %v2817_v38 }
 0xa62   : > { %4308 = vtanh.f32 %v2899_v45 }
 0xa63   : > { %4310 = vtanh.f32 %v2901_v8 }
 0xa68   : > { %v4305_v10 = vpop.eup %4304 }
 0xa69   : > { %v4307_v44 = vpop.eup %4306  ;;  %v2907_v29 = vadd.f32 %v4305_v10, %v2754_v24 }
 0xa6a   : > { %v2908_v26 = vadd.f32 %v4307_v44, %v2755_v23 }
 0xa6c   : > { %v4309_v2 = vpop.eup %4308  ;;  %3245 = vmatprep.mubr.msk.f32.mxu1 %vm568_vm1, %v2908_v26 }
 0xa6d   : > { %v4311_v22 = vpop.eup %4310  ;;  %3013 = vmatmul.mubr.f32.vlgmr.msra.gmra.mrb[16].mxu1 %v2907_v29  ;;  %v2909_v49 = vadd.f32 %v4309_v2, %v2756_v50 }
 0xa6e   : > { %v2910_v27 = vadd.f32 %v4311_v22, %v2757_v47 }
 0xa70   : > { %3246 = vmatprep.mubr.msk.f32.mxu1 %vm568_vm1, %v2910_v27 }
 0xa71   : > { %3018 = vmatmul.mubr.f32.gmra.mrb[18].mxu1 %v2909_v49 }
 0xb40   : > { %v3014_v33 = vpop.f32.mrb[16].mxu1 }
 0xb41   : > { %v3015_v14 = vadd.f32 %v3244_v60, %v3014_v33  ;;  %v3016_v51 = vpop.f32.mrb[17].mxu1 }
 0xb43   : > { %3025 = vrot.lane.b32.xlu0 %v3015_v14, %s4607_s8 }
 0xb44   : > { %v3019_v52 = vpop.f32.mrb[18].mxu1 }
 0xb45   : > { %v3020_v17 = vadd.f32 %v3244_v60, %v3019_v52  ;;  %v3021_v32 = vpop.f32.mrb[19].mxu1 }
 0xb47   : > { %3027 = vrot.lane.b32.xlu0 %v3020_v17, %s4607_s8 }
 0xbb5   : > { %v3026_v54 = vpop.permute.xlu0 %3025 }
 0xbb6   : > { %v3031_v56 = vadd.f32 %v4312_v0, %v3026_v54  ;;  %v3032_v57 = vadd.f32 %v3026_v54, %v381_v53 }
 0xbb8   : > { %v3035_v63 = vsel %vm420_vm0, %v4312_v0, %v3031_v56  ;;  %3038 = vst.msk [vmem:[%s379_s23 + $0x8] sm:$0xff] %vm568_vm1, %v3032_v57 }
 0xbb9   : > { %3037 = vst [vmem:[%s379_s23] sm:$0xff] %v3035_v63  ;;  %v3028_v1 = vpop.permute.xlu0 %3027 }
 0xbba   : > { %v3033_v5 = vadd.f32 %v4313_v4, %v3028_v1  ;;  %v3034_v16 = vadd.f32 %v3028_v1, %v383_v61 }
 0xbbc   : > { %v3036_v19 = vsel %vm420_vm0, %v4313_v4, %v3033_v5  ;;  %3040 = vst.msk [vmem:[%s379_s23 + $0x18] sm:$0xff] %vm568_vm1, %v3034_v16 }
 0xbbd   : > { %3039 = vst [vmem:[%s379_s23 + $0x10] sm:$0xff] %v3036_v19 }
 0xbbe   : > { %4525 = shalt.err (!%p4522_p8)
}
 0xbbf   : > { %s4526_s22 = scalar_lea.hbm %s5287_s12, 512  ;;  %s4530_s8 = scalar_lea.hbm %s5340_s7, 1024 }
 0xbc0   : > { %p4527_p4 = scmp.ne.s32.totalorder %s5287_s12, %s4526_s22  ;;  %p4531_p0 = scmp.lt.u32.totalorder %s5287_s12, %s5340_s7 }
 0xbc1   : > { %p4532_p5 = scmp.lt.u32.totalorder %s4530_s8, %s4526_s22  ;;  %p4534_p6 = scmp.lt.u32.totalorder %s4526_s22, %s5287_s12 }
 0xbc2   : > { %p4528_p10 = pnand %p4527_p4, %p5366_p9 }
 0xbc3   : > { %p4533_p7 = por %p4532_p5, %p4531_p0 }
 0xbc4   : > { %p4529_p11 = pneg %p4528_p10 }
 0xbc5   : > { %p4535_p12 = por %p4534_p6, %p4533_p7 }
 0xbc7   : > { %p4536_p13 = pnand %p4535_p12, %p4529_p11 }
 0xbc9   : > { %4539 = shalt.err (!%p4536_p13)
}
 0xbca   : > { %s4609_s19 = smov 256   ;;  %s4610_s21 = smov 16  }
 0xbcb   : > { %4156 = dma.vmem_to_hbm [thread:$0]  (%p5366_p9), %s5281_s16, 512, %s5287_s12, %s3042_s30, %s4609_s19, %s4609_s19, %s4610_s21  }
 0xbcc PF: > { %s3070_s15 = sand.u32 1, %s4578_s24   ;;  %p5367_p1 = scmp.ne.s32.totalorder %s5355_s28, 0 }
 0xbcd   : > { %p5368_p3 = scmp.ge.s32.totalorder %s4590_s27, 2  ;;  %s3071_s20 = scalar_lea.sflag [#allocation4], %s3070_s15 }
 0xbcf   : > { %p4182_p2 = pnand %p5368_p3, %p5367_p1 }
 0xbd1   : > { %4573 = dma.done.wait (!%p4182_p2), %s3071_s20, 512  }
 0xbd2   : > { %4575 = vsyncadd (!%p4182_p2), %s3071_s20, 4294966784  ;;  %p23_p8 = scmp.ge.s32.totalorder %s4833_s11, 4   ;;  %s5369_s24 = smov %s4582_s25 }
 0xbd3   : > { %s5370_s25 = smov %s4586_s26  ;;  %s5371_s26 = smov %s4844_s10 }
 0xbd4   : > { %s5372_s27 = smov %s4833_s11  ;;  %25 = sbr.rel (!%p23_p8) target bundleno = 10 (0xa), region = 139 }
 0xbdb   :  { %3076 = vsyncpa [#allocation3], 1 }
 0xbdc   :  { %3078 = vsyncpa [#allocation3 + $0x1], 1 }
 0xbdd   :  { %3079 = vsyncpa [#allocation6], 1 }
 0xbde   :  { %3080 = vsyncpa [#allocation9], 1 }
 0xbdf   :  { %3081 = vsyncpa [#allocation12], 1 }
 0xbe0   :  { %3082 = vsyncpa [#allocation4], 1 }
 0xbe1   :  { %3084 = vsyncpa [#allocation4 + $0x1], 1 }

</bundles_post_ra>
